<compile_context>
chip_gen: v7x
topology: tpu7x:2x2x1
jax: 0.10.0
libtpu: 0.0.40
codegen_flags: <defaults>
</compile_context>

<pallas_src>
import functools

import jax
import jax.numpy as jnp
from jax import lax
from jax.experimental import pallas as pl
from jax.experimental.pallas import tpu as pltpu

KSIZE = 5
PAD = 2
NEG_SLOPE = 0.2
RES_SCALE = 0.1


def _resblockd_kernel(x_ref, w1_ref, b1_ref, w2_ref, b2_ref, out_ref, *,
                      B, L, C, C4):
    # x_ref : (B, C, L)        f32  input tile in native NCL layout
    # w1_ref: (KSIZE*C,  C4)   bf16 im2col conv1 weights (row = k*C  + cin)
    # b1_ref: (1, C4)          f32
    # w2_ref: (KSIZE*C4, C)    bf16 im2col conv2 weights, pre-scaled by 0.1
    # b2_ref: (1, C)           f32  pre-scaled by 0.1
    # out   : (B, C, L)        f32
    x_ncl = x_ref[...]                                   # f32, exact residual
    # Channels-last view for the MXU path (XLU transpose, near-free slot-wise).
    x_nlc = jnp.transpose(x_ncl, (0, 2, 1))              # (B, L, C) f32

    def conv_im2col(a, w_ref, b_ref):
        # a: (B, L, Cin) -> LeakyReLU(conv1d_k5_p2(a) + b) as (B*L, Cout) f32
        a = a.astype(w_ref.dtype)                        # bf16 BEFORE pad/im2col
        cin = a.shape[-1]
        z = jnp.zeros((B, PAD, cin), dtype=a.dtype)
        ap = jnp.concatenate([z, a, z], axis=1)          # (B, L+4, Cin) bf16
        # im2col slab: lane-block k holds rows [k, k+L) of the padded input.
        slab = jnp.concatenate(
            [ap[:, k:k + L, :] for k in range(KSIZE)], axis=-1)
        slab = slab.reshape(B * L, KSIZE * cin)          # bf16, one long-K operand
        acc = jnp.dot(slab, w_ref[...],                  # single MXU matmul, f32 acc
                      preferred_element_type=jnp.float32)
        acc = acc + b_ref[...]
        return jnp.maximum(acc, NEG_SLOPE * acc)         # LeakyReLU(0.2), f32

    h = conv_im2col(x_nlc, w1_ref, b1_ref).reshape(B, L, C4)
    # RES_SCALE is folded into w2/b2 in the wrapper (leaky relu is positively
    # homogeneous), so the residual add below needs no extra scale multiply.
    y = conv_im2col(h, w2_ref, b2_ref).reshape(B, L, C)  # (B, L, C) f32
    out_ref[...] = x_ncl + jnp.transpose(y, (0, 2, 1))   # back to (B, C, L)


def _chip_info():
    """Generation-aware VMEM budget / megacore policy."""
    try:
        kind = jax.devices()[0].device_kind.lower()
    except Exception:  # pragma: no cover - defensive
        kind = ""
    if "v7" in kind:
        # v7x: 2 TensorCores / chip, 64 MiB physical VMEM per TC.
        return dict(dual_tc=True, vmem_budget=24 << 20, vmem_limit=48 << 20)
    # v5e / v6e: 1 TensorCore, 128 MiB physical VMEM.
    return dict(dual_tc=False, vmem_budget=48 << 20, vmem_limit=64 << 20)


def _pick_batch_tile(n, l, c, *, dual_tc, vmem_budget):
    """Largest batch tile whose (corrected) VMEM estimate fits the budget."""
    c4 = c // 4
    f32, bf16 = 4, 2
    per_elem = (
        2 * l * c * f32                     # x input block, double-buffered
        + 2 * l * c * f32                   # out block, double-buffered
        + l * c * f32                       # x channels-last copy
        + (l + 2 * PAD) * c * bf16          # padded conv1 input (bf16)
        + l * KSIZE * c * bf16              # conv1 im2col slab (bf16)
        + l * c4 * (f32 + bf16)             # h (f32) + bf16 copy
        + (l + 2 * PAD) * c4 * bf16         # padded conv2 input (bf16)
        + l * KSIZE * c4 * bf16             # conv2 im2col slab (bf16)
        + 2 * l * c * f32                   # y (NLC) + transposed NCL copy
    )
    weight_bytes = 2 * (2 * KSIZE * c * c4 * bf16) + (c + c4) * f32
    bt = max(1, int((vmem_budget - weight_bytes) // max(per_elem, 1)))
    bt = min(bt, n)
    if dual_tc and n >= 2:
        # Keep >= 2 grid steps and prefer an even step count so both
        # TensorCores get balanced work.
        bt = min(bt, n // 2)
        cand = bt
        while cand >= 1 and not (n % cand == 0 and (n // cand) % 2 == 0):
            cand -= 1
        if cand >= 1:
            bt = cand
    bt = max(1, bt)
    while n % bt:                            # require an even split of the batch
        bt -= 1
    return bt


def resblockd_pallas(x_ncl, w1, b1, w2, b2, *, compute_dtype=jnp.bfloat16):
    """ResBlockD forward.  x_ncl: (N, C, L) f32 in PyTorch Conv1d layout."""
    N, C, L = x_ncl.shape
    C4 = C // 4
    assert C % 4 == 0
    assert w1.shape == (C4, C, KSIZE) and w2.shape == (C, C4, KSIZE)

    # im2col weight layout: row = k*Cin + cin, col = cout.
    w1_i2c = jnp.transpose(w1, (2, 1, 0)).reshape(KSIZE * C, C4)
    # Fold RES_SCALE into conv2 (scaled in f32 BEFORE the bf16 cast):
    #   x + 0.1*leaky(conv2(h)+b2) == x + leaky((0.1*conv2)(h) + 0.1*b2)
    w2_i2c = jnp.transpose(w2 * RES_SCALE, (2, 1, 0)).reshape(KSIZE * C4, C)
    w1_i2c = w1_i2c.astype(compute_dtype)
    w2_i2c = w2_i2c.astype(compute_dtype)
    b1_2d = b1.reshape(1, C4).astype(jnp.float32)
    b2_2d = (b2 * RES_SCALE).reshape(1, C).astype(jnp.float32)

    info = _chip_info()
    b_tile = _pick_batch_tile(N, L, C, dual_tc=info["dual_tc"],
                              vmem_budget=info["vmem_budget"])
    grid = (N // b_tile,)

    kernel = functools.partial(_resblockd_kernel, B=b_tile, L=L, C=C, C4=C4)

    return pl.pallas_call(
        kernel,
        out_shape=jax.ShapeDtypeStruct((N, C, L), jnp.float32),
        grid_spec=pltpu.PrefetchScalarGridSpec(
            num_scalar_prefetch=0,
            grid=grid,
            in_specs=[
                pl.BlockSpec((b_tile, C, L), lambda n: (n, 0, 0)),
                pl.BlockSpec((KSIZE * C, C4), lambda n: (0, 0)),
                pl.BlockSpec((1, C4), lambda n: (0, 0)),
                pl.BlockSpec((KSIZE * C4, C), lambda n: (0, 0)),
                pl.BlockSpec((1, C), lambda n: (0, 0)),
            ],
            out_specs=pl.BlockSpec((b_tile, C, L), lambda n: (n, 0, 0)),
        ),
        compiler_params=pltpu.CompilerParams(
            dimension_semantics=("parallel",),
            vmem_limit_bytes=info["vmem_limit"]),
    )(x_ncl, w1_i2c, b1_2d, w2_i2c, b2_2d)


def resblockd_reference(x_ncl, w1, b1, w2, b2):
    """Pure-JAX f32 reference matching nn.Conv1d semantics (NCL)."""
    dn = ("NCH", "OIH", "NCH")
    h = lax.conv_general_dilated(x_ncl, w1, window_strides=(1,),
                                 padding=[(PAD, PAD)], dimension_numbers=dn)
    h = h + b1[None, :, None]
    h = jnp.where(h > 0, h, NEG_SLOPE * h)
    y = lax.conv_general_dilated(h, w2, window_strides=(1,),
                                 padding=[(PAD, PAD)], dimension_numbers=dn)
    y = y + b2[None, :, None]
    y = jnp.where(y > 0, y, NEG_SLOPE * y)
    return x_ncl + RES_SCALE * y


if __name__ == "__main__":
    configs = [
        dict(N=4, HIDDEN=128, L=64),   # lane-dense channels, batched tile
        dict(N=2, HIDDEN=32, L=8),     # tiny shapes from the original demo
    ]
    key = jax.random.PRNGKey(0)
    for cfg in configs:
        N, HIDDEN, L = cfg["N"], cfg["HIDDEN"], cfg["L"]
        C4 = HIDDEN // 4
        key, kx, k1, k2, k3, k4 = jax.random.split(key, 6)
        x = jax.random.normal(kx, (N, HIDDEN, L), dtype=jnp.float32)
        w1 = jax.random.normal(k1, (C4, HIDDEN, KSIZE), jnp.float32) * 0.1
        b1 = jax.random.normal(k2, (C4,), jnp.float32) * 0.1
        w2 = jax.random.normal(k3, (HIDDEN, C4, KSIZE), jnp.float32) * 0.1
        b2 = jax.random.normal(k4, (HIDDEN,), jnp.float32) * 0.1

        out = jax.block_until_ready(resblockd_pallas(x, w1, b1, w2, b2))
        ref = resblockd_reference(x, w1, b1, w2, b2)
        assert out.shape == ref.shape == (N, HIDDEN, L)
        # bf16 MXU operands with f32 accumulation; the identity path of the
        # residual is exact f32, so only the 0.1-scaled branch sees rounding.
        err = jnp.max(jnp.abs(out - ref))
        assert jnp.allclose(out, ref, atol=2e-2, rtol=2e-2), \
            f"config {cfg}: max abs err {err}"

    print("KERNEL_OK")
</pallas_src>

<mosaic_0001>
module attributes {stable_mosaic.version = 11 : i64} {
  func.func @_resblockd_kernel(%arg0: i32, %arg1: memref<4x128x64xf32, #tpu.memory_space<vmem>>, %arg2: memref<640x32xbf16, #tpu.memory_space<vmem>>, %arg3: memref<1x32xf32, #tpu.memory_space<vmem>>, %arg4: memref<160x128xbf16, #tpu.memory_space<vmem>>, %arg5: memref<1x128xf32, #tpu.memory_space<vmem>>, %arg6: memref<4x128x64xf32, #tpu.memory_space<vmem>>) attributes {dimension_semantics = [#tpu.dimension_semantics<parallel>], iteration_bounds = array<i64: 1>, scalar_prefetch = 0 : i64, scratch_operands = 0 : i64, tpu.core_type = #tpu.core_type<tc>, window_params = [{transform_indices = @transform_0, window_bounds = array<i64: 4, 128, 64>}, {pipeline_mode = #tpu.pipeline_mode<synchronous>, transform_indices = @transform_1, window_bounds = array<i64: 640, 32>}, {pipeline_mode = #tpu.pipeline_mode<synchronous>, transform_indices = @transform_2, window_bounds = array<i64: 1, 32>}, {pipeline_mode = #tpu.pipeline_mode<synchronous>, transform_indices = @transform_3, window_bounds = array<i64: 160, 128>}, {pipeline_mode = #tpu.pipeline_mode<synchronous>, transform_indices = @transform_4, window_bounds = array<i64: 1, 128>}, {transform_indices = @transform_5, window_bounds = array<i64: 4, 128, 64>}]} {
    %c0 = arith.constant 0 : index
    %c0_0 = arith.constant 0 : index
    %c0_1 = arith.constant 0 : index
    %0 = vector.load %arg1[%c0, %c0_0, %c0_1] : memref<4x128x64xf32, #tpu.memory_space<vmem>>, vector<4x128x64xf32>
    %1 = tpu.transpose %0, [0, 2, 1] : vector<4x128x64xf32> -> vector<4x64x128xf32>
    %2 = arith.truncf %1 : vector<4x64x128xf32> to vector<4x64x128xbf16>
    %cst = arith.constant 0.000000e+00 : bf16
    %3 = vector.broadcast %cst : bf16 to vector<4x2x128xbf16>
    %4 = tpu.concatenate %3, %2, %3 in 1 : vector<4x2x128xbf16>, vector<4x64x128xbf16>, vector<4x2x128xbf16> -> vector<4x68x128xbf16>
    %5 = vector.extract_strided_slice %4 {offsets = [0, 0, 0], sizes = [4, 64, 128], strides = [1, 1, 1]} : vector<4x68x128xbf16> to vector<4x64x128xbf16>
    %6 = vector.extract_strided_slice %4 {offsets = [0, 1, 0], sizes = [4, 64, 128], strides = [1, 1, 1]} : vector<4x68x128xbf16> to vector<4x64x128xbf16>
    %7 = vector.extract_strided_slice %4 {offsets = [0, 2, 0], sizes = [4, 64, 128], strides = [1, 1, 1]} : vector<4x68x128xbf16> to vector<4x64x128xbf16>
    %8 = vector.extract_strided_slice %4 {offsets = [0, 3, 0], sizes = [4, 64, 128], strides = [1, 1, 1]} : vector<4x68x128xbf16> to vector<4x64x128xbf16>
    %9 = vector.extract_strided_slice %4 {offsets = [0, 4, 0], sizes = [4, 64, 128], strides = [1, 1, 1]} : vector<4x68x128xbf16> to vector<4x64x128xbf16>
    %10 = tpu.concatenate %5, %6, %7, %8, %9 in 2 : vector<4x64x128xbf16>, vector<4x64x128xbf16>, vector<4x64x128xbf16>, vector<4x64x128xbf16>, vector<4x64x128xbf16> -> vector<4x64x640xbf16>
    %11 = vector.shape_cast %10 : vector<4x64x640xbf16> to vector<256x640xbf16>
    %c0_2 = arith.constant 0 : index
    %c0_3 = arith.constant 0 : index
    %12 = vector.load %arg2[%c0_2, %c0_3] : memref<640x32xbf16, #tpu.memory_space<vmem>>, vector<640x32xbf16>
    %cst_4 = arith.constant dense<0.000000e+00> : vector<256x32xf32>
    %13 = tpu.matmul %11, %12, %cst_4 {dimension_numbers = #tpu.dot_dimension_numbers<[1], [0], [0], [1], [0, 0, 1, 1], [], []>} : vector<256x640xbf16>, vector<640x32xbf16>, vector<256x32xf32> -> vector<256x32xf32>
    %c0_5 = arith.constant 0 : index
    %c0_6 = arith.constant 0 : index
    %14 = vector.load %arg3[%c0_5, %c0_6] : memref<1x32xf32, #tpu.memory_space<vmem>>, vector<1x32xf32>
    %15 = vector.broadcast %14 : vector<1x32xf32> to vector<256x32xf32>
    %16 = arith.addf %13, %15 : vector<256x32xf32>
    %cst_7 = arith.constant 2.000000e-01 : f32
    %17 = vector.broadcast %cst_7 : f32 to vector<256x32xf32>
    %18 = arith.mulf %17, %16 : vector<256x32xf32>
    %19 = arith.maximumf %16, %18 : vector<256x32xf32>
    %20 = vector.shape_cast %19 : vector<256x32xf32> to vector<4x64x32xf32>
    %21 = arith.truncf %20 : vector<4x64x32xf32> to vector<4x64x32xbf16>
    %cst_8 = arith.constant 0.000000e+00 : bf16
    %22 = vector.broadcast %cst_8 : bf16 to vector<4x2x32xbf16>
    %23 = tpu.concatenate %22, %21, %22 in 1 : vector<4x2x32xbf16>, vector<4x64x32xbf16>, vector<4x2x32xbf16> -> vector<4x68x32xbf16>
    %24 = vector.extract_strided_slice %23 {offsets = [0, 0, 0], sizes = [4, 64, 32], strides = [1, 1, 1]} : vector<4x68x32xbf16> to vector<4x64x32xbf16>
    %25 = vector.extract_strided_slice %23 {offsets = [0, 1, 0], sizes = [4, 64, 32], strides = [1, 1, 1]} : vector<4x68x32xbf16> to vector<4x64x32xbf16>
    %26 = vector.extract_strided_slice %23 {offsets = [0, 2, 0], sizes = [4, 64, 32], strides = [1, 1, 1]} : vector<4x68x32xbf16> to vector<4x64x32xbf16>
    %27 = vector.extract_strided_slice %23 {offsets = [0, 3, 0], sizes = [4, 64, 32], strides = [1, 1, 1]} : vector<4x68x32xbf16> to vector<4x64x32xbf16>
    %28 = vector.extract_strided_slice %23 {offsets = [0, 4, 0], sizes = [4, 64, 32], strides = [1, 1, 1]} : vector<4x68x32xbf16> to vector<4x64x32xbf16>
    %29 = tpu.concatenate %24, %25, %26, %27, %28 in 2 : vector<4x64x32xbf16>, vector<4x64x32xbf16>, vector<4x64x32xbf16>, vector<4x64x32xbf16>, vector<4x64x32xbf16> -> vector<4x64x160xbf16>
    %30 = vector.shape_cast %29 : vector<4x64x160xbf16> to vector<256x160xbf16>
    %c0_9 = arith.constant 0 : index
    %c0_10 = arith.constant 0 : index
    %31 = vector.load %arg4[%c0_9, %c0_10] : memref<160x128xbf16, #tpu.memory_space<vmem>>, vector<160x128xbf16>
    %cst_11 = arith.constant dense<0.000000e+00> : vector<256x128xf32>
    %32 = tpu.matmul %30, %31, %cst_11 {dimension_numbers = #tpu.dot_dimension_numbers<[1], [0], [0], [1], [0, 0, 1, 1], [], []>} : vector<256x160xbf16>, vector<160x128xbf16>, vector<256x128xf32> -> vector<256x128xf32>
    %c0_12 = arith.constant 0 : index
    %c0_13 = arith.constant 0 : index
    %33 = vector.load %arg5[%c0_12, %c0_13] : memref<1x128xf32, #tpu.memory_space<vmem>>, vector<1x128xf32>
    %34 = vector.broadcast %33 : vector<1x128xf32> to vector<256x128xf32>
    %35 = arith.addf %32, %34 : vector<256x128xf32>
    %cst_14 = arith.constant 2.000000e-01 : f32
    %36 = vector.broadcast %cst_14 : f32 to vector<256x128xf32>
    %37 = arith.mulf %36, %35 : vector<256x128xf32>
    %38 = arith.maximumf %35, %37 : vector<256x128xf32>
    %39 = vector.shape_cast %38 : vector<256x128xf32> to vector<4x64x128xf32>
    %40 = tpu.transpose %39, [0, 2, 1] : vector<4x64x128xf32> -> vector<4x128x64xf32>
    %41 = arith.addf %0, %40 : vector<4x128x64xf32>
    %c0_15 = arith.constant 0 : index
    %c0_16 = arith.constant 0 : index
    %c0_17 = arith.constant 0 : index
    %42 = vector.load %arg6[%c0_15, %c0_16, %c0_17] : memref<4x128x64xf32, #tpu.memory_space<vmem>>, vector<4x128x64xf32>
    tpu.vector_store %arg6[%c0_15, %c0_16, %c0_17], %41 {strides = array<i32>} : memref<4x128x64xf32, #tpu.memory_space<vmem>>, vector<4x128x64xf32>,
    return
  }
  func.func @transform_0(%arg0: i32) -> (i32, i32, i32) {
    %c0_i32 = arith.constant 0 : i32
    %c0_i32_0 = arith.constant 0 : i32
    %c0_i32_1 = arith.constant 0 : i32
    return %arg0, %c0_i32, %c0_i32_0 : i32, i32, i32
  }
  func.func @transform_1(%arg0: i32) -> (i32, i32) {
    %c0_i32 = arith.constant 0 : i32
    %c0_i32_0 = arith.constant 0 : i32
    %c0_i32_1 = arith.constant 0 : i32
    return %c0_i32, %c0_i32_0 : i32, i32
  }
  func.func @transform_2(%arg0: i32) -> (i32, i32) {
    %c0_i32 = arith.constant 0 : i32
    %c0_i32_0 = arith.constant 0 : i32
    %c0_i32_1 = arith.constant 0 : i32
    return %c0_i32, %c0_i32_0 : i32, i32
  }
  func.func @transform_3(%arg0: i32) -> (i32, i32) {
    %c0_i32 = arith.constant 0 : i32
    %c0_i32_0 = arith.constant 0 : i32
    %c0_i32_1 = arith.constant 0 : i32
    return %c0_i32, %c0_i32_0 : i32, i32
  }
  func.func @transform_4(%arg0: i32) -> (i32, i32) {
    %c0_i32 = arith.constant 0 : i32
    %c0_i32_0 = arith.constant 0 : i32
    %c0_i32_1 = arith.constant 0 : i32
    return %c0_i32, %c0_i32_0 : i32, i32
  }
  func.func @transform_5(%arg0: i32) -> (i32, i32, i32) {
    %c0_i32 = arith.constant 0 : i32
    %c0_i32_0 = arith.constant 0 : i32
    %c0_i32_1 = arith.constant 0 : i32
    return %arg0, %c0_i32, %c0_i32_0 : i32, i32, i32
  }
}

</mosaic_0001>

<bundles_post_ra>
// kernel: tpu_custom_call.1
= control target key start
LH: loop header
LB: loop body
LE: loop exit
PB: predicated region body
PF: predicated region fallthrough
CT: control target
= control target key end

     0   :  { %10 = vsyncpa [#allocation3], 0  ;;  %s4700_s0 = inlined_call_operand.hbm [shape: f32[4,128,64], index: 0, kind: input, shape index: {}]   ;;  %s4701_s1 = inlined_call_operand.hbm [shape: bf16[640,32], index: 1, kind: input, shape index: {}]   ;;  %s4702_s2 = inlined_call_operand.hbm [shape: f32[1,32], index: 2, kind: input, shape index: {}]   ;;  %s4703_s3 = inlined_call_operand.hbm [shape: bf16[160,128], index: 3, kind: input, shape index: {}]   ;;  %s4704_s4 = inlined_call_operand.hbm [shape: f32[1,128], index: 4, kind: input, shape index: {}]   ;;  %s4705_s5 = inlined_call_operand.hbm [shape: f32[4,128,64], index: 5, kind: output, shape index: {}]  }
   0x1   :  { %11 = vsyncpa [#allocation6], 0 }
   0x2   :  { %12 = vsyncpa [#allocation9], 0 }
   0x3   :  { %13 = vsyncpa [#allocation4], 0  ;;  %s3493_s18 = smov [#allocation5]   ;;  %s3353_s22 = scalar_lea.hbm %s4701_s1, 5120 }
   0x4   :  { %s31_s19 = sshll.u32 %s3493_s18, 4  ;;  %p3354_p0 = scmp.ne.s32.totalorder %s4701_s1, %s3353_s22  ;;  %s32_s19 = int_to_ptr.vmem [resolvable:$true] %s31_s19 }
   0x5   :  { %p3357_p1 = scmp.lt.u32.totalorder %s3353_s22, %s4701_s1 }
   0x7   :  { %p3359_p2 = pnand %p3357_p1, %p3354_p0 }
   0x9   :  { %3362 = shalt.err (!%p3359_p2)
}
   0xa   :  { %s3363_s27 = scalar_lea.vmem %s32_s19, 5120  ;;  %p3368_p4 = scmp.lt.s32.totalorder %s32_s19, %s32_s19 }
   0xb   :  { %p3364_p3 = scmp.ne.s32.totalorder %s32_s19, %s3363_s27  ;;  %p3369_p5 = scmp.lt.s32.totalorder %s3363_s27, %s3363_s27 }
   0xd   :  { %p3370_p6 = por %p3369_p5, %p3368_p4 }
   0xf   :  { %p3371_p7 = pnand %p3370_p6, %p3364_p3 }
  0x11   :  { %3374 = shalt.err (!%p3371_p7)
}
  0x12   :  { %s3494_s28 = smov 64   ;;  %s3495_s29 = smov 4  }
  0x13   :  { %37 = dma.hbm_to_vmem [thread:$0]  %s4701_s1, 5120, %s32_s19, [#allocation6], %s3494_s28, %s3494_s28, %s3495_s29  }
  0x14   :  { %s3496_s7 = smov [#allocation8]   ;;  %s3497_s9 = smov [#allocation2]  }
  0x15   :  { %s53_s8 = sshll.u32 %s3496_s7, 4  ;;  %s19_s10 = sshll.u32 %s3497_s9, 4  ;;  %s54_s8 = int_to_ptr.vmem [resolvable:$true] %s53_s8  ;;  %s20_s10 = int_to_ptr.vmem [resolvable:$true] %s19_s10 }
  0x16   :  { %s3375_s13 = scalar_lea.hbm %s4703_s3, 1280 }
  0x17   :  { %p3376_p8 = scmp.ne.s32.totalorder %s4703_s3, %s3375_s13  ;;  %p3379_p9 = scmp.lt.u32.totalorder %s3375_s13, %s4703_s3 }
  0x19   :  { %p3381_p10 = pnand %p3379_p9, %p3376_p8 }
  0x1b   :  { %3384 = shalt.err (!%p3381_p10)
}
  0x1c   :  { %s3385_s1 = scalar_lea.vmem %s54_s8, 1280  ;;  %p3390_p12 = scmp.lt.s32.totalorder %s54_s8, %s54_s8 }
  0x1d   :  { %p3386_p11 = scmp.ne.s32.totalorder %s54_s8, %s3385_s1  ;;  %p3391_p13 = scmp.lt.s32.totalorder %s3385_s1, %s3385_s1 }
  0x1f   :  { %p3392_p0 = por %p3391_p13, %p3390_p12 }
  0x21   :  { %p3393_p1 = pnand %p3392_p0, %p3386_p11 }
  0x23   :  { %3396 = shalt.err (!%p3393_p1)
}
  0x24   :  { %59 = dma.hbm_to_vmem [thread:$0]  %s4703_s3, 1280, %s54_s8, [#allocation9], %s3494_s28, %s3494_s28, %s3495_s29  }
  0x25   :  { %s3397_s22 = scalar_lea.hbm %s4700_s0, 8192 }
  0x26   :  { %p3398_p2 = scmp.ne.s32.totalorder %s4700_s0, %s3397_s22  ;;  %p3401_p3 = scmp.lt.u32.totalorder %s3397_s22, %s4700_s0 }
  0x28   :  { %p3403_p4 = pnand %p3401_p3, %p3398_p2 }
  0x2a   :  { %3406 = shalt.err (!%p3403_p4)
}
  0x2b   :  { %s3407_s27 = scalar_lea.vmem %s20_s10, 8192  ;;  %p3412_p6 = scmp.lt.s32.totalorder %s20_s10, %s20_s10 }
  0x2c   :  { %p3408_p5 = scmp.ne.s32.totalorder %s20_s10, %s3407_s27  ;;  %p3413_p7 = scmp.lt.s32.totalorder %s3407_s27, %s3407_s27 }
  0x2e   :  { %p3414_p8 = por %p3413_p7, %p3412_p6 }
  0x30   :  { %p3415_p9 = pnand %p3414_p8, %p3408_p5 }
  0x32   :  { %3418 = shalt.err (!%p3415_p9)
}
  0x33   :  { %s3498_s3 = smov 128   ;;  %s3499_s29 = smov 8  }
  0x34   :  { %25 = dma.hbm_to_vmem [thread:$0]  %s4700_s0, 8192, %s20_s10, [#allocation3], %s3498_s3, %s3498_s3, %s3499_s29  }
  0x35   :  { %s3500_s7 = smov [#allocation7]   ;;  %s3501_s9 = smov [#allocation10]  }
  0x36   :  { %s44_s8 = sshll.u32 %s3500_s7, 4  ;;  %s66_s11 = sshll.u32 %s3501_s9, 4  ;;  %s45_s8 = int_to_ptr.vmem [resolvable:$true] %s44_s8  ;;  %s67_s11 = int_to_ptr.vmem [resolvable:$true] %s66_s11 }
  0x37   :  { %s3419_s14 = scalar_lea.hbm %s4702_s2, 16 }
  0x38   :  { %p3420_p10 = scmp.ne.s32.totalorder %s4702_s2, %s3419_s14  ;;  %p3423_p11 = scmp.lt.u32.totalorder %s3419_s14, %s4702_s2 }
  0x3a   :  { %p3425_p12 = pnand %p3423_p11, %p3420_p10 }
  0x3c   :  { %3428 = shalt.err (!%p3425_p12)
}
  0x3d   :  { %s3429_s0 = scalar_lea.vmem %s45_s8, 16  ;;  %s3433_s10 = scalar_lea.vmem %s45_s8, 32 }
  0x3e   :  { %p3430_p13 = scmp.ne.s32.totalorder %s45_s8, %s3429_s0  ;;  %p3434_p0 = scmp.lt.s32.totalorder %s45_s8, %s45_s8 }
  0x3f   :  { %p3435_p1 = scmp.lt.s32.totalorder %s3433_s10, %s3429_s0 }
  0x41   :  { %p3436_p2 = por %p3435_p1, %p3434_p0 }
  0x43   :  { %p3437_p3 = pnand %p3436_p2, %p3430_p13 }
  0x45   :  { %3440 = shalt.err (!%p3437_p3)
}
  0x46   :  { %47 = dma.hbm_to_vmem [thread:$0]  %s4702_s2, 16, %s45_s8, [#allocation6]  }
  0x47   :  { %s3441_s22 = scalar_lea.hbm %s4704_s4, 16 }
  0x48   :  { %p3442_p4 = scmp.ne.s32.totalorder %s4704_s4, %s3441_s22  ;;  %p3445_p5 = scmp.lt.u32.totalorder %s3441_s22, %s4704_s4 }
  0x4a   :  { %p3447_p6 = pnand %p3445_p5, %p3442_p4 }
  0x4c   :  { %3450 = shalt.err (!%p3447_p6)
}
  0x4d   :  { %s3451_s27 = scalar_lea.vmem %s67_s11, 16  ;;  %s3455_s30 = scalar_lea.vmem %s67_s11, 32 }
  0x4e   :  { %p3452_p7 = scmp.ne.s32.totalorder %s67_s11, %s3451_s27  ;;  %p3456_p8 = scmp.lt.s32.totalorder %s67_s11, %s67_s11 }
  0x4f   :  { %p3457_p9 = scmp.lt.s32.totalorder %s3455_s30, %s3451_s27 }
  0x51   :  { %p3458_p10 = por %p3457_p9, %p3456_p8 }
  0x53   :  { %p3459_p11 = pnand %p3458_p10, %p3452_p7 }
  0x55   :  { %3462 = shalt.err (!%p3459_p11)
}
  0x56   :  { %69 = dma.hbm_to_vmem [thread:$0]  %s4704_s4, 16, %s67_s11, [#allocation9]  }
  0x57   :  { %3485 = dma.done.wait [#allocation3], 8192  }
  0x58   :  { %3486 = vsyncadd [#allocation3], 4294959104 }
  0x59   :  { %3487 = dma.done.wait [#allocation6], 5136  }
  0x5a   :  { %3488 = vsyncadd [#allocation6], 4294962160 }
  0x5b   :  { %3489 = dma.done.wait [#allocation9], 1296  }
  0x5c   :  { %3490 = vsyncadd [#allocation9], 4294966000  ;;  %v86_v0 = vld [vmem:[#allocation2] sm:$0xff]  ;;  %v87_v2 = vld [vmem:[#allocation2 + $0x8] sm:$0xff]  ;;  %vm310_vm0 = vcmask 1040384   ;;  %vm534_vm2 = vcmask 1046528  }
  0x5d   :  { %v102_v1 = vld [vmem:[#allocation2 + $0x80] sm:$0xff]  ;;  %150 = vxpose.xlu0.b32.start [1/16] (narrow) %v86_v0, 64  ;;  %v103_v3 = vld [vmem:[#allocation2 + $0x88] sm:$0xff]  ;;  %v88_v4 = vld [vmem:[#allocation2 + $0x10] sm:$0xff]  ;;  %vm373_vm1 = vsmask.f32 7424 }
  0x5e   :  { %182 = vxpose.xlu1.b32.start [1/16] (narrow) %v102_v1, 64  ;;  %v104_v5 = vld [vmem:[#allocation2 + $0x90] sm:$0xff]  ;;  %v89_v6 = vld [vmem:[#allocation2 + $0x18] sm:$0xff]  ;;  %v90_v8 = vld [vmem:[#allocation2 + $0x20] sm:$0xff]  ;;  %vm688_vm3 = vcmask 1045504   ;;  %vm2087_vm6 = vcmask 261120  }
  0x5f   :  { %v105_v7 = vld [vmem:[#allocation2 + $0x98] sm:$0xff]  ;;  %v106_v9 = vld [vmem:[#allocation2 + $0xa0] sm:$0xff]  ;;  %v91_v10 = vld [vmem:[#allocation2 + $0x28] sm:$0xff]  ;;  %vm587_vm5 = vsmask.f32 6400  ;;  %s3503_s4 = smov 96  }
  0x60   :  { %v107_v11 = vld [vmem:[#allocation2 + $0xa8] sm:$0xff]  ;;  %v3239_v12 = vld [vmem:[#allocation5 + $0x40] sm:$0xff]   ;;  %v92_v14 = vld [vmem:[#allocation2 + $0x30] sm:$0xff]  ;;  %s3504_s7 = smov 32   ;;  %vm2120_vm7 = vcmask 523264   ;;  %vm2153_vm8 = vcmask 785408  }
  0x61   :  { %151 = vxpose.xlu0.b32.cont [2/16] (narrow) %v87_v2, 64  ;;  %v3240_v13 = vld [vmem:[#allocation5] sm:$0xff]   ;;  %v108_v15 = vld [vmem:[#allocation2 + $0xb0] sm:$0xff]  ;;  %2913 = vmatprep.subr.bf16.mxu0 %v3239_v12  ;;  %v3241_v16 = vld [vmem:[#allocation5 + $0x48] sm:$0xff]  }
  0x62   :  { %183 = vxpose.xlu1.b32.cont [2/16] (narrow) %v103_v3, 64  ;;  %2914 = vmatpush3.bf16.msra.mxu0 %v3240_v13  ;;  %v3242_v17 = vld [vmem:[#allocation5 + $0x8] sm:$0xff]   ;;  %v93_v18 = vld [vmem:[#allocation2 + $0x38] sm:$0xff]  ;;  %v3603_v20 = vld [vmem:[#allocation5 + $0xc0] sm:$0xff]  }
  0x63   :  { %v109_v19 = vld [vmem:[#allocation2 + $0xb8] sm:$0xff]  ;;  %2915 = vmatprep.subr.bf16.mxu0 %v3241_v16  ;;  %v3244_v21 = vld [vmem:[#allocation5 + $0x50] sm:$0xff]   ;;  %3209 = vmatprep.subr.bf16.mxu1 %v3603_v20  ;;  %v3606_v22 = vld [vmem:[#allocation5 + $0x80] sm:$0xff]  }
  0x64   :  { %v94_v23 = vld [vmem:[#allocation2 + $0x40] sm:$0xff]  ;;  %v3246_v25 = vld [vmem:[#allocation5 + $0x10] sm:$0xff]   ;;  %v3608_v26 = vld [vmem:[#allocation5 + $0xc8] sm:$0xff]   ;;  %3217 = vmatpush3.bf16.msra.mxu1 %v3606_v22 }
  0x65   :  { %152 = vxpose.xlu0.b32.cont [3/16] (narrow) %v88_v4, 64  ;;  %v110_v24 = vld [vmem:[#allocation2 + $0xc0] sm:$0xff]  ;;  %v3248_v27 = vld [vmem:[#allocation5 + $0x58] sm:$0xff]   ;;  %3210 = vmatprep.subr.bf16.mxu1 %v3608_v26  ;;  %v3612_v28 = vld [vmem:[#allocation5 + $0x88] sm:$0xff]  }
  0x66   :  { %184 = vxpose.xlu1.b32.cont [3/16] (narrow) %v104_v5, 64  ;;  %2916 = vmatpush3.bf16.msra.mxu0 %v3242_v17  ;;  %v95_v29 = vld [vmem:[#allocation2 + $0x48] sm:$0xff]  ;;  %v3250_v31 = vld [vmem:[#allocation5 + $0x18] sm:$0xff]   ;;  %v3615_v32 = vld [vmem:[#allocation5 + $0xd0] sm:$0xff]  }
  0x67   :  { %2917 = vmatprep.subr.bf16.mxu0 %v3244_v21  ;;  %v111_v30 = vld [vmem:[#allocation2 + $0xc8] sm:$0xff]  ;;  %v3252_v33 = vld [vmem:[#allocation5 + $0x60] sm:$0xff]   ;;  %v96_v34 = vld [vmem:[#allocation2 + $0x50] sm:$0xff] }
  0x68   :  { %3218 = vmatpush3.bf16.msra.mxu1 %v3612_v28  ;;  %v3618_v35 = vld [vmem:[#allocation5 + $0x90] sm:$0xff]   ;;  %v3254_v37 = vld [vmem:[#allocation5 + $0x20] sm:$0xff]   ;;  %v3621_v38 = vld [vmem:[#allocation5 + $0xd8] sm:$0xff]  }
  0x69   :  { %153 = vxpose.xlu0.b32.cont [4/16] (narrow) %v89_v6, 64  ;;  %3211 = vmatprep.subr.bf16.mxu1 %v3615_v32  ;;  %v112_v36 = vld [vmem:[#allocation2 + $0xd0] sm:$0xff]  ;;  %v3256_v39 = vld [vmem:[#allocation5 + $0x68] sm:$0xff]   ;;  %v97_v40 = vld [vmem:[#allocation2 + $0x58] sm:$0xff] }
  0x6a   :  { %185 = vxpose.xlu1.b32.cont [4/16] (narrow) %v105_v7, 64  ;;  %2918 = vmatpush3.bf16.msra.mxu0 %v3246_v25  ;;  %v113_v41 = vld [vmem:[#allocation2 + $0xd8] sm:$0xff]  ;;  %v3258_v43 = vld [vmem:[#allocation5 + $0x28] sm:$0xff]   ;;  %v3626_v44 = vld [vmem:[#allocation5 + $0xe0] sm:$0xff]  }
  0x6b   :  { %2919 = vmatprep.subr.bf16.mxu0 %v3248_v27  ;;  %v3624_v42 = vld [vmem:[#allocation5 + $0x98] sm:$0xff]   ;;  %v3260_v45 = vld [vmem:[#allocation5 + $0x70] sm:$0xff]   ;;  %v98_v46 = vld [vmem:[#allocation2 + $0x60] sm:$0xff] }
  0x6c   :  { %3219 = vmatpush3.bf16.msra.mxu1 %v3618_v35  ;;  %v114_v47 = vld [vmem:[#allocation2 + $0xe0] sm:$0xff]  ;;  %v3262_v49 = vld [vmem:[#allocation5 + $0x30] sm:$0xff]   ;;  %v3632_v50 = vld [vmem:[#allocation5 + $0xe8] sm:$0xff]  }
  0x6d   :  { %154 = vxpose.xlu0.b32.cont [5/16] (narrow) %v90_v8, 64  ;;  %3212 = vmatprep.subr.bf16.mxu1 %v3621_v38  ;;  %v3630_v48 = vld [vmem:[#allocation5 + $0xa0] sm:$0xff]   ;;  %v3264_v51 = vld [vmem:[#allocation5 + $0x78] sm:$0xff]   ;;  %v99_v52 = vld [vmem:[#allocation2 + $0x68] sm:$0xff] }
  0x6e   :  { %186 = vxpose.xlu1.b32.cont [5/16] (narrow) %v106_v9, 64  ;;  %2920 = vmatpush3.bf16.msra.mxu0 %v3250_v31  ;;  %v115_v53 = vld [vmem:[#allocation2 + $0xe8] sm:$0xff]  ;;  %v3266_v55 = vld [vmem:[#allocation5 + $0x38] sm:$0xff]   ;;  %v3638_v56 = vld [vmem:[#allocation5 + $0xf0] sm:$0xff]  }
  0x6f   :  { %2921 = vmatprep.subr.bf16.mxu0 %v3252_v33  ;;  %v3636_v54 = vld [vmem:[#allocation5 + $0xa8] sm:$0xff]   ;;  %v3642_v57 = vld [vmem:[#allocation5 + $0xb0] sm:$0xff]   ;;  %v3645_v59 = vld [vmem:[#allocation5 + $0xf8] sm:$0xff]  }
  0x70   :  { %3220 = vmatpush3.bf16.msra.mxu1 %v3624_v42  ;;  %v100_v58 = vld [vmem:[#allocation2 + $0x70] sm:$0xff]  ;;  %v3647_v61 = vld [vmem:[#allocation5 + $0xb8] sm:$0xff]   ;;  %v118_v0 = vld [vmem:[#allocation2 + $0x100] sm:$0xff] }
  0x71   :  { %155 = vxpose.xlu0.b32.cont [6/16] (narrow) %v91_v10, 64  ;;  %3213 = vmatprep.subr.bf16.mxu1 %v3626_v44  ;;  %v116_v60 = vld [vmem:[#allocation2 + $0xf0] sm:$0xff]  ;;  %v101_v62 = vld [vmem:[#allocation2 + $0x78] sm:$0xff]  ;;  %v134_v1 = vld [vmem:[#allocation2 + $0x180] sm:$0xff] }
  0x72   :  { %187 = vxpose.xlu1.b32.cont [6/16] (narrow) %v107_v11, 64  ;;  %2922 = vmatpush3.bf16.msra.mxu0 %v3254_v37  ;;  %v117_v63 = vld [vmem:[#allocation2 + $0xf8] sm:$0xff]  ;;  %v119_v2 = vld [vmem:[#allocation2 + $0x108] sm:$0xff]  ;;  %v120_v4 = vld [vmem:[#allocation2 + $0x110] sm:$0xff] }
  0x73   :  { %2923 = vmatprep.subr.bf16.mxu0 %v3256_v39  ;;  %v135_v3 = vld [vmem:[#allocation2 + $0x188] sm:$0xff]  ;;  %v136_v5 = vld [vmem:[#allocation2 + $0x190] sm:$0xff]  ;;  %v121_v6 = vld [vmem:[#allocation2 + $0x118] sm:$0xff] }
  0x74   :  { %3221 = vmatpush3.bf16.msra.mxu1 %v3630_v48  ;;  %v137_v7 = vld [vmem:[#allocation2 + $0x198] sm:$0xff]  ;;  %v122_v8 = vld [vmem:[#allocation2 + $0x120] sm:$0xff]  ;;  %v123_v10 = vld [vmem:[#allocation2 + $0x128] sm:$0xff] }
  0x75   :  { %156 = vxpose.xlu0.b32.cont [7/16] (narrow) %v92_v14, 64  ;;  %3214 = vmatprep.subr.bf16.mxu1 %v3632_v50  ;;  %v138_v9 = vld [vmem:[#allocation2 + $0x1a0] sm:$0xff]  ;;  %v139_v11 = vld [vmem:[#allocation2 + $0x1a8] sm:$0xff]  ;;  %v124_v12 = vld [vmem:[#allocation2 + $0x130] sm:$0xff] }
  0x76   :  { %188 = vxpose.xlu1.b32.cont [7/16] (narrow) %v108_v15, 64  ;;  %2924 = vmatpush3.bf16.msra.mxu0 %v3258_v43  ;;  %v140_v13 = vld [vmem:[#allocation2 + $0x1b0] sm:$0xff]  ;;  %v125_v14 = vld [vmem:[#allocation2 + $0x138] sm:$0xff]  ;;  %v126_v16 = vld [vmem:[#allocation2 + $0x140] sm:$0xff] }
  0x77   :  { %2925 = vmatprep.subr.bf16.mxu0 %v3260_v45  ;;  %v141_v15 = vld [vmem:[#allocation2 + $0x1b8] sm:$0xff]  ;;  %v142_v17 = vld [vmem:[#allocation2 + $0x1c0] sm:$0xff]  ;;  %v144_v21 = vld [vmem:[#allocation2 + $0x1d0] sm:$0xff] }
  0x78   :  { %3222 = vmatpush3.bf16.msra.mxu1 %v3636_v54  ;;  %v130_v25 = vld [vmem:[#allocation2 + $0x160] sm:$0xff]  ;;  %v132_v31 = vld [vmem:[#allocation2 + $0x170] sm:$0xff]  ;;  %vm3697_vm4 = vmneg %vm310_vm0 }
  0x79   :  { %157 = vxpose.xlu0.b32.cont [8/16] (narrow) %v93_v18, 64  ;;  %3215 = vmatprep.subr.bf16.mxu1 %v3638_v56  ;;  %v127_v18 = vld [vmem:[#allocation2 + $0x148] sm:$0xff]  ;;  %v146_v27 = vld [vmem:[#allocation2 + $0x1e0] sm:$0xff]  ;;  %v148_v33 = vld [vmem:[#allocation2 + $0x1f0] sm:$0xff] }
  0x7a   :  { %189 = vxpose.xlu1.b32.cont [8/16] (narrow) %v109_v19, 64  ;;  %2926 = vmatpush3.bf16.msra.mxu0 %v3262_v49  ;;  %v143_v19 = vld [vmem:[#allocation2 + $0x1c8] sm:$0xff] }
  0x7b   :  { %2927 = vmatprep.subr.bf16.mxu0 %v3264_v51 }
  0x7c   :  { %3223 = vmatpush3.bf16.msra.mxu1 %v3642_v57 }
  0x7d   :  { %158 = vxpose.xlu0.b32.cont [9/16] (narrow) %v94_v23, 64  ;;  %3216 = vmatprep.subr.bf16.mxu1 %v3645_v59  ;;  %v129_v23 = vld [vmem:[#allocation2 + $0x158] sm:$0xff] }
  0x7e   :  { %190 = vxpose.xlu1.b32.cont [9/16] (narrow) %v110_v24, 64  ;;  %2928 = vmatpush3.bf16.msra.mxu0 %v3266_v55  ;;  %v145_v24 = vld [vmem:[#allocation2 + $0x1d8] sm:$0xff] }
  0x7f   :  { %3025 = vmatprep.subr.bf16.mxu0 %v3603_v20  ;;  %v128_v20 = vld [vmem:[#allocation2 + $0x150] sm:$0xff] }
  0x80   :  { %3224 = vmatpush3.bf16.msra.mxu1 %v3647_v61 }
  0x81   :  { %159 = vxpose.xlu0.b32.cont [10/16] (narrow) %v95_v29, 64  ;;  %v131_v29 = vld [vmem:[#allocation2 + $0x168] sm:$0xff] }
  0x82   :  { %191 = vxpose.xlu1.b32.cont [10/16] (narrow) %v111_v30, 64  ;;  %v147_v30 = vld [vmem:[#allocation2 + $0x1e8] sm:$0xff] }
  0x85   :  { %160 = vxpose.xlu0.b32.cont [11/16] (narrow) %v96_v34, 64  ;;  %v133_v34 = vld [vmem:[#allocation2 + $0x178] sm:$0xff] }
  0x86   :  { %192 = vxpose.xlu1.b32.cont [11/16] (narrow) %v112_v36, 64  ;;  %v149_v36 = vld [vmem:[#allocation2 + $0x1f8] sm:$0xff] }
  0x89   :  { %161 = vxpose.xlu0.b32.cont [12/16] (narrow) %v97_v40, 64 }
  0x8a   :  { %193 = vxpose.xlu1.b32.cont [12/16] (narrow) %v113_v41, 64 }
  0x8d   :  { %162 = vxpose.xlu0.b32.cont [13/16] (narrow) %v98_v46, 64 }
  0x8e   :  { %194 = vxpose.xlu1.b32.cont [13/16] (narrow) %v114_v47, 64 }
  0x91   :  { %163 = vxpose.xlu0.b32.cont [14/16] (narrow) %v99_v52, 64 }
  0x92   :  { %195 = vxpose.xlu1.b32.cont [14/16] (narrow) %v115_v53, 64 }
  0x95   :  { %164 = vxpose.xlu0.b32.cont [15/16] (narrow) %v100_v58, 64 }
  0x96   :  { %196 = vxpose.xlu1.b32.cont [15/16] (narrow) %v116_v60, 64 }
  0x99   :  { %165 = vxpose.xlu0.b32.end [16/16] (narrow) %v101_v62, 64 }
  0x9a   :  { %197 = vxpose.xlu1.b32.end [16/16] (narrow) %v117_v63, 64 }
  0x9d   :  { %214 = vxpose.xlu0.b32.start [1/16] (narrow) %v118_v0, 64 }
  0x9e   :  { %246 = vxpose.xlu1.b32.start [1/16] (narrow) %v134_v1, 64 }
  0xa1   :  { %215 = vxpose.xlu0.b32.cont [2/16] (narrow) %v119_v2, 64 }
  0xa2   :  { %247 = vxpose.xlu1.b32.cont [2/16] (narrow) %v135_v3, 64 }
  0xa5   :  { %216 = vxpose.xlu0.b32.cont [3/16] (narrow) %v120_v4, 64 }
  0xa6   :  { %248 = vxpose.xlu1.b32.cont [3/16] (narrow) %v136_v5, 64 }
  0xa9   :  { %217 = vxpose.xlu0.b32.cont [4/16] (narrow) %v121_v6, 64 }
  0xaa   :  { %249 = vxpose.xlu1.b32.cont [4/16] (narrow) %v137_v7, 64 }
  0xad   :  { %218 = vxpose.xlu0.b32.cont [5/16] (narrow) %v122_v8, 64 }
  0xae   :  { %250 = vxpose.xlu1.b32.cont [5/16] (narrow) %v138_v9, 64 }
  0xb1   :  { %219 = vxpose.xlu0.b32.cont [6/16] (narrow) %v123_v10, 64 }
  0xb2   :  { %251 = vxpose.xlu1.b32.cont [6/16] (narrow) %v139_v11, 64 }
  0xb5   :  { %220 = vxpose.xlu0.b32.cont [7/16] (narrow) %v124_v12, 64 }
  0xb6   :  { %252 = vxpose.xlu1.b32.cont [7/16] (narrow) %v140_v13, 64 }
  0xb9   :  { %221 = vxpose.xlu0.b32.cont [8/16] (narrow) %v125_v14, 64 }
  0xba   :  { %253 = vxpose.xlu1.b32.cont [8/16] (narrow) %v141_v15, 64 }
  0xbd   :  { %222 = vxpose.xlu0.b32.cont [9/16] (narrow) %v126_v16, 64 }
  0xbe   :  { %254 = vxpose.xlu1.b32.cont [9/16] (narrow) %v142_v17, 64 }
  0xc1   :  { %223 = vxpose.xlu0.b32.cont [10/16] (narrow) %v127_v18, 64 }
  0xc2   :  { %255 = vxpose.xlu1.b32.cont [10/16] (narrow) %v143_v19, 64 }
  0xc5   :  { %224 = vxpose.xlu0.b32.cont [11/16] (narrow) %v128_v20, 64 }
  0xc6   :  { %256 = vxpose.xlu1.b32.cont [11/16] (narrow) %v144_v21, 64 }
  0xc9   :  { %225 = vxpose.xlu0.b32.cont [12/16] (narrow) %v129_v23, 64 }
  0xca   :  { %257 = vxpose.xlu1.b32.cont [12/16] (narrow) %v145_v24, 64 }
  0xcd   :  { %226 = vxpose.xlu0.b32.cont [13/16] (narrow) %v130_v25, 64 }
  0xce   :  { %258 = vxpose.xlu1.b32.cont [13/16] (narrow) %v146_v27, 64 }
  0xd1   :  { %227 = vxpose.xlu0.b32.cont [14/16] (narrow) %v131_v29, 64 }
  0xd2   :  { %259 = vxpose.xlu1.b32.cont [14/16] (narrow) %v147_v30, 64 }
  0xd5   :  { %228 = vxpose.xlu0.b32.cont [15/16] (narrow) %v132_v31, 64 }
  0xd6   :  { %260 = vxpose.xlu1.b32.cont [15/16] (narrow) %v148_v33, 64 }
  0xd9   :  { %229 = vxpose.xlu0.b32.end [16/16] (narrow) %v133_v34, 64 }
  0xda   :  { %261 = vxpose.xlu1.b32.end [16/16] (narrow) %v149_v36, 64 }
  0xdd   :  { %v166_v37 = vpop.trf.xlu0 }
  0xde   :  { %v198_v39 = vpop.trf.xlu1 }
  0xe1   :  { %v167_v40 = vpop.trf.xlu0 }
  0xe2   :  { %v199_v41 = vpop.trf.xlu1  ;;  %v278_v43 = vpack.c.bf16 %v167_v40, %v166_v37 }
  0xe3   :  { %v282_v45 = vpack.c.bf16 %v199_v41, %v198_v39 }
  0xe4   :  { %v311_v46 = vrot.slane %v278_v43, 7 }
  0xe5   :  { %v3652_v47 = vrot.slane %v282_v45, 7  ;;  %v168_v49 = vpop.trf.xlu0 }
  0xe6   :  { %v200_v51 = vpop.trf.xlu1  ;;  %v3655_v52 = vsel %vm310_vm0, 0, %v311_v46 }
  0xe7   :  { %v3659_v53 = vsel %vm310_vm0, 0, %v3652_v47  ;;  %v374_v55 = vshrl.u32 %v3655_v52, 16  ;;  %v376_v58 = vshll.u32 %v3655_v52, 16  ;;  %v535_v11 = vrot.slane %v3655_v52, 1 }
  0xe8   :  { %v408_v60 = vshrl.u32 %v3659_v53, 16  ;;  %v410_v62 = vshll.u32 %v3659_v53, 16  ;;  %v544_v16 = vrot.slane %v3659_v53, 1  ;;  %v698_v17 = vrot.slane %v3659_v53, 2 }
  0xe9   :  { %v169_v63 = vpop.trf.xlu0  ;;  %v3665_v1 = vrot.slane %v374_v55, 1  ;;  %v3667_v2 = vrot.slane %v376_v58, 2  ;;  %v378_v5 = vrot.slane %v376_v58, 1 }
  0xea   :  { %v201_v0 = vpop.trf.xlu1  ;;  %v279_v3 = vpack.c.bf16 %v169_v63, %v168_v49  ;;  %v609_v9 = vrot.slane %v408_v60, 1  ;;  %v610_v10 = vrot.slane %v410_v62, 2 }
  0xeb   :  { %v283_v4 = vpack.c.bf16 %v201_v0, %v200_v51  ;;  %v590_v6 = vor.u32 %v3667_v2, %v3665_v1  ;;  %v379_v18 = vor.u32 %v378_v5, %v374_v55  ;;  %v689_v55 = vrot.slane %v3655_v52, 2 }
  0xec   :  { %v312_v7 = vrot.slane %v279_v3, 7  ;;  %v611_v23 = vor.u32 %v610_v10, %v609_v9 }
  0xed   :  { %v319_v8 = vrot.slane %v283_v4, 7  ;;  %v170_v12 = vpop.trf.xlu0 }
  0xee   :  { %v202_v13 = vpop.trf.xlu1  ;;  %v3677_v14 = vsel %vm310_vm0, %v311_v46, %v312_v7 }
  0xef   :  { %v3681_v15 = vsel %vm310_vm0, %v3652_v47, %v319_v8  ;;  %v381_v19 = vshll.u32 %v3677_v14, 16  ;;  %v385_v25 = vshrl.u32 %v3677_v14, 16  ;;  %v536_v27 = vrot.slane %v3677_v14, 1 }
  0xf0   :  { %v415_v20 = vshll.u32 %v3681_v15, 16  ;;  %v419_v21 = vshrl.u32 %v3681_v15, 16  ;;  %v545_v24 = vrot.slane %v3681_v15, 1  ;;  %v690_v36 = vrot.slane %v3677_v14, 2 }
  0xf1   :  { %v171_v29 = vpop.trf.xlu0  ;;  %v383_v30 = vrot.slane %v381_v19, 1  ;;  %v591_v41 = vrot.slane %v385_v25, 1  ;;  %v699_v43 = vrot.slane %v3681_v15, 2  ;;  %v592_v51 = vrot.slane %v381_v19, 2 }
  0xf2   :  { %v203_v31 = vpop.trf.xlu1  ;;  %v612_v33 = vrot.slane %v419_v21, 1  ;;  %v613_v34 = vrot.slane %v415_v20, 2  ;;  %v280_v37 = vpack.c.bf16 %v171_v29, %v170_v12  ;;  %v546_v0 = vsel %vm534_vm2, %v544_v16, %v545_v24 }
  0xf3   :  { %v284_v39 = vpack.c.bf16 %v203_v31, %v202_v13  ;;  %v384_v45 = vsel %vm373_vm1, %v379_v18, %v383_v30  ;;  %v3710_v9 = vor.u32 %v592_v51, %v591_v41  ;;  %v3715_v52 = vsel %vm534_vm2, %v535_v11, %v536_v27 }
  0xf4   :  { %v614_v49 = vor.u32 %v613_v34, %v612_v33  ;;  %v314_v58 = vrot.slane %v280_v37, 7  ;;  %1100 = vmatprep.mubr.bf16.mxu0 %v384_v45  ;;  %v3718_v10 = vsel %vm688_vm3, %v689_v55, %v690_v36  ;;  %v387_v11 = vor.u32 %v385_v25, %v383_v30 }
  0xf5   :  { %v321_v63 = vrot.slane %v284_v39, 7  ;;  %2879 = vmatmul.mubr.msk.bf16.vlgmr.msra.gmra.mrb[0].mxu0 %vm3697_vm4, %v311_v46  ;;  %v172_v3 = vpop.trf.xlu0  ;;  %v3730_v46 = vsel %vm688_vm3, %v698_v17, %v699_v43  ;;  %v3743_v17 = vsel %vm587_vm5, %v590_v6, %v3710_v9 }
  0xf6   :  { %v204_v4 = vpop.trf.xlu1  ;;  %v615_v5 = vsel %vm587_vm5, %v611_v23, %v614_v49  ;;  %v3721_v12 = vsel %vm310_vm0, %v312_v7, %v314_v58  ;;  %3026 = vmatpush3.bf16.msra.mxu0 %v3606_v22 }
  0xf7   :  { %v3724_v13 = vsel %vm310_vm0, %v319_v8, %v321_v63  ;;  %1293 = vmatprep.mubr.bf16.mxu1 %v615_v5  ;;  %v389_v16 = vshll.u32 %v3721_v12, 16  ;;  %3027 = vmatprep.subr.bf16.mxu0 %v3608_v26  ;;  %v393_v22 = vshrl.u32 %v3721_v12, 16  ;;  %v538_v19 = vrot.slane %v3721_v12, 1 }
  0xf8   :  { %1294 = vmatmul.mubr.bf16.vlgmr.msra.gmra.mrb[0].mxu1 %v546_v0  ;;  %v423_v18 = vshll.u32 %v3724_v13, 16  ;;  %v427_v7 = vshrl.u32 %v3724_v13, 16  ;;  %v547_v8 = vrot.slane %v3724_v13, 1  ;;  %v692_v31 = vrot.slane %v3721_v12, 2 }
  0xf9   :  { %v173_v23 = vpop.trf.xlu0  ;;  %v391_v25 = vrot.slane %v389_v16, 1  ;;  %v595_v1 = vrot.slane %v393_v22, 1  ;;  %v596_v37 = vrot.slane %v389_v16, 2 }
  0xfa   :  { %v205_v29 = vpop.trf.xlu1  ;;  %v616_v30 = vrot.slane %v427_v7, 1  ;;  %v617_v26 = vrot.slane %v423_v18, 2  ;;  %v281_v33 = vpack.c.bf16 %v173_v23, %v172_v3  ;;  %3028 = vmatpush3.bf16.msra.mxu0 %v3612_v28  ;;  %v548_v45 = vsel %vm534_vm2, %v545_v24, %v547_v8 }
  0xfb   :  { %v285_v34 = vpack.c.bf16 %v205_v29, %v204_v4  ;;  %v392_v2 = vsel %vm373_vm1, %v387_v11, %v391_v25  ;;  %3029 = vmatprep.subr.bf16.mxu0 %v3615_v32  ;;  %v3759_v55 = vor.u32 %v596_v37, %v595_v1  ;;  %v3766_v28 = vsel %vm534_vm2, %v536_v27, %v538_v19 }
  0xfc   :  { %v618_v6 = vor.u32 %v617_v26, %v616_v30  ;;  %v316_v39 = vrot.slane %v281_v33, 7  ;;  %1108 = vmatprep.mubr.bf16.mxu0 %v392_v2  ;;  %v3771_v32 = vsel %vm688_vm3, %v690_v36, %v692_v31  ;;  %v395_v4 = vor.u32 %v393_v22, %v391_v25 }
  0xfd   :  { %v323_v41 = vrot.slane %v285_v34, 7  ;;  %1109 = vmatmul.mubr.bf16.gmra.mrb[4].mxu0 %v3677_v14 }
  0xfe   :  { %v619_v51 = vsel %vm587_vm5, %v614_v49, %v618_v6  ;;  %v3774_v24 = vsel %vm310_vm0, %v314_v58, %v316_v39  ;;  %v366_v0 = vsel %vm310_vm0, %v316_v39, 0  ;;  %3030 = vmatpush3.bf16.msra.mxu0 %v3618_v35  ;;  %v412_v58 = vrot.slane %v410_v62, 1 }
  0xff   :  { %v3778_v49 = vsel %vm310_vm0, %v321_v63, %v323_v41  ;;  %v3781_v3 = vsel %vm310_vm0, %v323_v41, 0  ;;  %1301 = vmatprep.mubr.bf16.mxu1 %v619_v51  ;;  %v404_v14 = vshll.u32 %v366_v0, 16  ;;  %3031 = vmatprep.subr.bf16.mxu0 %v3621_v38  ;;  %v397_v63 = vshll.u32 %v3774_v24, 16 }
 0x100   :  { %v438_v27 = vshll.u32 %v3781_v3, 16  ;;  %v624_v36 = vshrl.u32 %v3781_v3, 16  ;;  %1302 = vmatmul.mubr.bf16.gmra.mrb[4].mxu1 %v548_v45  ;;  %v431_v5 = vshll.u32 %v3778_v49, 16  ;;  %v435_v11 = vshrl.u32 %v3778_v49, 16 }
 0x101   :  { %v603_v16 = vshrl.u32 %v366_v0, 16  ;;  %v401_v35 = vshrl.u32 %v3774_v24, 16  ;;  %v549_v23 = vrot.slane %v3778_v49, 1  ;;  %v399_v30 = vrot.slane %v397_v63, 1 }
 0x102   :  { %v626_v29 = vrot.slane %v624_v36, 1  ;;  %v620_v26 = vrot.slane %v435_v11, 1  ;;  %v621_v38 = vrot.slane %v431_v5, 2  ;;  %v627_v62 = vrot.slane %v438_v27, 2  ;;  %3032 = vmatpush3.bf16.msra.mxu0 %v3624_v42 }
 0x103   :  { %v406_v22 = vrot.slane %v404_v14, 1  ;;  %3033 = vmatprep.subr.bf16.mxu0 %v3626_v44  ;;  %v400_v25 = vsel %vm373_vm1, %v395_v4, %v399_v30  ;;  %v403_v33 = vor.u32 %v401_v35, %v399_v30  ;;  %v605_v2 = vrot.slane %v603_v16, 1 }
 0x104   :  { %v622_v34 = vor.u32 %v621_v38, %v620_v26  ;;  %v628_v1 = vor.u32 %v627_v62, %v626_v29  ;;  %1116 = vmatprep.mubr.bf16.mxu0 %v400_v25  ;;  %v550_v37 = vsel %vm534_vm2, %v547_v8, %v549_v23  ;;  %v413_v39 = vor.u32 %v412_v58, %v408_v60 }
 0x105   :  { %v3809_v41 = vsel %vm587_vm5, %v3710_v9, %v3759_v55  ;;  %1117 = vmatmul.mubr.bf16.gmra.mrb[8].mxu0 %v3721_v12  ;;  %v407_v42 = vsel %vm373_vm1, %v403_v33, %v406_v22  ;;  %v599_v51 = vrot.slane %v401_v35, 1  ;;  %v551_v8 = vrot.slane %v3781_v3, 1 }
 0x106   :  { %v623_v44 = vsel %vm587_vm5, %v618_v6, %v622_v34  ;;  %v629_v45 = vsel %vm587_vm5, %v622_v34, %v628_v1  ;;  %1124 = vmatprep.mubr.bf16.mxu0 %v407_v42  ;;  %v600_v53 = vrot.slane %v397_v63, 2  ;;  %v540_v60 = vrot.slane %v3774_v24, 1  ;;  %3034 = vmatpush3.bf16.msra.mxu0 %v3630_v48 }
 0x107   :  { %1309 = vmatprep.mubr.bf16.mxu1 %v623_v44  ;;  %v606_v36 = vrot.slane %v404_v14, 2  ;;  %v542_v9 = vrot.slane %v366_v0, 1  ;;  %v694_v58 = vrot.slane %v3774_v24, 2  ;;  %v696_v4 = vrot.slane %v366_v0, 2  ;;  %3035 = vmatprep.subr.bf16.mxu0 %v3632_v50 }
 0x108   :  { %1310 = vmatmul.mubr.bf16.gmra.mrb[8].mxu1 %v550_v37  ;;  %v701_v6 = vrot.slane %v3724_v13, 2  ;;  %v601_v16 = vor.u32 %v600_v53, %v599_v51  ;;  %v3824_v63 = vsel %vm534_vm2, %v538_v19, %v540_v60  ;;  %v703_v14 = vrot.slane %v3778_v49, 2 }
 0x109   :  { %1317 = vmatprep.mubr.bf16.mxu1 %v629_v45  ;;  %v607_v35 = vor.u32 %v606_v36, %v605_v2  ;;  %v3828_v48 = vsel %vm534_vm2, %v540_v60, %v542_v9  ;;  %v3833_v0 = vsel %vm688_vm3, %v692_v31, %v694_v58  ;;  %v3836_v29 = vsel %vm688_vm3, %v694_v58, %v696_v4 }
 0x10a   :  { %v3841_v50 = vsel %vm688_vm3, %v699_v43, %v701_v6  ;;  %v3845_v19 = vsel %vm587_vm5, %v3759_v55, %v601_v16  ;;  %v3851_v12 = vsel %vm688_vm3, %v701_v6, %v703_v14  ;;  %v705_v31 = vrot.slane %v3781_v3, 2  ;;  %3036 = vmatpush3.bf16.msra.mxu0 %v3636_v54 }
 0x10b   :  { %v3848_v30 = vsel %vm587_vm5, %v601_v16, %v607_v35  ;;  %v417_v26 = vrot.slane %v415_v20, 1  ;;  %v552_v43 = vsel %vm534_vm2, %v549_v23, %v551_v8  ;;  %3037 = vmatprep.subr.bf16.mxu0 %v3638_v56  ;;  %v3866_v20 = vld [vmem:[#allocation5 + $0x100] sm:$0xff]   ;;  %v425_v56 = vrot.slane %v423_v18, 1 }
 0x10c   :  { %v3860_v55 = vsel %vm688_vm3, %v703_v14, %v705_v31  ;;  %v440_v25 = vrot.slane %v438_v27, 1 }
 0x10d   :  { %1125 = vmatmul.mubr.bf16.gmra.mrb[12].mxu0 %v3774_v24  ;;  %v418_v38 = vsel %vm373_vm1, %v413_v39, %v417_v26  ;;  %v421_v54 = vor.u32 %v419_v21, %v417_v26  ;;  %v433_v21 = vrot.slane %v431_v5, 1 }
 0x10e   :  { %1132 = vmatprep.mubr.bf16.mxu0 %v418_v38  ;;  %3038 = vmatpush3.bf16.msra.mxu0 %v3642_v57 }
 0x10f   :  { %3039 = vmatprep.subr.bf16.mxu0 %v3645_v59  ;;  %v426_v57 = vsel %vm373_vm1, %v421_v54, %v425_v56  ;;  %v429_v59 = vor.u32 %v427_v7, %v425_v56 }
 0x110   :  { %1318 = vmatmul.mubr.bf16.gmra.mrb[12].mxu1 %v552_v43 }
 0x112   :  { %3040 = vmatpush3.bf16.msra.mxu0 %v3647_v61  ;;  %v434_v61 = vsel %vm373_vm1, %v429_v59, %v433_v21 }
 0x113   :  { %3161 = vmatprep.subr.bf16.mxu0 %v3866_v20 }
 0x115   :  { %2881 = vmatmul.mubr.msk.bf16.gmra.mrb[16].mxu0 %vm3697_vm4, %v3652_v47  ;;  %v437_v47 = vor.u32 %v435_v11, %v433_v21 }
 0x116   :  { %1140 = vmatprep.mubr.bf16.mxu0 %v426_v57 }
 0x11d   :  { %v230_v24 = vpop.trf.xlu0  ;;  %1141 = vmatmul.mubr.bf16.gmra.mrb[20].mxu0 %v3681_v15  ;;  %v441_v15 = vsel %vm373_vm1, %v437_v47, %v440_v25 }
 0x11e   :  { %v262_v23 = vpop.trf.xlu1  ;;  %1148 = vmatprep.mubr.bf16.mxu0 %v434_v61 }
 0x121   :  { %v231_v18 = vpop.trf.xlu0 }
 0x122   :  { %v263_v62 = vpop.trf.xlu1  ;;  %v286_v22 = vpack.c.bf16 %v231_v18, %v230_v24 }
 0x123   :  { %v290_v2 = vpack.c.bf16 %v263_v62, %v262_v23 }
 0x124   :  { %v325_v7 = vrot.slane %v286_v22, 7 }
 0x125   :  { %v232_v33 = vpop.trf.xlu0  ;;  %1149 = vmatmul.mubr.bf16.gmra.mrb[24].mxu0 %v3724_v13  ;;  %v3891_v3 = vrot.slane %v290_v2, 7 }
 0x126   :  { %v264_v34 = vpop.trf.xlu1  ;;  %v360_v5 = vsel %vm310_vm0, 0, %v325_v7  ;;  %1156 = vmatprep.mubr.bf16.mxu0 %v441_v15 }
 0x127   :  { %v444_v1 = vshll.u32 %v360_v5, 16  ;;  %v442_v11 = vshrl.u32 %v360_v5, 16  ;;  %v3901_v4 = vsel %vm310_vm0, 0, %v3891_v3  ;;  %v707_v23 = vrot.slane %v360_v5, 2 }
 0x128   :  { %v716_v56 = vrot.slane %v3901_v4, 2  ;;  %v553_v18 = vrot.slane %v360_v5, 1 }
 0x129   :  { %v233_v37 = vpop.trf.xlu0  ;;  %v446_v27 = vrot.slane %v444_v1, 1  ;;  %v630_v9 = vrot.slane %v442_v11, 1  ;;  %v631_v58 = vrot.slane %v444_v1, 2 }
 0x12a   :  { %v265_v39 = vpop.trf.xlu1  ;;  %v287_v42 = vpack.c.bf16 %v233_v37, %v232_v33 }
 0x12b   :  { %v291_v44 = vpack.c.bf16 %v265_v39, %v264_v34  ;;  %v447_v6 = vor.u32 %v446_v27, %v442_v11  ;;  %v632_v21 = vor.u32 %v631_v58, %v630_v9 }
 0x12c   :  { %v326_v45 = vrot.slane %v287_v42, 7 }
 0x12d   :  { %v3893_v51 = vrot.slane %v291_v44, 7  ;;  %v234_v8 = vpop.trf.xlu0  ;;  %1157 = vmatmul.mubr.bf16.gmra.mrb[28].mxu0 %v3778_v49 }
 0x12e   :  { %v3895_v53 = vpop.trf.xlu1  ;;  %v327_v13 = vsel %vm310_vm0, %v325_v7, %v326_v45 }
 0x12f   :  { %v449_v60 = vshll.u32 %v327_v13, 16  ;;  %v453_v36 = vshrl.u32 %v327_v13, 16  ;;  %v3906_v16 = vsel %vm310_vm0, %v3891_v3, %v3893_v51  ;;  %v708_v49 = vrot.slane %v327_v13, 2 }
 0x130   :  { %v554_v54 = vrot.slane %v327_v13, 1  ;;  %v717_v57 = vrot.slane %v3906_v16, 2 }
 0x131   :  { %v235_v35 = vpop.trf.xlu0  ;;  %v451_v14 = vrot.slane %v449_v60, 1  ;;  %v633_v31 = vrot.slane %v453_v36, 1  ;;  %v634_v26 = vrot.slane %v449_v60, 2  ;;  %v3913_v25 = vsel %vm688_vm3, %v707_v23, %v708_v49 }
 0x132   :  { %v267_v43 = vpop.trf.xlu1  ;;  %v288_v38 = vpack.c.bf16 %v235_v35, %v234_v8  ;;  %v555_v34 = vsel %vm534_vm2, %v553_v18, %v554_v54  ;;  %v3924_v5 = vsel %vm688_vm3, %v716_v56, %v717_v57 }
 0x133   :  { %v452_v59 = vsel %vm373_vm1, %v447_v6, %v451_v14  ;;  %v635_v24 = vor.u32 %v634_v26, %v633_v31  ;;  %v455_v2 = vor.u32 %v453_v36, %v451_v14  ;;  %v292_v58 = vpack.c.bf16 %v267_v43, %v3895_v53 }
 0x134   :  { %v328_v61 = vrot.slane %v288_v38, 7  ;;  %1164 = vmatprep.mubr.bf16.mxu0 %v452_v59  ;;  %v476_v59 = vshrl.u32 %v3901_v4, 16 }
 0x135   :  { %v236_v62 = vpop.trf.xlu0  ;;  %v636_v22 = vsel %vm587_vm5, %v632_v21, %v635_v24  ;;  %2883 = vmatmul.mubr.msk.bf16.gmra.mrb[32].mxu0 %vm3697_vm4, %v325_v7  ;;  %v487_v21 = vshrl.u32 %v3906_v16, 16 }
 0x136   :  { %v268_v47 = vpop.trf.xlu1  ;;  %v3916_v33 = vsel %vm310_vm0, %v326_v45, %v328_v61  ;;  %1325 = vmatprep.mubr.bf16.mxu1 %v636_v22 }
 0x137   :  { %1326 = vmatmul.mubr.bf16.gmra.mrb[16].mxu1 %v555_v34  ;;  %v457_v15 = vshll.u32 %v3916_v33, 16  ;;  %v461_v1 = vshrl.u32 %v3916_v33, 16  ;;  %v710_v7 = vrot.slane %v3916_v33, 2  ;;  %v556_v45 = vrot.slane %v3916_v33, 1 }
 0x139   :  { %v237_v37 = vpop.trf.xlu0  ;;  %v459_v39 = vrot.slane %v457_v15, 1  ;;  %v637_v42 = vrot.slane %v461_v1, 1  ;;  %v638_v44 = vrot.slane %v457_v15, 2  ;;  %v3936_v36 = vsel %vm688_vm3, %v708_v49, %v710_v7 }
 0x13a   :  { %v289_v11 = vpack.c.bf16 %v237_v37, %v236_v62  ;;  %v269_v60 = vpop.trf.xlu1  ;;  %v557_v31 = vsel %vm534_vm2, %v554_v54, %v556_v45  ;;  %v478_v49 = vshll.u32 %v3901_v4, 16 }
 0x13b   :  { %v460_v27 = vsel %vm373_vm1, %v455_v2, %v459_v39  ;;  %v639_v8 = vor.u32 %v638_v44, %v637_v42  ;;  %v293_v26 = vpack.c.bf16 %v269_v60, %v268_v47 }
 0x13c   :  { %v330_v9 = vrot.slane %v289_v11, 7  ;;  %1172 = vmatprep.mubr.bf16.mxu0 %v460_v27  ;;  %v480_v11 = vrot.slane %v478_v49, 1  ;;  %v651_v27 = vrot.slane %v476_v59, 1 }
 0x13d   :  { %v640_v6 = vsel %vm587_vm5, %v635_v24, %v639_v8  ;;  %1173 = vmatmul.mubr.bf16.gmra.mrb[36].mxu0 %v327_v13  ;;  %v463_v24 = vor.u32 %v461_v1, %v459_v39  ;;  %v337_v18 = vrot.slane %v293_v26, 7  ;;  %v652_v1 = vrot.slane %v478_v49, 2 }
 0x13e   :  { %v3939_v35 = vsel %vm310_vm0, %v328_v61, %v330_v9  ;;  %v3942_v14 = vsel %vm310_vm0, %v330_v9, 0  ;;  %1333 = vmatprep.mubr.bf16.mxu1 %v640_v6  ;;  %v335_v61 = vrot.slane %v292_v58, 7  ;;  %v483_v58 = vshll.u32 %v3906_v16, 16 }
 0x13f   :  { %v472_v53 = vshll.u32 %v3942_v14, 16  ;;  %v645_v43 = vshrl.u32 %v3942_v14, 16  ;;  %1334 = vmatmul.mubr.bf16.gmra.mrb[20].mxu1 %v557_v31  ;;  %v465_v38 = vshll.u32 %v3939_v35, 16  ;;  %v469_v56 = vshrl.u32 %v3939_v35, 16 }
 0x140   :  { %v558_v2 = vrot.slane %v3939_v35, 1  ;;  %v3957_v39 = vsel %vm310_vm0, %v3893_v51, %v335_v61  ;;  %v3960_v60 = vsel %vm310_vm0, %v335_v61, %v337_v18  ;;  %v3966_v6 = vsel %vm310_vm0, %v337_v18, 0 }
 0x141   :  { %v647_v13 = vrot.slane %v645_v43, 1  ;;  %v467_v23 = vrot.slane %v465_v38, 1  ;;  %v642_v54 = vrot.slane %v465_v38, 2  ;;  %v641_v62 = vrot.slane %v469_v56, 1 }
 0x142   :  { %v648_v22 = vrot.slane %v472_v53, 2  ;;  %v474_v15 = vrot.slane %v472_v53, 1  ;;  %v559_v31 = vsel %vm534_vm2, %v556_v45, %v558_v2  ;;  %v654_v26 = vrot.slane %v487_v21, 1 }
 0x143   :  { %v468_v47 = vsel %vm373_vm1, %v463_v24, %v467_v23  ;;  %v471_v34 = vor.u32 %v469_v56, %v467_v23  ;;  %v643_v37 = vor.u32 %v642_v54, %v641_v62  ;;  %v655_v53 = vrot.slane %v483_v58, 2 }
 0x144   :  { %1180 = vmatprep.mubr.bf16.mxu0 %v468_v47  ;;  %v649_v42 = vor.u32 %v648_v22, %v647_v13  ;;  %v712_v43 = vrot.slane %v3939_v35, 2  ;;  %v714_v38 = vrot.slane %v3942_v14, 2  ;;  %v719_v49 = vrot.slane %v3957_v39, 2 }
 0x145   :  { %v475_v44 = vsel %vm373_vm1, %v471_v34, %v474_v15  ;;  %1181 = vmatmul.mubr.bf16.gmra.mrb[40].mxu0 %v3916_v33  ;;  %v644_v9 = vsel %vm587_vm5, %v639_v8, %v643_v37  ;;  %v481_v8 = vor.u32 %v480_v11, %v476_v59  ;;  %v721_v56 = vrot.slane %v3960_v60, 2 }
 0x146   :  { %1188 = vmatprep.mubr.bf16.mxu0 %v475_v44  ;;  %1341 = vmatprep.mubr.bf16.mxu1 %v644_v9  ;;  %v650_v51 = vsel %vm587_vm5, %v643_v37, %v649_v42  ;;  %v653_v13 = vor.u32 %v652_v1, %v651_v27  ;;  %v3977_v45 = vsel %vm688_vm3, %v710_v7, %v712_v43  ;;  %v723_v23 = vrot.slane %v3966_v6, 2 }
 0x147   :  { %1342 = vmatmul.mubr.bf16.gmra.mrb[24].mxu1 %v559_v31  ;;  %v3980_v24 = vsel %vm688_vm3, %v712_v43, %v714_v38  ;;  %v485_v54 = vrot.slane %v483_v58, 1  ;;  %v560_v61 = vrot.slane %v3942_v14, 1  ;;  %v3987_v59 = vsel %vm688_vm3, %v717_v57, %v719_v49 }
 0x148   :  { %1349 = vmatprep.mubr.bf16.mxu1 %v650_v51  ;;  %v3990_v18 = vsel %vm688_vm3, %v719_v49, %v721_v56  ;;  %v656_v33 = vor.u32 %v655_v53, %v654_v26  ;;  %v491_v7 = vshll.u32 %v3957_v39, 16  ;;  %v495_v62 = vshrl.u32 %v3957_v39, 16 }
 0x149   :  { %v3995_v22 = vsel %vm688_vm3, %v721_v56, %v723_v23  ;;  %v486_v14 = vsel %vm373_vm1, %v481_v8, %v485_v54  ;;  %v561_v47 = vsel %vm534_vm2, %v558_v2, %v560_v61  ;;  %v489_v37 = vor.u32 %v487_v21, %v485_v54 }
 0x14a   :  { %v657_v57 = vsel %vm587_vm5, %v653_v13, %v656_v33  ;;  %v658_v34 = vrot.slane %v495_v62, 1  ;;  %v659_v15 = vrot.slane %v491_v7, 2  ;;  %v493_v42 = vrot.slane %v491_v7, 1 }
 0x14b   :  { %v562_v44 = vrot.slane %v3901_v4, 1  ;;  %v563_v11 = vrot.slane %v3906_v16, 1  ;;  %v503_v1 = vshrl.u32 %v3960_v60, 16  ;;  %v565_v51 = vrot.slane %v3957_v39, 1 }
 0x14c   :  { %v660_v27 = vor.u32 %v659_v15, %v658_v34  ;;  %v494_v2 = vsel %vm373_vm1, %v489_v37, %v493_v42  ;;  %v497_v31 = vor.u32 %v495_v62, %v493_v42  ;;  %v506_v53 = vshll.u32 %v3966_v6, 16 }
 0x14d   :  { %1189 = vmatmul.mubr.bf16.gmra.mrb[44].mxu0 %v3939_v35  ;;  %v499_v35 = vshll.u32 %v3960_v60, 16  ;;  %v564_v9 = vsel %vm534_vm2, %v562_v44, %v563_v11  ;;  %v662_v4 = vrot.slane %v503_v1, 1  ;;  %v666_v40 = vshrl.u32 %v3966_v6, 16 }
 0x14e   :  { %1196 = vmatprep.mubr.bf16.mxu0 %v486_v14  ;;  %v661_v21 = vsel %vm587_vm5, %v656_v33, %v660_v27  ;;  %v566_v38 = vsel %vm534_vm2, %v563_v11, %v565_v51  ;;  %v669_v56 = vrot.slane %v506_v53, 2  ;;  %v508_v23 = vrot.slane %v506_v53, 1 }
 0x14f   :  { %1350 = vmatmul.mubr.bf16.gmra.mrb[28].mxu1 %v561_v47  ;;  %v663_v58 = vrot.slane %v499_v35, 2  ;;  %v501_v26 = vrot.slane %v499_v35, 1  ;;  %v668_v8 = vrot.slane %v666_v40, 1  ;;  %v567_v54 = vrot.slane %v3960_v60, 1  ;;  %v3272_v47 = vld [vmem:[#allocation5 + $0x108] sm:$0xff]  }
 0x150   :  { %1357 = vmatprep.mubr.bf16.mxu1 %v657_v57  ;;  %v569_v62 = vrot.slane %v3966_v6, 1  ;;  %v3274_v57 = vld [vmem:[#allocation5 + $0x118] sm:$0xff]  }
 0x151   :  { %v502_v43 = vsel %vm373_vm1, %v497_v31, %v501_v26  ;;  %v505_v13 = vor.u32 %v503_v1, %v501_v26  ;;  %v670_v61 = vor.u32 %v669_v56, %v668_v8  ;;  %v568_v33 = vsel %vm534_vm2, %v565_v51, %v567_v54 }
 0x152   :  { %v570_v14 = vsel %vm534_vm2, %v567_v54, %v569_v62 }
 0x155   :  { %2885 = vmatmul.mubr.msk.bf16.gmra.mrb[48].mxu0 %vm3697_vm4, %v3891_v3  ;;  %v664_v3 = vor.u32 %v663_v58, %v662_v4 }
 0x156   :  { %1204 = vmatprep.mubr.bf16.mxu0 %v494_v2 }
 0x157   :  { %1358 = vmatmul.mubr.bf16.gmra.mrb[32].mxu1 %v564_v9  ;;  %v665_v49 = vsel %vm587_vm5, %v660_v27, %v664_v3  ;;  %v671_v7 = vsel %vm587_vm5, %v664_v3, %v670_v61 }
 0x158   :  { %1365 = vmatprep.mubr.bf16.mxu1 %v661_v21 }
 0x15d   :  { %1205 = vmatmul.mubr.bf16.gmra.mrb[52].mxu0 %v3906_v16  ;;  %v509_v16 = vsel %vm373_vm1, %v505_v13, %v508_v23 }
 0x15e   :  { %1212 = vmatprep.mubr.bf16.mxu0 %v502_v43 }
 0x15f   :  { %1366 = vmatmul.mubr.bf16.gmra.mrb[36].mxu1 %v566_v38 }
 0x160   :  { %1373 = vmatprep.mubr.bf16.mxu1 %v665_v49 }
 0x165   :  { %1213 = vmatmul.mubr.bf16.gmra.mrb[56].mxu0 %v3957_v39  ;;  %v3273_v39 = vld [vmem:[#allocation5 + $0x110] sm:$0xff]  }
 0x166   :  { %1220 = vmatprep.mubr.bf16.mxu0 %v509_v16  ;;  %v4067_v16 = vld [vmem:[#allocation7] ss:$0 sm:$0xff] }
 0x167   :  { %1374 = vmatmul.mubr.bf16.gmra.mrb[40].mxu1 %v568_v33 }
 0x168   :  { %1381 = vmatprep.mubr.bf16.mxu1 %v671_v7 }
 0x16d   :  { %1221 = vmatmul.mubr.bf16.gmra.mrb[60].mxu0 %v3960_v60  ;;  %v3276_v60 = vld [vmem:[#allocation5 + $0x128] sm:$0xff]  }
 0x16e   :  { %1261 = vmatprep.mubr.bf16.mxu0 %v3743_v17  ;;  %v3275_v17 = vld [vmem:[#allocation5 + $0x120] sm:$0xff]  }
 0x16f   :  { %1382 = vmatmul.mubr.bf16.gmra.mrb[44].mxu1 %v570_v14 }
 0x175   :  { %1262 = vmatmul.mubr.bf16.vlgmr.msra.gmra.mrb[64].mxu0 %v3715_v52  ;;  %v3277_v52 = vld [vmem:[#allocation5 + $0x130] sm:$0xff]  }
 0x176   :  { %3162 = vmatpush3.bf16.msra.mxu0 %v3866_v20  ;;  %1269 = vmatprep.mubr.bf16.mxu0 %v3809_v41  ;;  %v3278_v41 = vld [vmem:[#allocation5 + $0x138] sm:$0xff]  }
 0x177   :  { %3163 = vmatprep.subr.bf16.mxu0 %v3272_v47 }
 0x17a   :  { %3164 = vmatpush3.bf16.msra.mxu0 %v3272_v47 }
 0x17b   :  { %3165 = vmatprep.subr.bf16.mxu0 %v3273_v39 }
 0x17d   :  { %1270 = vmatmul.mubr.bf16.gmra.mrb[68].mxu0 %v3766_v28 }
 0x17e   :  { %3166 = vmatpush3.bf16.msra.mxu0 %v3273_v39  ;;  %1277 = vmatprep.mubr.bf16.mxu0 %v3845_v19 }
 0x17f   :  { %3167 = vmatprep.subr.bf16.mxu0 %v3274_v57 }
 0x182   :  { %3168 = vmatpush3.bf16.msra.mxu0 %v3274_v57 }
 0x183   :  { %3169 = vmatprep.subr.bf16.mxu0 %v3275_v17 }
 0x185   :  { %1278 = vmatmul.mubr.bf16.gmra.mrb[72].mxu0 %v3824_v63 }
 0x186   :  { %3170 = vmatpush3.bf16.msra.mxu0 %v3275_v17  ;;  %1285 = vmatprep.mubr.bf16.mxu0 %v3848_v30 }
 0x187   :  { %3171 = vmatprep.subr.bf16.mxu0 %v3276_v60 }
 0x18a   :  { %3172 = vmatpush3.bf16.msra.mxu0 %v3276_v60 }
 0x18b   :  { %3173 = vmatprep.subr.bf16.mxu0 %v3277_v52 }
 0x18d   :  { %1286 = vmatmul.mubr.bf16.gmra.mrb[76].mxu0 %v3828_v48 }
 0x18e   :  { %3174 = vmatpush3.bf16.msra.mxu0 %v3277_v52  ;;  %3177 = vmatprep.mubr.bf16.mxu0 %v3718_v10 }
 0x18f   :  { %3175 = vmatprep.subr.bf16.mxu0 %v3278_v41 }
 0x192   :  { %3176 = vmatpush3.bf16.msra.mxu0 %v3278_v41 }
 0x195   :  { %3178 = vmatmul.mubr.bf16.vlgmr.msra.gmra.mrb[80].mxu0 %v3771_v32 }
 0x196   :  { %3181 = vmatprep.mubr.bf16.mxu0 %v3833_v0 }
 0x19d   :  { %3182 = vmatmul.mubr.bf16.gmra.mrb[84].mxu0 %v3836_v29 }
 0x19e   :  { %3185 = vmatprep.mubr.bf16.mxu0 %v3730_v46 }
 0x1a5   :  { %3186 = vmatmul.mubr.bf16.gmra.mrb[88].mxu0 %v3841_v50 }
 0x1a6   :  { %3189 = vmatprep.mubr.bf16.mxu0 %v3851_v12 }
 0x1ad   :  { %3190 = vmatmul.mubr.bf16.gmra.mrb[92].mxu0 %v3860_v55 }
 0x1ae   :  { %3193 = vmatprep.mubr.bf16.mxu0 %v3913_v25 }
 0x1b5   :  { %3194 = vmatmul.mubr.bf16.gmra.mrb[96].mxu0 %v3936_v36 }
 0x1b6   :  { %3197 = vmatprep.mubr.bf16.mxu0 %v3977_v45 }
 0x1bd   :  { %3198 = vmatmul.mubr.bf16.gmra.mrb[100].mxu0 %v3980_v24 }
 0x1be   :  { %3201 = vmatprep.mubr.bf16.mxu0 %v3924_v5 }
 0x1c5   :  { %3202 = vmatmul.mubr.bf16.gmra.mrb[104].mxu0 %v3987_v59 }
 0x1c6   :  { %3205 = vmatprep.mubr.bf16.mxu0 %v3990_v18 }
 0x1c8   :  { %v2929_v10 = vpop.f32.mrb[0].mxu0 }
 0x1c9   :  { %v2930_v46 = vpop.f32.mrb[1].mxu0 }
 0x1ca   :  { %v4050_v28 = vadd.f32 %v2930_v46, %v2929_v10  ;;  %v2932_v32 = vpop.f32.mrb[2].mxu0 }
 0x1cb   :  { %v3065_v63 = vpop.f32.mrb[0].mxu1  ;;  %v2933_v48 = vpop.f32.mrb[3].mxu0 }
 0x1cc   :  { %v3066_v0 = vpop.f32.mrb[1].mxu1  ;;  %v4052_v29 = vadd.f32 %v2933_v48, %v2932_v32 }
 0x1cd   :  { %v3067_v50 = vadd.f32 %v3066_v0, %v3065_v63  ;;  %v3068_v19 = vpop.f32.mrb[2].mxu1  ;;  %3206 = vmatmul.mubr.bf16.gmra.mrb[108].mxu0 %v3995_v22 }
 0x1ce   :  { %v3069_v30 = vpop.f32.mrb[3].mxu1 }
 0x1cf   :  { %v3070_v12 = vadd.f32 %v3069_v30, %v3068_v19 }
 0x1d0   :  { %v2935_v55 = vpop.f32.mrb[4].mxu0 }
 0x1d1   :  { %v2936_v20 = vpop.f32.mrb[5].mxu0 }
 0x1d2   :  { %v4055_v25 = vadd.f32 %v2936_v20, %v2935_v55  ;;  %v2938_v5 = vpop.f32.mrb[6].mxu0 }
 0x1d3   :  { %v3071_v36 = vpop.f32.mrb[4].mxu1  ;;  %v2939_v6 = vpop.f32.mrb[7].mxu0 }
 0x1d4   :  { %v3072_v45 = vpop.f32.mrb[5].mxu1  ;;  %v4057_v24 = vadd.f32 %v2939_v6, %v2938_v5 }
 0x1d5   :  { %v3073_v59 = vadd.f32 %v3072_v45, %v3071_v36  ;;  %v3074_v18 = vpop.f32.mrb[6].mxu1 }
 0x1d6   :  { %v3075_v34 = vpop.f32.mrb[7].mxu1 }
 0x1d7   :  { %v3076_v15 = vadd.f32 %v3075_v34, %v3074_v18 }
 0x1d8   :  { %v2941_v37 = vpop.f32.mrb[8].mxu0 }
 0x1d9   :  { %v2942_v42 = vpop.f32.mrb[9].mxu0 }
 0x1da   :  { %v4059_v44 = vadd.f32 %v2942_v42, %v2941_v37  ;;  %v2944_v22 = vpop.f32.mrb[10].mxu0 }
 0x1db   :  { %v3077_v11 = vpop.f32.mrb[8].mxu1  ;;  %v2945_v27 = vpop.f32.mrb[11].mxu0 }
 0x1dc   :  { %v3078_v35 = vpop.f32.mrb[9].mxu1  ;;  %v4061_v1 = vadd.f32 %v2945_v27, %v2944_v22 }
 0x1dd   :  { %v3079_v2 = vadd.f32 %v3078_v35, %v3077_v11  ;;  %v3080_v9 = vpop.f32.mrb[10].mxu1 }
 0x1de   :  { %v3081_v21 = vpop.f32.mrb[11].mxu1 }
 0x1df   :  { %v3082_v4 = vadd.f32 %v3081_v21, %v3080_v9 }
 0x1e0   :  { %v2947_v58 = vpop.f32.mrb[12].mxu0 }
 0x1e1   :  { %v2948_v31 = vpop.f32.mrb[13].mxu0 }
 0x1e2   :  { %v4063_v26 = vadd.f32 %v2948_v31, %v2947_v58  ;;  %v2950_v51 = vpop.f32.mrb[14].mxu0 }
 0x1e3   :  { %v3083_v53 = vpop.f32.mrb[12].mxu1  ;;  %v2951_v40 = vpop.f32.mrb[15].mxu0 }
 0x1e4   :  { %v3084_v3 = vpop.f32.mrb[13].mxu1  ;;  %v4065_v43 = vadd.f32 %v2951_v40, %v2950_v51 }
 0x1e5   :  { %v3085_v38 = vadd.f32 %v3084_v3, %v3083_v53  ;;  %v3086_v8 = vpop.f32.mrb[14].mxu1 }
 0x1e6   :  { %v3087_v49 = vpop.f32.mrb[15].mxu1 }
 0x1e7   :  { %v3088_v56 = vadd.f32 %v3087_v49, %v3086_v8 }
 0x1e8   :  { %v2953_v13 = vpop.f32.mrb[16].mxu0 }
 0x1e9   :  { %v2954_v23 = vpop.f32.mrb[17].mxu0 }
 0x1ea   :  { %v2955_v54 = vadd.f32 %v2954_v23, %v2953_v13  ;;  %v2956_v61 = vpop.f32.mrb[18].mxu0 }
 0x1eb   :  { %v2957_v33 = vpop.f32.mrb[19].mxu0 }
 0x1ec   :  { %v1135_v7 = vadd.f32 %v2955_v54, %v4067_v16  ;;  %v2958_v62 = vadd.f32 %v2957_v33, %v2956_v61 }
 0x1ee   :  { %v1138_v14 = vadd.f32 %v2958_v62, %v4067_v16  ;;  %v4071_v47 = vadd.f32 %v3067_v50, %v1135_v7 }
 0x1f0   :  { %v2959_v39 = vpop.f32.mrb[20].mxu0  ;;  %v4073_v57 = vadd.f32 %v3070_v12, %v1138_v14 }
 0x1f1   :  { %v2960_v17 = vpop.f32.mrb[21].mxu0 }
 0x1f2   :  { %v2961_v60 = vadd.f32 %v2960_v17, %v2959_v39  ;;  %v2962_v52 = vpop.f32.mrb[22].mxu0 }
 0x1f3   :  { %v2963_v41 = vpop.f32.mrb[23].mxu0 }
 0x1f4   :  { %v1143_v10 = vadd.f32 %v2961_v60, %v4067_v16  ;;  %v2964_v46 = vadd.f32 %v2963_v41, %v2962_v52 }
 0x1f6   :  { %v1146_v32 = vadd.f32 %v2964_v46, %v4067_v16  ;;  %v4077_v63 = vadd.f32 %v3073_v59, %v1143_v10 }
 0x1f8   :  { %v2965_v48 = vpop.f32.mrb[24].mxu0  ;;  %v4079_v0 = vadd.f32 %v3076_v15, %v1146_v32 }
 0x1f9   :  { %v2966_v19 = vpop.f32.mrb[25].mxu0 }
 0x1fa   :  { %v2967_v50 = vadd.f32 %v2966_v19, %v2965_v48  ;;  %v2968_v30 = vpop.f32.mrb[26].mxu0 }
 0x1fb   :  { %v2969_v55 = vpop.f32.mrb[27].mxu0 }
 0x1fc   :  { %v1151_v12 = vadd.f32 %v2967_v50, %v4067_v16  ;;  %v2970_v20 = vadd.f32 %v2969_v55, %v2968_v30 }
 0x1fe   :  { %v1154_v5 = vadd.f32 %v2970_v20, %v4067_v16  ;;  %v4083_v36 = vadd.f32 %v3079_v2, %v1151_v12 }
 0x200   :  { %v2971_v6 = vpop.f32.mrb[28].mxu0  ;;  %v4085_v45 = vadd.f32 %v3082_v4, %v1154_v5 }
 0x201   :  { %v2972_v18 = vpop.f32.mrb[29].mxu0 }
 0x202   :  { %v2973_v59 = vadd.f32 %v2972_v18, %v2971_v6  ;;  %v2974_v34 = vpop.f32.mrb[30].mxu0 }
 0x203   :  { %v2975_v37 = vpop.f32.mrb[31].mxu0 }
 0x204   :  { %v1159_v15 = vadd.f32 %v2973_v59, %v4067_v16  ;;  %v2976_v42 = vadd.f32 %v2975_v37, %v2974_v34 }
 0x206   :  { %v1162_v22 = vadd.f32 %v2976_v42, %v4067_v16  ;;  %v4089_v11 = vadd.f32 %v3085_v38, %v1159_v15 }
 0x208   :  { %v2977_v27 = vpop.f32.mrb[32].mxu0  ;;  %v4091_v35 = vadd.f32 %v3088_v56, %v1162_v22 }
 0x209   :  { %v2978_v9 = vpop.f32.mrb[33].mxu0 }
 0x20a   :  { %v3089_v2 = vpop.f32.mrb[16].mxu1  ;;  %v2979_v21 = vadd.f32 %v2978_v9, %v2977_v27  ;;  %v2980_v58 = vpop.f32.mrb[34].mxu0  ;;  %v3279_v27 = vld [vmem:[#allocation8] sm:$0xff]  }
 0x20b   :  { %v3090_v4 = vpop.f32.mrb[17].mxu1  ;;  %v2981_v31 = vpop.f32.mrb[35].mxu0 }
 0x20c   :  { %v3091_v51 = vadd.f32 %v3090_v4, %v3089_v2  ;;  %v3092_v53 = vpop.f32.mrb[18].mxu1  ;;  %v1167_v40 = vadd.f32 %v2979_v21, %v4067_v16  ;;  %v2982_v3 = vadd.f32 %v2981_v31, %v2980_v58  ;;  %v3502_v21 = vmov 0  }
 0x20d   :  { %v3093_v8 = vpop.f32.mrb[19].mxu1  ;;  %2337 = vmatprep.subr.bf16.mxu1 %v3502_v21 }
 0x20e   :  { %v3094_v49 = vadd.f32 %v3093_v8, %v3092_v53  ;;  %v1170_v13 = vadd.f32 %v2982_v3, %v4067_v16  ;;  %v4095_v38 = vadd.f32 %v3091_v51, %v1167_v40  ;;  %2338 = vmatpush1.bf16.msra.mxu1 %v3279_v27 }
 0x20f   :  { %2339 = vmatprep.subr.bf16.mxu1 %v3502_v21 }
 0x210   :  { %v2983_v23 = vpop.f32.mrb[36].mxu0  ;;  %v4097_v56 = vadd.f32 %v3094_v49, %v1170_v13 }
 0x211   :  { %v2984_v54 = vpop.f32.mrb[37].mxu0 }
 0x212   :  { %v3095_v61 = vpop.f32.mrb[20].mxu1  ;;  %v2985_v33 = vadd.f32 %v2984_v54, %v2983_v23  ;;  %v2986_v7 = vpop.f32.mrb[38].mxu0 }
 0x213   :  { %v3096_v62 = vpop.f32.mrb[21].mxu1  ;;  %v2987_v14 = vpop.f32.mrb[39].mxu0 }
 0x214   :  { %v3097_v39 = vadd.f32 %v3096_v62, %v3095_v61  ;;  %v3098_v17 = vpop.f32.mrb[22].mxu1  ;;  %v1175_v60 = vadd.f32 %v2985_v33, %v4067_v16  ;;  %v2988_v52 = vadd.f32 %v2987_v14, %v2986_v7  ;;  %v3280_v14 = vld [vmem:[#allocation8 + $0x8] sm:$0xff]  }
 0x215   :  { %v3099_v41 = vpop.f32.mrb[23].mxu1  ;;  %2340 = vmatpush1.bf16.msra.mxu1 %v3280_v14 }
 0x216   :  { %v3100_v10 = vadd.f32 %v3099_v41, %v3098_v17  ;;  %v1178_v46 = vadd.f32 %v2988_v52, %v4067_v16  ;;  %v4101_v32 = vadd.f32 %v3097_v39, %v1175_v60  ;;  %2341 = vmatprep.subr.bf16.mxu1 %v3502_v21 }
 0x218   :  { %v2989_v48 = vpop.f32.mrb[40].mxu0  ;;  %v4103_v19 = vadd.f32 %v3100_v10, %v1178_v46 }
 0x219   :  { %v2990_v50 = vpop.f32.mrb[41].mxu0 }
 0x21a   :  { %v2991_v30 = vadd.f32 %v2990_v50, %v2989_v48  ;;  %v2992_v55 = vpop.f32.mrb[42].mxu0  ;;  %v3101_v12 = vpop.f32.mrb[24].mxu1 }
 0x21b   :  { %v2993_v20 = vpop.f32.mrb[43].mxu0  ;;  %v3102_v5 = vpop.f32.mrb[25].mxu1 }
 0x21c   :  { %v1183_v6 = vadd.f32 %v2991_v30, %v4067_v16  ;;  %v2994_v18 = vadd.f32 %v2993_v20, %v2992_v55  ;;  %v3103_v59 = vadd.f32 %v3102_v5, %v3101_v12  ;;  %v3104_v34 = vpop.f32.mrb[26].mxu1 }
 0x21d   :  { %v3105_v37 = vpop.f32.mrb[27].mxu1 }
 0x21e   :  { %v1186_v15 = vadd.f32 %v2994_v18, %v4067_v16  ;;  %v3106_v42 = vadd.f32 %v3105_v37, %v3104_v34  ;;  %v4107_v22 = vadd.f32 %v3103_v59, %v1183_v6  ;;  %v3281_v34 = vld [vmem:[#allocation8 + $0x10] sm:$0xff]  }
 0x21f   :  { %2342 = vmatpush1.bf16.msra.mxu1 %v3281_v34 }
 0x220   :  { %v2995_v9 = vpop.f32.mrb[44].mxu0  ;;  %v4109_v2 = vadd.f32 %v3106_v42, %v1186_v15  ;;  %2343 = vmatprep.subr.bf16.mxu1 %v3502_v21 }
 0x221   :  { %v2996_v58 = vpop.f32.mrb[45].mxu0 }
 0x222   :  { %v2997_v4 = vadd.f32 %v2996_v58, %v2995_v9  ;;  %v2998_v31 = vpop.f32.mrb[46].mxu0  ;;  %v3107_v51 = vpop.f32.mrb[28].mxu1 }
 0x223   :  { %v2999_v53 = vpop.f32.mrb[47].mxu0  ;;  %v3108_v40 = vpop.f32.mrb[29].mxu1 }
 0x224   :  { %v1191_v3 = vadd.f32 %v2997_v4, %v4067_v16  ;;  %v3000_v8 = vadd.f32 %v2999_v53, %v2998_v31  ;;  %v3109_v49 = vadd.f32 %v3108_v40, %v3107_v51  ;;  %v3110_v13 = vpop.f32.mrb[30].mxu1 }
 0x225   :  { %v3111_v23 = vpop.f32.mrb[31].mxu1 }
 0x226   :  { %v1194_v54 = vadd.f32 %v3000_v8, %v4067_v16  ;;  %v3112_v61 = vadd.f32 %v3111_v23, %v3110_v13  ;;  %v4115_v33 = vadd.f32 %v3109_v49, %v1191_v3 }
 0x228   :  { %v3001_v7 = vpop.f32.mrb[48].mxu0  ;;  %v4117_v62 = vadd.f32 %v3112_v61, %v1194_v54  ;;  %v3282_v54 = vld [vmem:[#allocation8 + $0x18] sm:$0xff]  }
 0x229   :  { %v3002_v39 = vpop.f32.mrb[49].mxu0  ;;  %2344 = vmatpush1.bf16.msra.mxu1 %v3282_v54  ;;  %v1103_v54 = vadd.f32 %v4050_v28, %v4067_v16 }
 0x22a   :  { %v3003_v17 = vadd.f32 %v3002_v39, %v3001_v7  ;;  %v3004_v60 = vpop.f32.mrb[50].mxu0  ;;  %v3113_v52 = vpop.f32.mrb[32].mxu1  ;;  %2345 = vmatprep.subr.bf16.mxu1 %v3502_v21 }
 0x22b   :  { %v3005_v41 = vpop.f32.mrb[51].mxu0  ;;  %v3114_v10 = vpop.f32.mrb[33].mxu1 }
 0x22c   :  { %v1199_v46 = vadd.f32 %v3003_v17, %v4067_v16  ;;  %v3006_v48 = vadd.f32 %v3005_v41, %v3004_v60  ;;  %v3115_v50 = vadd.f32 %v3114_v10, %v3113_v52  ;;  %v3116_v30 = vpop.f32.mrb[34].mxu1 }
 0x22d   :  { %v3117_v55 = vpop.f32.mrb[35].mxu1 }
 0x22e   :  { %v1202_v12 = vadd.f32 %v3006_v48, %v4067_v16  ;;  %v3118_v20 = vadd.f32 %v3117_v55, %v3116_v30  ;;  %v4122_v5 = vadd.f32 %v3115_v50, %v1199_v46 }
 0x230   :  { %v3007_v6 = vpop.f32.mrb[52].mxu0  ;;  %v4124_v18 = vadd.f32 %v3118_v20, %v1202_v12 }
 0x231   :  { %v3008_v59 = vpop.f32.mrb[53].mxu0 }
 0x232   :  { %v3009_v37 = vadd.f32 %v3008_v59, %v3007_v6  ;;  %v3010_v15 = vpop.f32.mrb[54].mxu0  ;;  %v3119_v42 = vpop.f32.mrb[36].mxu1 }
 0x233   :  { %v3011_v27 = vpop.f32.mrb[55].mxu0  ;;  %v3120_v9 = vpop.f32.mrb[37].mxu1 }
 0x234   :  { %v1207_v58 = vadd.f32 %v3009_v37, %v4067_v16  ;;  %v3012_v4 = vadd.f32 %v3011_v27, %v3010_v15  ;;  %v3121_v31 = vadd.f32 %v3120_v9, %v3119_v42  ;;  %v3122_v51 = vpop.f32.mrb[38].mxu1 }
 0x235   :  { %v3123_v53 = vpop.f32.mrb[39].mxu1 }
 0x236   :  { %v1210_v40 = vadd.f32 %v3012_v4, %v4067_v16  ;;  %v3124_v3 = vadd.f32 %v3123_v53, %v3122_v51  ;;  %v4129_v8 = vadd.f32 %v3121_v31, %v1207_v58  ;;  %v3283_v4 = vld [vmem:[#allocation8 + $0x20] sm:$0xff]  }
 0x237   :  { %2346 = vmatpush1.bf16.msra.mxu1 %v3283_v4 }
 0x238   :  { %v3013_v49 = vpop.f32.mrb[56].mxu0  ;;  %v4131_v13 = vadd.f32 %v3124_v3, %v1210_v40  ;;  %2347 = vmatprep.subr.bf16.mxu1 %v3502_v21 }
 0x239   :  { %v3014_v23 = vpop.f32.mrb[57].mxu0 }
 0x23a   :  { %v3015_v61 = vadd.f32 %v3014_v23, %v3013_v49  ;;  %v3016_v7 = vpop.f32.mrb[58].mxu0  ;;  %v3125_v14 = vpop.f32.mrb[40].mxu1 }
 0x23b   :  { %v3017_v39 = vpop.f32.mrb[59].mxu0  ;;  %v3126_v17 = vpop.f32.mrb[41].mxu1 }
 0x23c   :  { %v1215_v60 = vadd.f32 %v3015_v61, %v4067_v16  ;;  %v3018_v52 = vadd.f32 %v3017_v39, %v3016_v7  ;;  %v3127_v41 = vadd.f32 %v3126_v17, %v3125_v14  ;;  %v3128_v10 = vpop.f32.mrb[42].mxu1  ;;  %v1106_v39 = vadd.f32 %v4052_v29, %v4067_v16 }
 0x23d   :  { %v3129_v46 = vpop.f32.mrb[43].mxu1 }
 0x23e   :  { %v1218_v48 = vadd.f32 %v3018_v52, %v4067_v16  ;;  %v3130_v50 = vadd.f32 %v3129_v46, %v3128_v10  ;;  %v4136_v30 = vadd.f32 %v3127_v41, %v1215_v60  ;;  %v3284_v52 = vld [vmem:[#allocation8 + $0x28] sm:$0xff]  }
 0x23f   :  { %2348 = vmatpush1.bf16.msra.mxu1 %v3284_v52  ;;  %v3288_v52 = vld [vmem:[#allocation8 + $0x48] sm:$0xff]  }
 0x240   :  { %v3019_v55 = vpop.f32.mrb[60].mxu0  ;;  %v4138_v12 = vadd.f32 %v3130_v50, %v1218_v48  ;;  %2349 = vmatprep.subr.bf16.mxu1 %v3502_v21  ;;  %v1111_v48 = vadd.f32 %v4055_v25, %v4067_v16  ;;  %v1122_v25 = vadd.f32 %v4061_v1, %v4067_v16  ;;  %v3287_v1 = vld [vmem:[#allocation8 + $0x40] sm:$0xff]  }
 0x241   :  { %v3020_v20 = vpop.f32.mrb[61].mxu0 }
 0x242   :  { %v3021_v6 = vadd.f32 %v3020_v20, %v3019_v55  ;;  %v3022_v59 = vpop.f32.mrb[62].mxu0  ;;  %v3131_v34 = vpop.f32.mrb[44].mxu1  ;;  %v1114_v20 = vadd.f32 %v4057_v24, %v4067_v16 }
 0x243   :  { %v3023_v37 = vpop.f32.mrb[63].mxu0  ;;  %v3132_v15 = vpop.f32.mrb[45].mxu1 }
 0x244   :  { %v1223_v42 = vadd.f32 %v3021_v6, %v4067_v16  ;;  %v3024_v27 = vadd.f32 %v3023_v37, %v3022_v59  ;;  %v3133_v9 = vadd.f32 %v3132_v15, %v3131_v34  ;;  %v3134_v58 = vpop.f32.mrb[46].mxu1  ;;  %v3285_v37 = vld [vmem:[#allocation8 + $0x30] sm:$0xff]  }
 0x245   :  { %v3135_v31 = vpop.f32.mrb[47].mxu1  ;;  %2350 = vmatpush1.bf16.msra.mxu1 %v3285_v37 }
 0x246   :  { %v1226_v51 = vadd.f32 %v3024_v27, %v4067_v16  ;;  %v3136_v53 = vadd.f32 %v3135_v31, %v3134_v58  ;;  %v4142_v40 = vadd.f32 %v3133_v9, %v1223_v42  ;;  %v1119_v42 = vadd.f32 %v4059_v44, %v4067_v16  ;;  %2351 = vmatprep.subr.bf16.mxu1 %v3502_v21 }
 0x248   :  { %v3041_v3 = vpop.f32.mrb[64].mxu0  ;;  %v4145_v49 = vadd.f32 %v3136_v53, %v1226_v51 }
 0x249   :  { %v3042_v23 = vpop.f32.mrb[65].mxu0 }
 0x24a   :  { %v3043_v61 = vadd.f32 %v3042_v23, %v3041_v3  ;;  %v3044_v7 = vpop.f32.mrb[66].mxu0  ;;  %v3286_v3 = vld [vmem:[#allocation8 + $0x38] sm:$0xff]   ;;  %v1127_v23 = vadd.f32 %v4063_v26, %v4067_v16 }
 0x24b   :  { %v3045_v14 = vpop.f32.mrb[67].mxu0  ;;  %2352 = vmatpush1.bf16.msra.mxu1 %v3286_v3 }
 0x24c   :  { %v3046_v17 = vadd.f32 %v3045_v14, %v3044_v7  ;;  %v1264_v60 = vadd.f32 %v3043_v61, %v1103_v54  ;;  %v1130_v7 = vadd.f32 %v4065_v43, %v4067_v16  ;;  %2353 = vmatprep.subr.bf16.mxu1 %v3502_v21 }
 0x24e   :  { %v1267_v41 = vadd.f32 %v3046_v17, %v1106_v39 }
 0x24f   :  { %2354 = vmatpush1.bf16.msra.mxu1 %v3287_v1 }
 0x250   :  { %v3047_v10 = vpop.f32.mrb[68].mxu0  ;;  %2355 = vmatprep.subr.bf16.mxu1 %v3502_v21 }
 0x251   :  { %v3048_v46 = vpop.f32.mrb[69].mxu0 }
 0x252   :  { %v3049_v50 = vadd.f32 %v3048_v46, %v3047_v10  ;;  %v3050_v28 = vpop.f32.mrb[70].mxu0 }
 0x253   :  { %v3051_v55 = vpop.f32.mrb[71].mxu0  ;;  %2356 = vmatpush1.bf16.msra.mxu1 %v3288_v52 }
 0x254   :  { %v3052_v6 = vadd.f32 %v3051_v55, %v3050_v28  ;;  %v1272_v29 = vadd.f32 %v3049_v50, %v1111_v48 }
 0x256   :  { %v1275_v59 = vadd.f32 %v3052_v6, %v1114_v20 }
 0x258   :  { %v3053_v34 = vpop.f32.mrb[72].mxu0 }
 0x259   :  { %v3054_v15 = vpop.f32.mrb[73].mxu0 }
 0x25a   :  { %v3055_v27 = vadd.f32 %v3054_v15, %v3053_v34  ;;  %v3056_v9 = vpop.f32.mrb[74].mxu0 }
 0x25b   :  { %v3057_v58 = vpop.f32.mrb[75].mxu0 }
 0x25c   :  { %v3058_v4 = vadd.f32 %v3057_v58, %v3056_v9  ;;  %v1280_v24 = vadd.f32 %v3055_v27, %v1119_v42 }
 0x25e   :  { %v1283_v31 = vadd.f32 %v3058_v4, %v1122_v25 }
 0x260   :  { %v3059_v51 = vpop.f32.mrb[76].mxu0 }
 0x261   :  { %v3060_v53 = vpop.f32.mrb[77].mxu0 }
 0x262   :  { %v3061_v54 = vadd.f32 %v3060_v53, %v3059_v51  ;;  %v3062_v44 = vpop.f32.mrb[78].mxu0 }
 0x263   :  { %v3063_v61 = vpop.f32.mrb[79].mxu0 }
 0x264   :  { %v3064_v14 = vadd.f32 %v3063_v61, %v3062_v44  ;;  %v1288_v39 = vadd.f32 %v3061_v54, %v1127_v23 }
 0x266   :  { %v1291_v17 = vadd.f32 %v3064_v14, %v1130_v7 }
 0x268   :  { %v3179_v10 = vpop.f32.mrb[80].mxu0 }
 0x269   :  { %v1433_v46 = vadd.f32 %v3179_v10, %v1272_v29  ;;  %v1424_v26 = vpop.f32.mrb[81].mxu0 }
 0x26a   :  { %v1425_v48 = vadd.f32 %v1424_v26, %v1264_v60  ;;  %v3180_v50 = vpop.f32.mrb[82].mxu0 }
 0x26b   :  { %v1553_v28 = vmul.f32 0.2, %v1433_v46  ;;  %v1436_v55 = vadd.f32 %v3180_v50, %v1275_v59  ;;  %v1427_v20 = vpop.f32.mrb[83].mxu0 }
 0x26c   :  { %v1551_v43 = vmul.f32 0.2, %v1425_v48  ;;  %v1428_v16 = vadd.f32 %v1427_v20, %v1267_v41 }
 0x26d   :  { %v1554_v6 = vmul.f32 0.2, %v1436_v55  ;;  %v1585_v37 = vmax.f32 %v1433_v46, %v1553_v28 }
 0x26e   :  { %v1552_v34 = vmul.f32 0.2, %v1428_v16  ;;  %v1583_v42 = vmax.f32 %v1425_v48, %v1551_v43 }
 0x26f   :  { %v1586_v15 = vmax.f32 %v1436_v55, %v1554_v6 }
 0x270   :  { %v1584_v27 = vmax.f32 %v1428_v16, %v1552_v34  ;;  %v3183_v9 = vpop.f32.mrb[84].mxu0 }
 0x271   :  { %v1616_v58 = vpack.c.bf16 %v1586_v15, %v1585_v37  ;;  %v1449_v25 = vadd.f32 %v3183_v9, %v1288_v39  ;;  %v1440_v21 = vpop.f32.mrb[85].mxu0 }
 0x272   :  { %v1615_v29 = vpack.c.bf16 %v1584_v27, %v1583_v42  ;;  %v1441_v4 = vadd.f32 %v1440_v21, %v1280_v24  ;;  %v3184_v60 = vpop.f32.mrb[86].mxu0 }
 0x273   :  { %v1648_v51 = vrot.slane %v1616_v58, 7  ;;  %v1557_v53 = vmul.f32 0.2, %v1449_v25  ;;  %v1452_v59 = vadd.f32 %v3184_v60, %v1291_v17  ;;  %v1443_v3 = vpop.f32.mrb[87].mxu0 }
 0x274   :  { %v1647_v23 = vrot.slane %v1615_v29, 7  ;;  %v1555_v54 = vmul.f32 0.2, %v1441_v4  ;;  %v1444_v41 = vadd.f32 %v1443_v3, %v1283_v31 }
 0x275   :  { %v1589_v44 = vmax.f32 %v1449_v25, %v1557_v53  ;;  %v1558_v61 = vmul.f32 0.2, %v1452_v59 }
 0x276   :  { %v4168_v7 = vsel %vm310_vm0, %v1647_v23, %v1648_v51  ;;  %v4171_v14 = vsel %vm310_vm0, 0, %v1647_v23  ;;  %v1587_v39 = vmax.f32 %v1441_v4, %v1555_v54  ;;  %v1556_v1 = vmul.f32 0.2, %v1444_v41 }
 0x277   :  { %v1590_v24 = vmax.f32 %v1452_v59, %v1558_v61  ;;  %v2051_v52 = vrot.slane %v4171_v14, 2  ;;  %v2052_v17 = vrot.slane %v4168_v7, 2  ;;  %v1867_v10 = vrot.slane %v4171_v14, 1 }
 0x278   :  { %v1588_v46 = vmax.f32 %v1444_v41, %v1556_v1  ;;  %v3187_v31 = vpop.f32.mrb[88].mxu0  ;;  %v1868_v26 = vrot.slane %v4168_v7, 1  ;;  %v1691_v48 = vshrl.u32 %v4171_v14, 16  ;;  %v1693_v50 = vshll.u32 %v4171_v14, 16 }
 0x279   :  { %v1618_v28 = vpack.c.bf16 %v1590_v24, %v1589_v44  ;;  %v1465_v55 = vadd.f32 %v3187_v31, %v4077_v63  ;;  %v1456_v20 = vpop.f32.mrb[89].mxu0  ;;  %v2053_v43 = vsel %vm688_vm3, %v2051_v52, %v2052_v17  ;;  %v1698_v16 = vshll.u32 %v4168_v7, 16 }
 0x27a   :  { %v1617_v6 = vpack.c.bf16 %v1588_v46, %v1587_v39  ;;  %v1457_v34 = vadd.f32 %v1456_v20, %v4071_v47  ;;  %v3188_v37 = vpop.f32.mrb[90].mxu0  ;;  %2897 = vmatprep.mubr.msk.bf16.mxu1 %vm2087_vm6, %v2053_v43  ;;  %v1869_v15 = vsel %vm534_vm2, %v1867_v10, %v1868_v26  ;;  %v1702_v42 = vshrl.u32 %v4168_v7, 16 }
 0x27b   :  { %v1652_v63 = vrot.slane %v1618_v28, 7  ;;  %v1561_v27 = vmul.f32 0.2, %v1465_v55  ;;  %v1468_v9 = vadd.f32 %v3188_v37, %v4079_v0  ;;  %1903 = vrot.lane.b32.xlu1 %v1869_v15, %s3494_s28  ;;  %v1459_v58 = vpop.f32.mrb[91].mxu0  ;;  %v1935_v25 = vrot.slane %v1691_v48, 1 }
 0x27c   :  { %v1650_v21 = vrot.slane %v1617_v6, 7  ;;  %v1559_v29 = vmul.f32 0.2, %v1457_v34  ;;  %v1460_v47 = vadd.f32 %v1459_v58, %v4073_v57  ;;  %v1936_v4 = vrot.slane %v1693_v50, 2 }
 0x27d   :  { %v1593_v60 = vmax.f32 %v1465_v55, %v1561_v27  ;;  %v1562_v53 = vmul.f32 0.2, %v1468_v9  ;;  %v1938_v59 = vrot.slane %v1702_v42, 1  ;;  %v1939_v61 = vrot.slane %v1698_v16, 2 }
 0x27e   :  { %v4194_v3 = vsel %vm310_vm0, %v1648_v51, %v1650_v21  ;;  %v4197_v23 = vsel %vm310_vm0, %v1650_v21, %v1652_v63  ;;  %v1591_v54 = vmax.f32 %v1457_v34, %v1559_v29  ;;  %v1560_v0 = vmul.f32 0.2, %v1460_v47 }
 0x27f   :  { %v1594_v41 = vmax.f32 %v1468_v9, %v1562_v53  ;;  %v1937_v44 = vor.u32 %v1936_v4, %v1935_v25  ;;  %v1695_v39 = vrot.slane %v1693_v50, 1  ;;  %v1700_v24 = vrot.slane %v1698_v16, 1 }
 0x280   :  { %v1592_v1 = vmax.f32 %v1460_v47, %v1560_v0  ;;  %v3191_v52 = vpop.f32.mrb[92].mxu0  ;;  %v1706_v57 = vshll.u32 %v4194_v3, 16  ;;  %v1710_v10 = vshrl.u32 %v4194_v3, 16  ;;  %v1940_v51 = vor.u32 %v1939_v61, %v1938_v59 }
 0x281   :  { %v4201_v46 = vpack.c.bf16 %v1594_v41, %v1593_v60  ;;  %v1696_v31 = vor.u32 %v1695_v39, %v1691_v48  ;;  %v1481_v28 = vadd.f32 %v3191_v52, %v4089_v11  ;;  %v1472_v55 = vpop.f32.mrb[93].mxu0  ;;  %v1704_v34 = vor.u32 %v1702_v42, %v1700_v24 }
 0x282   :  { %v1619_v20 = vpack.c.bf16 %v1592_v1, %v1591_v54  ;;  %v1473_v43 = vadd.f32 %v1472_v55, %v4083_v36  ;;  %v3192_v6 = vpop.f32.mrb[94].mxu0  ;;  %v1708_v50 = vrot.slane %v1706_v57, 1  ;;  %v1941_v37 = vsel %vm587_vm5, %v1937_v44, %v1940_v51 }
 0x283   :  { %v1655_v16 = vrot.slane %v4201_v46, 7  ;;  %v1701_v15 = vsel %vm373_vm1, %v1696_v31, %v1700_v24  ;;  %v1565_v27 = vmul.f32 0.2, %v1481_v28  ;;  %v1475_v9 = vpop.f32.mrb[95].mxu0  ;;  %2019 = vrot.lane.b32.xlu1 %v1941_v37, %s3503_s4  ;;  %v1484_v36 = vadd.f32 %v3192_v6, %v4091_v35 }
 0x284   :  { %v1654_v58 = vrot.slane %v1619_v20, 7  ;;  %1827 = vrot.lane.b32.xlu0 %v1701_v15, %s3504_s7  ;;  %v1563_v11 = vmul.f32 0.2, %v1473_v43  ;;  %v1476_v48 = vadd.f32 %v1475_v9, %v4085_v45  ;;  %v4213_v42 = vsel %vm310_vm0, %v1652_v63, 0 }
 0x285   :  { %v1709_v25 = vsel %vm373_vm1, %v1704_v34, %v1708_v50  ;;  %v1942_v21 = vrot.slane %v1710_v10, 1  ;;  %v1943_v29 = vrot.slane %v1706_v57, 2  ;;  %v1597_v60 = vmax.f32 %v1481_v28, %v1565_v27 }
 0x286   :  { %v4217_v47 = vsel %vm310_vm0, %v1654_v58, %v1655_v16  ;;  %v4220_v4 = vsel %vm310_vm0, 0, %v1654_v58  ;;  %v1566_v53 = vmul.f32 0.2, %v1484_v36  ;;  %v1595_v59 = vmax.f32 %v1473_v43, %v1563_v11 }
 0x287   :  { %v1564_v54 = vmul.f32 0.2, %v1476_v48  ;;  %v4222_v35 = vor.u32 %v1943_v29, %v1942_v21  ;;  %v1870_v45 = vrot.slane %v4194_v3, 1  ;;  %1829 = vrot.lane.b32.xlu1 %v1709_v25, %s3504_s7  ;;  %v1872_v41 = vrot.slane %v4197_v23, 1 }
 0x288   :  { %v1598_v63 = vmax.f32 %v1484_v36, %v1566_v53  ;;  %v3195_v0 = vpop.f32.mrb[96].mxu0  ;;  %v1712_v44 = vor.u32 %v1710_v10, %v1708_v50  ;;  %v1714_v61 = vshll.u32 %v4197_v23, 16  ;;  %v1718_v57 = vshrl.u32 %v4197_v23, 16 }
 0x289   :  { %v1596_v39 = vmax.f32 %v1476_v48, %v1564_v54  ;;  %v1945_v1 = vsel %vm587_vm5, %v1940_v51, %v4222_v35  ;;  %v1497_v24 = vadd.f32 %v3195_v0, %v4101_v32  ;;  %v1488_v52 = vpop.f32.mrb[97].mxu0  ;;  %v1871_v31 = vsel %vm534_vm2, %v1868_v26, %v1870_v45 }
 0x28a   :  { %v4232_v46 = vpack.c.bf16 %v1598_v63, %v1597_v60  ;;  %2021 = vrot.lane.b32.xlu0 %v1945_v1, %s3503_s4  ;;  %v1489_v10 = vadd.f32 %v1488_v52, %v4095_v38  ;;  %v3196_v28 = vpop.f32.mrb[98].mxu0  ;;  %v1716_v55 = vrot.slane %v1714_v61, 1  ;;  %v1721_v6 = vshll.u32 %v4213_v42, 16 }
 0x28b   :  { %v1621_v20 = vpack.c.bf16 %v1596_v39, %v1595_v59  ;;  %v1569_v43 = vmul.f32 0.2, %v1497_v24  ;;  %v1500_v51 = vadd.f32 %v3196_v28, %v4103_v19  ;;  %v1491_v32 = vpop.f32.mrb[99].mxu0  ;;  %1905 = vrot.lane.b32.xlu1 %v1871_v31, %s3494_s28  ;;  %v1873_v26 = vsel %vm534_vm2, %v1870_v45, %v1872_v41 }
 0x28c   :  { %v1659_v34 = vrot.slane %v4232_v46, 7  ;;  %v1567_v50 = vmul.f32 0.2, %v1489_v10  ;;  %v1492_v38 = vadd.f32 %v1491_v32, %v4097_v56  ;;  %v1717_v27 = vsel %vm373_vm1, %v1712_v44, %v1716_v55 }
 0x28d   :  { %v1657_v37 = vrot.slane %v1621_v20, 7  ;;  %v1570_v15 = vmul.f32 0.2, %v1500_v51  ;;  %v1720_v9 = vor.u32 %v1718_v57, %v1716_v55  ;;  %v1601_v19 = vmax.f32 %v1497_v24, %v1569_v43 }
 0x28e   :  { %v1599_v58 = vmax.f32 %v1489_v10, %v1567_v50  ;;  %1907 = vrot.lane.b32.xlu0 %v1873_v26, %s3494_s28  ;;  %v1568_v11 = vmul.f32 0.2, %v1492_v38  ;;  %v1723_v36 = vrot.slane %v1721_v6, 1  ;;  %v1946_v21 = vrot.slane %v1718_v57, 1 }
 0x28f   :  { %v4250_v48 = vsel %vm310_vm0, %v1655_v16, %v1657_v37  ;;  %v4255_v25 = vsel %vm310_vm0, %v1657_v37, %v1659_v34  ;;  %v1602_v56 = vmax.f32 %v1500_v51, %v1570_v15  ;;  %1831 = vrot.lane.b32.xlu1 %v1717_v27, %s3504_s7  ;;  %v1947_v59 = vrot.slane %v1714_v61, 2 }
 0x290   :  { %v1600_v29 = vmax.f32 %v1492_v38, %v1568_v11  ;;  %v1724_v60 = vsel %vm373_vm1, %v1720_v9, %v1723_v36  ;;  %v3199_v53 = vpop.f32.mrb[100].mxu0  ;;  %v1950_v54 = vshrl.u32 %v4213_v42, 16  ;;  %v1953_v0 = vrot.slane %v1721_v6, 2 }
 0x291   :  { %v4260_v45 = vpack.c.bf16 %v1602_v56, %v1601_v19  ;;  %v1513_v16 = vadd.f32 %v3199_v53, %v4115_v33  ;;  %v1504_v63 = vpop.f32.mrb[101].mxu0  ;;  %v1874_v44 = vrot.slane %v4213_v42, 1  ;;  %v1948_v1 = vor.u32 %v1947_v59, %v1946_v21 }
 0x292   :  { %v4264_v39 = vpack.c.bf16 %v1600_v29, %v1599_v58  ;;  %1833 = vrot.lane.b32.xlu0 %v1724_v60, %s3504_s7  ;;  %v1505_v24 = vadd.f32 %v1504_v63, %v4107_v22  ;;  %v3200_v52 = vpop.f32.mrb[102].mxu0  ;;  %v1952_v57 = vrot.slane %v1950_v54, 1  ;;  %v1876_v6 = vrot.slane %v4220_v4, 1 }
 0x293   :  { %v1662_v61 = vrot.slane %v4260_v45, 7  ;;  %v1573_v31 = vmul.f32 0.2, %v1513_v16  ;;  %v1516_v10 = vadd.f32 %v3200_v52, %v4117_v62  ;;  %v1507_v28 = vpop.f32.mrb[103].mxu0  ;;  %v1949_v55 = vsel %vm587_vm5, %v4222_v35, %v1948_v1 }
 0x294   :  { %v1661_v33 = vrot.slane %v4264_v39, 7  ;;  %v1571_v20 = vmul.f32 0.2, %v1505_v24  ;;  %v1954_v43 = vor.u32 %v1953_v0, %v1952_v57  ;;  %2023 = vrot.lane.b32.xlu1 %v1949_v55, %s3503_s4  ;;  %v1508_v22 = vadd.f32 %v1507_v28, %v4109_v2 }
 0x295   :  { %v1574_v51 = vmul.f32 0.2, %v1516_v10  ;;  %v1875_v32 = vsel %vm534_vm2, %v1872_v41, %v1874_v44  ;;  %v1605_v50 = vmax.f32 %v1513_v16, %v1573_v31  ;;  %v1877_v2 = vrot.slane %v4217_v47, 1 }
 0x296   :  { %v4282_v62 = vsel %vm310_vm0, %v1661_v33, %v1662_v61  ;;  %v1603_v35 = vmax.f32 %v1505_v24, %v1571_v20  ;;  %v1955_v26 = vsel %vm587_vm5, %v1948_v1, %v1954_v43  ;;  %v1572_v37 = vmul.f32 0.2, %v1508_v22 }
 0x297   :  { %v1606_v38 = vmax.f32 %v1516_v10, %v1574_v51  ;;  %2025 = vrot.lane.b32.xlu0 %v1955_v26, %s3503_s4  ;;  %v1725_v15 = vshrl.u32 %v4220_v4, 16  ;;  %v1727_v27 = vshll.u32 %v4220_v4, 16  ;;  %v1732_v9 = vshll.u32 %v4217_v47, 16 }
 0x298   :  { %v3203_v41 = vpop.f32.mrb[104].mxu0  ;;  %v1736_v19 = vshrl.u32 %v4217_v47, 16  ;;  %v1740_v58 = vshll.u32 %v4250_v48, 16  ;;  %v1604_v36 = vmax.f32 %v1508_v22, %v1572_v37  ;;  %1909 = vrot.lane.b32.xlu1 %v1875_v32, %s3494_s28  ;;  %v1878_v56 = vsel %vm534_vm2, %v1876_v6, %v1877_v2 }
 0x299   :  { %v4292_v11 = vpack.c.bf16 %v1606_v38, %v1605_v50  ;;  %v1529_v21 = vadd.f32 %v3203_v41, %v4129_v8  ;;  %v1520_v29 = vpop.f32.mrb[105].mxu0  ;;  %v1729_v60 = vrot.slane %v1727_v27, 1  ;;  %v1734_v53 = vrot.slane %v1732_v9, 1 }
 0x29a   :  { %v1521_v59 = vadd.f32 %v1520_v29, %v4122_v5  ;;  %v3204_v54 = vpop.f32.mrb[106].mxu0  ;;  %v1742_v45 = vrot.slane %v1740_v58, 1  ;;  %v1625_v63 = vpack.c.bf16 %v1604_v36, %v1603_v35  ;;  %v1956_v22 = vrot.slane %v1725_v15, 1 }
 0x29b   :  { %v1666_v16 = vrot.slane %v4292_v11, 7  ;;  %1911 = vrot.lane.b32.xlu0 %v1878_v56, %s3494_s28  ;;  %v1577_v0 = vmul.f32 0.2, %v1529_v21  ;;  %v1532_v44 = vadd.f32 %v3204_v54, %v4131_v13  ;;  %v1523_v1 = vpop.f32.mrb[107].mxu0  ;;  %v1730_v24 = vor.u32 %v1729_v60, %v1725_v15 }
 0x29c   :  { %v1575_v52 = vmul.f32 0.2, %v1521_v59  ;;  %v1738_v57 = vor.u32 %v1736_v19, %v1734_v53  ;;  %v1524_v8 = vadd.f32 %v1523_v1, %v4124_v18  ;;  %v1664_v31 = vrot.slane %v1625_v63, 7 }
 0x29d   :  { %v1609_v10 = vmax.f32 %v1529_v21, %v1577_v0  ;;  %v1578_v28 = vmul.f32 0.2, %v1532_v44  ;;  %v1735_v5 = vsel %vm373_vm1, %v1730_v24, %v1734_v53  ;;  %v1957_v6 = vrot.slane %v1727_v27, 2 }
 0x29e   :  { %v1607_v55 = vmax.f32 %v1521_v59, %v1575_v52  ;;  %v1743_v20 = vsel %vm373_vm1, %v1738_v57, %v1742_v45  ;;  %v1576_v43 = vmul.f32 0.2, %v1524_v8  ;;  %v4307_v51 = vsel %vm310_vm0, %v1662_v61, %v1664_v31  ;;  %1835 = vrot.lane.b32.xlu1 %v1735_v5, %s3504_s7 }
 0x29f   :  { %v4312_v13 = vsel %vm310_vm0, %v1664_v31, %v1666_v16  ;;  %v1610_v18 = vmax.f32 %v1532_v44, %v1578_v28  ;;  %1837 = vrot.lane.b32.xlu0 %v1743_v20, %s3504_s7  ;;  %v1959_v50 = vrot.slane %v1736_v19, 1  ;;  %v1960_v35 = vrot.slane %v1732_v9, 2 }
 0x2a0   :  { %v1608_v32 = vmax.f32 %v1524_v8, %v1576_v43  ;;  %v3207_v26 = vpop.f32.mrb[108].mxu0  ;;  %v1744_v61 = vshrl.u32 %v4250_v48, 16  ;;  %v1964_v37 = vrot.slane %v1740_v58, 2  ;;  %v1958_v21 = vor.u32 %v1957_v6, %v1956_v22 }
 0x2a1   :  { %v4316_v38 = vpack.c.bf16 %v1610_v18, %v1609_v10  ;;  %v1545_v41 = vadd.f32 %v3207_v26, %v4142_v40  ;;  %v1536_v36 = vpop.f32.mrb[109].mxu0  ;;  %v1961_v29 = vor.u32 %v1960_v35, %v1959_v50  ;;  %v1879_v60 = vrot.slane %v4250_v48, 1 }
 0x2a2   :  { %v4320_v56 = vpack.c.bf16 %v1608_v32, %v1607_v55  ;;  %v3208_v15 = vpop.f32.mrb[110].mxu0  ;;  %v1963_v19 = vrot.slane %v1744_v61, 1  ;;  %v1537_v53 = vadd.f32 %v1536_v36, %v4136_v30  ;;  %v4331_v63 = vsel %vm310_vm0, %v1659_v34, 0 }
 0x2a3   :  { %v1669_v27 = vrot.slane %v4316_v38, 7  ;;  %v1581_v9 = vmul.f32 0.2, %v1545_v41  ;;  %v1539_v59 = vpop.f32.mrb[111].mxu0  ;;  %v1962_v58 = vsel %vm587_vm5, %v1958_v21, %v1961_v29  ;;  %v1548_v40 = vadd.f32 %v3208_v15, %v4145_v49 }
 0x2a4   :  { %v1668_v54 = vrot.slane %v4320_v56, 7  ;;  %2027 = vrot.lane.b32.xlu1 %v1962_v58, %s3503_s4  ;;  %v1965_v0 = vor.u32 %v1964_v37, %v1963_v19  ;;  %v1579_v44 = vmul.f32 0.2, %v1537_v53  ;;  %v1880_v1 = vsel %vm534_vm2, %v1877_v2, %v1879_v60 }
 0x2a5   :  { %v1582_v24 = vmul.f32 0.2, %v1548_v40  ;;  %v1540_v49 = vadd.f32 %v1539_v59, %v4138_v12  ;;  %v1613_v34 = vmax.f32 %v1545_v41, %v1581_v9  ;;  %v1881_v52 = vrot.slane %v4255_v25, 1 }
 0x2a6   :  { %v4337_v30 = vsel %vm310_vm0, %v1668_v54, %v1669_v27  ;;  %v1966_v46 = vsel %vm587_vm5, %v1961_v29, %v1965_v0  ;;  %v1746_v57 = vor.u32 %v1744_v61, %v1742_v45  ;;  %v1748_v10 = vshll.u32 %v4255_v25, 16 }
 0x2a7   :  { %2029 = vrot.lane.b32.xlu0 %v1966_v46, %s3503_s4  ;;  %v1614_v8 = vmax.f32 %v1548_v40, %v1582_v24  ;;  %v1580_v31 = vmul.f32 0.2, %v1540_v49  ;;  %v1752_v28 = vshrl.u32 %v4255_v25, 16  ;;  %v4351_v2 = vsel %vm310_vm0, 0, %v1661_v33 }
 0x2a8   :  { %1913 = vrot.lane.b32.xlu1 %v1880_v1, %s3494_s28  ;;  %v1611_v12 = vmax.f32 %v1537_v53, %v1579_v44  ;;  %v1755_v5 = vshll.u32 %v4331_v63, 16  ;;  %v1971_v45 = vshrl.u32 %v4331_v63, 16  ;;  %v1750_v43 = vrot.slane %v1748_v10, 1 }
 0x2a9   :  { %v4356_v55 = vpack.c.bf16 %v1614_v8, %v1613_v34  ;;  %v1612_v20 = vmax.f32 %v1540_v49, %v1580_v31  ;;  %v1967_v18 = vrot.slane %v1752_v28, 1  ;;  %v1882_v22 = vsel %vm534_vm2, %v1879_v60, %v1881_v52 }
 0x2aa   :  { %v1968_v32 = vrot.slane %v1748_v10, 2  ;;  %v1973_v6 = vrot.slane %v1971_v45, 1  ;;  %v1974_v39 = vrot.slane %v1755_v5, 2  ;;  %v1751_v35 = vsel %vm373_vm1, %v1746_v57, %v1750_v43 }
 0x2ab   :  { %v1673_v33 = vrot.slane %v4356_v55, 7  ;;  %1915 = vrot.lane.b32.xlu0 %v1882_v22, %s3494_s28  ;;  %v1629_v50 = vpack.c.bf16 %v1612_v20, %v1611_v12  ;;  %v1754_v26 = vor.u32 %v1752_v28, %v1750_v43  ;;  %v1757_v38 = vrot.slane %v1755_v5, 1 }
 0x2ac   :  { %1839 = vrot.lane.b32.xlu1 %v1751_v35, %s3504_s7  ;;  %v1969_v61 = vor.u32 %v1968_v32, %v1967_v18  ;;  %v1975_v41 = vor.u32 %v1974_v39, %v1973_v6  ;;  %v1883_v36 = vrot.slane %v4331_v63, 1  ;;  %v1759_v60 = vshrl.u32 %v4351_v2, 16 }
 0x2ad   :  { %v1671_v37 = vrot.slane %v1629_v50, 7  ;;  %v1758_v21 = vsel %vm373_vm1, %v1754_v26, %v1757_v38  ;;  %v1761_v15 = vshll.u32 %v4351_v2, 16  ;;  %v1766_v53 = vshll.u32 %v4282_v62, 16 }
 0x2ae   :  { %v1970_v29 = vsel %vm587_vm5, %v1965_v0, %v1969_v61  ;;  %v1770_v59 = vshrl.u32 %v4282_v62, 16  ;;  %v1884_v40 = vsel %vm534_vm2, %v1881_v52, %v1883_v36  ;;  %v1885_v0 = vrot.slane %v4351_v2, 1 }
 0x2af   :  { %v4369_v19 = vsel %vm310_vm0, %v1669_v27, %v1671_v37  ;;  %v4374_v9 = vsel %vm310_vm0, %v1671_v37, %v1673_v33  ;;  %1841 = vrot.lane.b32.xlu0 %v1758_v21, %s3504_s7  ;;  %v1763_v58 = vrot.slane %v1761_v15, 1  ;;  %v1886_v27 = vrot.slane %v4282_v62, 1 }
 0x2b0   :  { %2031 = vrot.lane.b32.xlu1 %v1970_v29, %s3503_s4  ;;  %v1976_v44 = vsel %vm587_vm5, %v1969_v61, %v1975_v41  ;;  %v1774_v1 = vshll.u32 %v4307_v51, 16  ;;  %v1977_v24 = vrot.slane %v1759_v60, 1  ;;  %v1778_v49 = vshrl.u32 %v4307_v51, 16 }
 0x2b1   :  { %v1764_v46 = vor.u32 %v1763_v58, %v1759_v60  ;;  %v1978_v34 = vrot.slane %v1761_v15, 2  ;;  %v1980_v57 = vrot.slane %v1770_v59, 1  ;;  %v1981_v8 = vrot.slane %v1766_v53, 2 }
 0x2b2   :  { %v1768_v52 = vrot.slane %v1766_v53, 1  ;;  %v1887_v31 = vsel %vm534_vm2, %v1885_v0, %v1886_v27  ;;  %v1776_v10 = vrot.slane %v1774_v1, 1  ;;  %v1984_v28 = vrot.slane %v1778_v49, 1 }
 0x2b3   :  { %2033 = vrot.lane.b32.xlu0 %v1976_v44, %s3503_s4  ;;  %v1985_v12 = vrot.slane %v1774_v1, 2  ;;  %v1979_v45 = vor.u32 %v1978_v34, %v1977_v24  ;;  %v1982_v20 = vor.u32 %v1981_v8, %v1980_v57  ;;  %v1782_v32 = vshll.u32 %v4312_v13, 16 }
 0x2b4   :  { %1917 = vrot.lane.b32.xlu1 %v1884_v40, %s3494_s28  ;;  %v1769_v5 = vsel %vm373_vm1, %v1764_v46, %v1768_v52  ;;  %v1772_v43 = vor.u32 %v1770_v59, %v1768_v52  ;;  %v4397_v6 = vsel %vm310_vm0, %v1666_v16, 0  ;;  %v1888_v50 = vrot.slane %v4307_v51, 1 }
 0x2b5   :  { %v1986_v22 = vor.u32 %v1985_v12, %v1984_v28  ;;  %v1983_v39 = vsel %vm587_vm5, %v1979_v45, %v1982_v20  ;;  %v1786_v35 = vshrl.u32 %v4312_v13, 16  ;;  %v1890_v26 = vrot.slane %v4312_v13, 1 }
 0x2b6   :  { %v1777_v18 = vsel %vm373_vm1, %v1772_v43, %v1776_v10  ;;  %v1784_v61 = vrot.slane %v1782_v32, 1  ;;  %v1789_v11 = vshll.u32 %v4397_v6, 16  ;;  %v1992_v16 = vshrl.u32 %v4397_v6, 16 }
 0x2b7   :  { %1919 = vrot.lane.b32.xlu0 %v1887_v31, %s3494_s28  ;;  %v1987_v38 = vsel %vm587_vm5, %v1982_v20, %v1986_v22  ;;  %v1889_v37 = vsel %vm534_vm2, %v1886_v27, %v1888_v50  ;;  %v1780_v41 = vor.u32 %v1778_v49, %v1776_v10  ;;  %v1988_v36 = vrot.slane %v1786_v35, 1 }
 0x2b8   :  { %1843 = vrot.lane.b32.xlu1 %v1769_v5, %s3504_s7  ;;  %v1989_v21 = vrot.slane %v1782_v32, 2  ;;  %v4413_v29 = vsel %vm310_vm0, 0, %v1668_v54  ;;  %v1891_v60 = vsel %vm534_vm2, %v1888_v50, %v1890_v26  ;;  %v1788_v15 = vor.u32 %v1786_v35, %v1784_v61 }
 0x2b9   :  { %v1994_v53 = vrot.slane %v1992_v16, 1  ;;  %v1995_v59 = vrot.slane %v1789_v11, 2  ;;  %v1785_v58 = vsel %vm373_vm1, %v1780_v41, %v1784_v61  ;;  %v1795_v0 = vshll.u32 %v4413_v29, 16 }
 0x2ba   :  { %v1990_v40 = vor.u32 %v1989_v21, %v1988_v36  ;;  %v1791_v56 = vrot.slane %v1789_v11, 1  ;;  %v1892_v54 = vrot.slane %v4397_v6, 1  ;;  %v1793_v1 = vshrl.u32 %v4413_v29, 16 }
 0x2bb   :  { %1845 = vrot.lane.b32.xlu0 %v1777_v18, %s3504_s7  ;;  %v1996_v44 = vor.u32 %v1995_v59, %v1994_v53  ;;  %v1797_v49 = vrot.slane %v1795_v0, 1  ;;  %v1800_v46 = vshll.u32 %v4337_v30, 16  ;;  %v1804_v34 = vshrl.u32 %v4337_v30, 16 }
 0x2bc   :  { %2035 = vrot.lane.b32.xlu1 %v1983_v39, %s3503_s4  ;;  %v1792_v27 = vsel %vm373_vm1, %v1788_v15, %v1791_v56  ;;  %v1991_v24 = vsel %vm587_vm5, %v1986_v22, %v1990_v40  ;;  %v1893_v57 = vsel %vm534_vm2, %v1890_v26, %v1892_v54  ;;  %v1894_v8 = vrot.slane %v4413_v29, 1 }
 0x2bd   :  { %v1895_v52 = vrot.slane %v4337_v30, 1  ;;  %v1997_v31 = vsel %vm587_vm5, %v1990_v40, %v1996_v44  ;;  %v1808_v10 = vshll.u32 %v4369_v19, 16  ;;  %v1998_v28 = vrot.slane %v1793_v1, 1 }
 0x2be   :  { %v1812_v12 = vshrl.u32 %v4369_v19, 16  ;;  %v1798_v5 = vor.u32 %v1797_v49, %v1793_v1  ;;  %v1999_v45 = vrot.slane %v1795_v0, 2  ;;  %v2001_v20 = vrot.slane %v1804_v34, 1 }
 0x2bf   :  { %2037 = vrot.lane.b32.xlu0 %v1987_v38, %s3503_s4  ;;  %v2002_v43 = vrot.slane %v1800_v46, 2  ;;  %v1802_v18 = vrot.slane %v1800_v46, 1  ;;  %v1896_v22 = vsel %vm534_vm2, %v1894_v8, %v1895_v52  ;;  %v1810_v32 = vrot.slane %v1808_v10, 1 }
 0x2c0   :  { %1921 = vrot.lane.b32.xlu1 %v1889_v37, %s3494_s28  ;;  %v2005_v39 = vrot.slane %v1812_v12, 1  ;;  %v2006_v50 = vrot.slane %v1808_v10, 2  ;;  %v2000_v26 = vor.u32 %v1999_v45, %v1998_v28  ;;  %v1816_v37 = vshll.u32 %v4374_v9, 16 }
 0x2c1   :  { %v1803_v35 = vsel %vm373_vm1, %v1798_v5, %v1802_v18  ;;  %v2003_v38 = vor.u32 %v2002_v43, %v2001_v20  ;;  %v1806_v61 = vor.u32 %v1804_v34, %v1802_v18  ;;  %v4446_v41 = vsel %vm310_vm0, %v1673_v33, 0 }
 0x2c2   :  { %v2007_v16 = vor.u32 %v2006_v50, %v2005_v39  ;;  %v1897_v21 = vrot.slane %v4369_v19, 1  ;;  %v1899_v15 = vrot.slane %v4374_v9, 1  ;;  %v1818_v59 = vrot.slane %v1816_v37, 1 }
 0x2c3   :  { %1923 = vrot.lane.b32.xlu0 %v1891_v60, %s3494_s28  ;;  %v1811_v11 = vsel %vm373_vm1, %v1806_v61, %v1810_v32  ;;  %v2004_v36 = vsel %vm587_vm5, %v2000_v26, %v2003_v38  ;;  %v1820_v60 = vshrl.u32 %v4374_v9, 16  ;;  %v1823_v55 = vshll.u32 %v4446_v41, 16 }
 0x2c4   :  { %1847 = vrot.lane.b32.xlu1 %v1785_v58, %s3504_s7  ;;  %v2008_v53 = vsel %vm587_vm5, %v2003_v38, %v2007_v16  ;;  %v2013_v33 = vshrl.u32 %v4446_v41, 16  ;;  %v1898_v58 = vsel %vm534_vm2, %v1895_v52, %v1897_v21  ;;  %v1814_v40 = vor.u32 %v1812_v12, %v1810_v32 }
 0x2c5   :  { %v2009_v0 = vrot.slane %v1820_v60, 1  ;;  %v2010_v56 = vrot.slane %v1816_v37, 2  ;;  %v1900_v54 = vsel %vm534_vm2, %v1897_v21, %v1899_v15  ;;  %v2016_v1 = vrot.slane %v1823_v55, 2 }
 0x2c6   :  { %v2015_v44 = vrot.slane %v2013_v33, 1  ;;  %v1825_v46 = vrot.slane %v1823_v55, 1  ;;  %v1901_v52 = vrot.slane %v4446_v41, 1  ;;  %v2054_v45 = vrot.slane %v4194_v3, 2 }
 0x2c7   :  { %1849 = vrot.lane.b32.xlu0 %v1792_v27, %s3504_s7  ;;  %v1822_v27 = vor.u32 %v1820_v60, %v1818_v59  ;;  %v2011_v49 = vor.u32 %v2010_v56, %v2009_v0  ;;  %v2056_v26 = vrot.slane %v4197_v23, 2 }
 0x2c8   :  { %2039 = vrot.lane.b32.xlu1 %v1991_v24, %s3503_s4  ;;  %v1819_v24 = vsel %vm373_vm1, %v1814_v40, %v1818_v59  ;;  %v1902_v10 = vsel %vm534_vm2, %v1899_v15, %v1901_v52  ;;  %v2065_v52 = vrot.slane %v4255_v25, 2 }
 0x2c9   :  { %v1826_v34 = vsel %vm373_vm1, %v1822_v27, %v1825_v46  ;;  %v2012_v8 = vsel %vm587_vm5, %v2007_v16, %v2011_v49  ;;  %v2057_v16 = vsel %vm688_vm3, %v2054_v45, %v2056_v26 }
 0x2cb   :  { %2041 = vrot.lane.b32.xlu0 %v1997_v31, %s3503_s4 }
 0x2cc   :  { %1925 = vrot.lane.b32.xlu1 %v1893_v57, %s3494_s28  ;;  %v2017_v57 = vor.u32 %v2016_v1, %v2015_v44 }
 0x2ce   :  { %v2018_v31 = vsel %vm587_vm5, %v2011_v49, %v2017_v57 }
 0x2cf   :  { %1927 = vrot.lane.b32.xlu0 %v1896_v22, %s3494_s28  ;;  %v2055_v22 = vsel %vm688_vm3, %v2052_v17, %v2054_v45 }
 0x2d0   :  { %1851 = vrot.lane.b32.xlu1 %v1803_v35, %s3504_s7 }
 0x2d3   :  { %1853 = vrot.lane.b32.xlu0 %v1811_v11, %s3504_s7 }
 0x2d4   :  { %2043 = vrot.lane.b32.xlu1 %v2004_v36, %s3503_s4 }
 0x2d7   :  { %2045 = vrot.lane.b32.xlu0 %v2008_v53, %s3503_s4 }
 0x2d8   :  { %1929 = vrot.lane.b32.xlu1 %v1898_v58, %s3494_s28  ;;  %v2061_v58 = vrot.slane %v4217_v47, 2 }
 0x2db   :  { %1931 = vrot.lane.b32.xlu0 %v1900_v54, %s3494_s28 }
 0x2dc   :  { %1855 = vrot.lane.b32.xlu1 %v1819_v24, %s3504_s7 }
 0x2df   :  { %1857 = vrot.lane.b32.xlu0 %v1826_v34, %s3504_s7 }
 0x2e0   :  { %2047 = vrot.lane.b32.xlu1 %v2012_v8, %s3503_s4 }
 0x2e3   :  { %2049 = vrot.lane.b32.xlu0 %v2018_v31, %s3503_s4 }
 0x2e4   :  { %1933 = vrot.lane.b32.xlu1 %v1902_v10, %s3494_s28  ;;  %s3505_s28 = smov [#allocation11]  }
 0x2e5   :  { %s2823_s8 = sshll.u32 %s3505_s28, 4  ;;  %s2824_s8 = int_to_ptr.vmem [resolvable:$true] %s2823_s8 }
 0x2e6   :  { %s3463_s9 = scalar_lea.vmem %s2824_s8, 8192  ;;  %p3468_p13 = scmp.lt.s32.totalorder %s2824_s8, %s2824_s8 }
 0x2e7   :  { %p3464_p12 = scmp.ne.s32.totalorder %s2824_s8, %s3463_s9  ;;  %p3469_p0 = scmp.lt.s32.totalorder %s3463_s9, %s3463_s9 }
 0x2e9   :  { %p3470_p1 = por %p3469_p0, %p3468_p13 }
 0x2eb   :  { %p3471_p2 = pnand %p3470_p1, %p3464_p12 }
 0x2ed   :  { %v1904_v28 = vpop.permute.xlu1 %1903 }
 0x2f5   :  { %v2020_v12 = vpop.permute.xlu1 %2019 }
 0x2f6   :  { %v1828_v5 = vpop.permute.xlu0 %1827 }
 0x2f7   :  { %v2089_v20 = vsel %vm2087_vm6, %v4171_v14, %v1828_v5 }
 0x2f8   :  { %v2122_v43 = vsel %vm2120_vm7, %v2089_v20, %v1904_v28 }
 0x2f9   :  { %v2155_v18 = vsel %vm2153_vm8, %v2122_v43, %v2020_v12  ;;  %v1830_v32 = vpop.permute.xlu1 %1829 }
 0x2fa   :  { %2370 = vmatmul.mubr.bf16.vlgmr.msra.gmra.mrb[48].mxu1 %v2155_v18  ;;  %v2091_v50 = vsel %vm2087_vm6, %v4168_v7, %v1830_v32  ;;  %v2058_v7 = vrot.slane %v4213_v42, 2  ;;  %v2060_v42 = vrot.slane %v4220_v4, 2 }
 0x2fb   :  { %2898 = vmatprep.mubr.msk.bf16.mxu1 %vm2087_vm6, %v2055_v22 }
 0x2fc   :  { %v2022_v39 = vpop.permute.xlu0 %2021  ;;  %v2059_v53 = vsel %vm688_vm3, %v2056_v26, %v2058_v7  ;;  %v2062_v56 = vsel %vm688_vm3, %v2060_v42, %v2061_v58  ;;  %v2070_v26 = vrot.slane %v4282_v62, 2 }
 0x2fd   :  { %v1906_v35 = vpop.permute.xlu1 %1905 }
 0x2fe   :  { %v2124_v14 = vsel %vm2120_vm7, %v2091_v50, %v1906_v35 }
 0x2ff   :  { %v2158_v61 = vsel %vm2153_vm8, %v2124_v14, %v2022_v39 }
 0x300   :  { %v1908_v38 = vpop.permute.xlu0 %1907 }
 0x301   :  { %v1832_v11 = vpop.permute.xlu1 %1831 }
 0x302   :  { %2378 = vmatmul.mubr.bf16.gmra.mrb[52].mxu1 %v2158_v61  ;;  %v2093_v17 = vsel %vm2087_vm6, %v4194_v3, %v1832_v11 }
 0x303   :  { %2899 = vmatprep.mubr.msk.bf16.mxu1 %vm2087_vm6, %v2057_v16  ;;  %v2126_v21 = vsel %vm2120_vm7, %v2093_v17, %v1908_v38  ;;  %v2072_v17 = vrot.slane %v4307_v51, 2 }
 0x304   :  { %v1834_v37 = vpop.permute.xlu0 %1833 }
 0x305   :  { %v2095_v55 = vsel %vm2087_vm6, %v4197_v23, %v1834_v37  ;;  %v2063_v23 = vrot.slane %v4250_v48, 2 }
 0x306   :  { %v2024_v36 = vpop.permute.xlu1 %2023 }
 0x307   :  { %v2161_v60 = vsel %vm2153_vm8, %v2126_v21, %v2024_v36  ;;  %v2064_v46 = vsel %vm688_vm3, %v2061_v58, %v2063_v23  ;;  %v2066_v12 = vsel %vm688_vm3, %v2063_v23, %v2065_v52  ;;  %v2073_v21 = vsel %vm688_vm3, %v2070_v26, %v2072_v17 }
 0x309   :  { %v2026_v15 = vpop.permute.xlu0 %2025 }
 0x30a   :  { %2386 = vmatmul.mubr.bf16.gmra.mrb[56].mxu1 %v2161_v60  ;;  %v1910_v59 = vpop.permute.xlu1 %1909 }
 0x30b   :  { %2900 = vmatprep.mubr.msk.bf16.mxu1 %vm2087_vm6, %v2059_v53  ;;  %v2128_v3 = vsel %vm2120_vm7, %v2095_v55, %v1910_v59 }
 0x30c   :  { %v2164_v0 = vsel %vm2153_vm8, %v2128_v3, %v2026_v15 }
 0x30d   :  { %v1912_v33 = vpop.permute.xlu0 %1911 }
 0x310   :  { %v1836_v40 = vpop.permute.xlu1 %1835 }
 0x311   :  { %v1838_v54 = vpop.permute.xlu0 %1837  ;;  %v2097_v27 = vsel %vm2087_vm6, %v4220_v4, %v1836_v40  ;;  %v2076_v40 = vrot.slane %v4397_v6, 2  ;;  %v2079_v6 = vrot.slane %v4337_v30, 2 }
 0x312   :  { %2394 = vmatmul.mubr.bf16.gmra.mrb[60].mxu1 %v2164_v0  ;;  %v2130_v1 = vsel %vm2120_vm7, %v2097_v27, %v1912_v33  ;;  %v2099_v57 = vsel %vm2087_vm6, %v4217_v47, %v1838_v54  ;;  %v2067_v47 = vrot.slane %v4331_v63, 2  ;;  %v2069_v63 = vrot.slane %v4351_v2, 2 }
 0x313   :  { %2901 = vmatprep.mubr.msk.bf16.mxu1 %vm2087_vm6, %v2062_v56 }
 0x314   :  { %v2068_v32 = vsel %vm688_vm3, %v2065_v52, %v2067_v47  ;;  %v2071_v61 = vsel %vm688_vm3, %v2069_v63, %v2070_v26 }
 0x316   :  { %v2028_v44 = vpop.permute.xlu1 %2027 }
 0x317   :  { %v2167_v24 = vsel %vm2153_vm8, %v2130_v1, %v2028_v44  ;;  %v2078_v1 = vrot.slane %v4413_v29, 2 }
 0x319   :  { %v2030_v49 = vpop.permute.xlu0 %2029 }
 0x31a   :  { %2402 = vmatmul.mubr.bf16.gmra.mrb[64].mxu1 %v2167_v24  ;;  %v1914_v34 = vpop.permute.xlu1 %1913 }
 0x31b   :  { %2902 = vmatprep.mubr.msk.bf16.mxu1 %vm2087_vm6, %v2064_v46  ;;  %v2132_v8 = vsel %vm2120_vm7, %v2099_v57, %v1914_v34  ;;  %v2080_v46 = vsel %vm688_vm3, %v2078_v1, %v2079_v6 }
 0x31c   :  { %v2170_v10 = vsel %vm2153_vm8, %v2132_v8, %v2030_v49 }
 0x31d   :  { %v1916_v4 = vpop.permute.xlu0 %1915 }
 0x31e   :  { %v1840_v31 = vpop.permute.xlu1 %1839 }
 0x31f   :  { %v2101_v45 = vsel %vm2087_vm6, %v4250_v48, %v1840_v31 }
 0x320   :  { %v2134_v18 = vsel %vm2120_vm7, %v2101_v45, %v1916_v4 }
 0x321   :  { %v1842_v28 = vpop.permute.xlu0 %1841 }
 0x322   :  { %2410 = vmatmul.mubr.bf16.gmra.mrb[68].mxu1 %v2170_v10  ;;  %v2032_v5 = vpop.permute.xlu1 %2031  ;;  %v2103_v50 = vsel %vm2087_vm6, %v4255_v25, %v1842_v28 }
 0x323   :  { %2903 = vmatprep.mubr.msk.bf16.mxu1 %vm2087_vm6, %v2066_v12  ;;  %v2173_v22 = vsel %vm2153_vm8, %v2134_v18, %v2032_v5 }
 0x325   :  { %v2034_v43 = vpop.permute.xlu0 %2033 }
 0x326   :  { %v1918_v20 = vpop.permute.xlu1 %1917 }
 0x327   :  { %v2136_v35 = vsel %vm2120_vm7, %v2103_v50, %v1918_v20 }
 0x328   :  { %v2176_v38 = vsel %vm2153_vm8, %v2136_v35, %v2034_v43 }
 0x329   :  { %v1920_v48 = vpop.permute.xlu0 %1919 }
 0x32a   :  { %2418 = vmatmul.mubr.bf16.gmra.mrb[72].mxu1 %v2173_v22  ;;  %v1844_v39 = vpop.permute.xlu1 %1843 }
 0x32b   :  { %2904 = vmatprep.mubr.msk.bf16.mxu1 %vm2087_vm6, %v2068_v32  ;;  %v2105_v16 = vsel %vm2087_vm6, %v4351_v2, %v1844_v39  ;;  %v2074_v2 = vrot.slane %v4312_v13, 2 }
 0x32c   :  { %v2138_v37 = vsel %vm2120_vm7, %v2105_v16, %v1920_v48 }
 0x32d   :  { %v1846_v11 = vpop.permute.xlu0 %1845  ;;  %v2075_v33 = vsel %vm688_vm3, %v2072_v17, %v2074_v2  ;;  %v2077_v54 = vsel %vm688_vm3, %v2074_v2, %v2076_v40 }
 0x32e   :  { %v2036_v14 = vpop.permute.xlu1 %2035  ;;  %v2107_v15 = vsel %vm2087_vm6, %v4282_v62, %v1846_v11 }
 0x32f   :  { %v2179_v7 = vsel %vm2153_vm8, %v2138_v37, %v2036_v14 }
 0x331   :  { %v2038_v36 = vpop.permute.xlu0 %2037 }
 0x332   :  { %2426 = vmatmul.mubr.bf16.gmra.mrb[76].mxu1 %v2176_v38  ;;  %v1922_v25 = vpop.permute.xlu1 %1921 }
 0x333   :  { %2905 = vmatprep.mubr.msk.bf16.mxu1 %vm2087_vm6, %v2071_v61  ;;  %v2140_v53 = vsel %vm2120_vm7, %v2107_v15, %v1922_v25 }
 0x334   :  { %v2182_v3 = vsel %vm2153_vm8, %v2140_v53, %v2038_v36 }
 0x335   :  { %v1924_v59 = vpop.permute.xlu0 %1923 }
 0x336   :  { %v1848_v60 = vpop.permute.xlu1 %1847 }
 0x337   :  { %v2109_v42 = vsel %vm2087_vm6, %v4307_v51, %v1848_v60 }
 0x338   :  { %v2142_v0 = vsel %vm2120_vm7, %v2109_v42, %v1924_v59 }
 0x339   :  { %v1850_v58 = vpop.permute.xlu0 %1849 }
 0x33a   :  { %2434 = vmatmul.mubr.bf16.gmra.mrb[80].mxu1 %v2179_v7  ;;  %v2040_v55 = vpop.permute.xlu1 %2039  ;;  %v2111_v23 = vsel %vm2087_vm6, %v4312_v13, %v1850_v58  ;;  %v2081_v13 = vrot.slane %v4369_v19, 2 }
 0x33b   :  { %2906 = vmatprep.mubr.msk.bf16.mxu1 %vm2087_vm6, %v2073_v21  ;;  %v2185_v56 = vsel %vm2153_vm8, %v2142_v0, %v2040_v55 }
 0x33c   :  { %v2082_v10 = vsel %vm688_vm3, %v2079_v6, %v2081_v13 }
 0x33d   :  { %v2042_v27 = vpop.permute.xlu0 %2041 }
 0x33e   :  { %v1926_v62 = vpop.permute.xlu1 %1925 }
 0x33f   :  { %v2144_v51 = vsel %vm2120_vm7, %v2111_v23, %v1926_v62 }
 0x340   :  { %v2188_v24 = vsel %vm2153_vm8, %v2144_v51, %v2042_v27 }
 0x341   :  { %v1928_v49 = vpop.permute.xlu0 %1927 }
 0x342   :  { %2442 = vmatmul.mubr.bf16.gmra.mrb[84].mxu1 %v2182_v3  ;;  %v1852_v44 = vpop.permute.xlu1 %1851 }
 0x343   :  { %2907 = vmatprep.mubr.msk.bf16.mxu1 %vm2087_vm6, %v2075_v33  ;;  %v2113_v57 = vsel %vm2087_vm6, %v4413_v29, %v1852_v44  ;;  %v2083_v29 = vrot.slane %v4374_v9, 2 }
 0x344   :  { %v2146_v4 = vsel %vm2120_vm7, %v2113_v57, %v1928_v49 }
 0x345   :  { %v1854_v8 = vpop.permute.xlu0 %1853  ;;  %v2084_v20 = vsel %vm688_vm3, %v2081_v13, %v2083_v29 }
 0x346   :  { %v2044_v34 = vpop.permute.xlu1 %2043  ;;  %v2115_v28 = vsel %vm2087_vm6, %v4337_v30, %v1854_v8  ;;  %v2085_v30 = vrot.slane %v4446_v41, 2  ;;  %v4587_v41 = vld [vmem:[#allocation10] ss:$0 sm:$0xff] }
 0x347   :  { %v2191_v31 = vsel %vm2153_vm8, %v2146_v4, %v2044_v34 }
 0x348   :  { %v2086_v35 = vsel %vm688_vm3, %v2083_v29, %v2085_v30 }
 0x349   :  { %v2046_v12 = vpop.permute.xlu0 %2045 }
 0x34a   :  { %2450 = vmatmul.mubr.bf16.gmra.mrb[88].mxu1 %v2185_v56  ;;  %v1930_v52 = vpop.permute.xlu1 %1929 }
 0x34b   :  { %2908 = vmatprep.mubr.msk.bf16.mxu1 %vm2087_vm6, %v2077_v54  ;;  %v2148_v5 = vsel %vm2120_vm7, %v2115_v28, %v1930_v52 }
 0x34c   :  { %v2194_v47 = vsel %vm2153_vm8, %v2148_v5, %v2046_v12 }
 0x34d   :  { %v1932_v43 = vpop.permute.xlu0 %1931 }
 0x34e   :  { %v1856_v45 = vpop.permute.xlu1 %1855 }
 0x34f   :  { %v2117_v18 = vsel %vm2087_vm6, %v4369_v19, %v1856_v45 }
 0x350   :  { %v2150_v32 = vsel %vm2120_vm7, %v2117_v18, %v1932_v43 }
 0x351   :  { %v1858_v50 = vpop.permute.xlu0 %1857 }
 0x352   :  { %2458 = vmatmul.mubr.bf16.gmra.mrb[92].mxu1 %v2188_v24  ;;  %v2048_v22 = vpop.permute.xlu1 %2047  ;;  %v2119_v63 = vsel %vm2087_vm6, %v4374_v9, %v1858_v50 }
 0x353   :  { %2909 = vmatprep.mubr.msk.bf16.mxu1 %vm2087_vm6, %v2080_v46  ;;  %v2197_v39 = vsel %vm2153_vm8, %v2150_v32, %v2048_v22 }
 0x355   :  { %v2050_v19 = vpop.permute.xlu0 %2049 }
 0x356   :  { %v1934_v48 = vpop.permute.xlu1 %1933 }
 0x357   :  { %v2152_v26 = vsel %vm2120_vm7, %v2119_v63, %v1934_v48 }
 0x358   :  { %v2200_v14 = vsel %vm2153_vm8, %v2152_v26, %v2050_v19 }
 0x35a   :  { %2466 = vmatmul.mubr.bf16.gmra.mrb[96].mxu1 %v2191_v31 }
 0x35b   :  { %2910 = vmatprep.mubr.msk.bf16.mxu1 %vm2087_vm6, %v2082_v10 }
 0x362   :  { %2474 = vmatmul.mubr.bf16.gmra.mrb[100].mxu1 %v2194_v47 }
 0x363   :  { %2911 = vmatprep.mubr.msk.bf16.mxu1 %vm2087_vm6, %v2084_v20 }
 0x36a   :  { %2482 = vmatmul.mubr.bf16.gmra.mrb[104].mxu1 %v2197_v39 }
 0x36b   :  { %2912 = vmatprep.mubr.msk.bf16.mxu1 %vm2087_vm6, %v2086_v35 }
 0x372   :  { %2490 = vmatmul.mubr.bf16.gmra.mrb[108].mxu1 %v2200_v14 }
 0x3cd   :  { %v2371_v38 = vpop.f32.mrb[48].mxu1 }
 0x3ce   :  { %v2372_v61 = vadd.f32 %v4587_v41, %v2371_v38  ;;  %v2373_v11 = vpop.f32.mrb[49].mxu1 }
 0x3cf   :  { %v2374_v16 = vpop.f32.mrb[50].mxu1 }
 0x3d0   :  { %v2498_v25 = vmul.f32 0.2, %v2372_v61  ;;  %v2375_v17 = vadd.f32 %v4587_v41, %v2374_v16  ;;  %v2376_v37 = vpop.f32.mrb[51].mxu1 }
 0x3d2   :  { %v2530_v7 = vmax.f32 %v2372_v61, %v2498_v25  ;;  %v2499_v36 = vmul.f32 0.2, %v2375_v17 }
 0x3d4   :  { %2562 = vxpose.xlu1.b32.start [1/8] (short) %v2530_v7, 128  ;;  %v2531_v21 = vmax.f32 %v2375_v17, %v2499_v36 }
 0x3d5   :  { %v2379_v9 = vpop.f32.mrb[52].mxu1 }
 0x3d6   :  { %v2380_v60 = vadd.f32 %v4587_v41, %v2379_v9  ;;  %v2381_v15 = vpop.f32.mrb[53].mxu1 }
 0x3d7   :  { %v2382_v53 = vpop.f32.mrb[54].mxu1 }
 0x3d8   :  { %v2500_v2 = vmul.f32 0.2, %v2380_v60  ;;  %v2383_v59 = vadd.f32 %v4587_v41, %v2382_v53  ;;  %2563 = vxpose.xlu1.b32.cont [2/8] (short) %v2531_v21, 128  ;;  %v2384_v55 = vpop.f32.mrb[55].mxu1 }
 0x3da   :  { %v2532_v3 = vmax.f32 %v2380_v60, %v2500_v2  ;;  %v2501_v33 = vmul.f32 0.2, %v2383_v59 }
 0x3dc   :  { %2564 = vxpose.xlu1.b32.cont [3/8] (short) %v2532_v3, 128  ;;  %v2533_v58 = vmax.f32 %v2383_v59, %v2501_v33 }
 0x3dd   :  { %v2387_v42 = vpop.f32.mrb[56].mxu1 }
 0x3de   :  { %v2388_v40 = vadd.f32 %v4587_v41, %v2387_v42  ;;  %v2389_v62 = vpop.f32.mrb[57].mxu1 }
 0x3df   :  { %v2390_v0 = vpop.f32.mrb[58].mxu1 }
 0x3e0   :  { %v2502_v56 = vmul.f32 0.2, %v2388_v40  ;;  %v2391_v54 = vadd.f32 %v4587_v41, %v2390_v0  ;;  %v2392_v27 = vpop.f32.mrb[59].mxu1  ;;  %2565 = vxpose.xlu1.b32.cont [4/8] (short) %v2533_v58, 128 }
 0x3e2   :  { %v2534_v23 = vmax.f32 %v2388_v40, %v2502_v56  ;;  %v2503_v44 = vmul.f32 0.2, %v2391_v54 }
 0x3e4   :  { %2566 = vxpose.xlu1.b32.cont [5/8] (short) %v2534_v23, 128  ;;  %v2535_v1 = vmax.f32 %v2391_v54, %v2503_v44 }
 0x3e5   :  { %v2395_v51 = vpop.f32.mrb[60].mxu1 }
 0x3e6   :  { %v2396_v6 = vadd.f32 %v4587_v41, %v2395_v51  ;;  %v2397_v24 = vpop.f32.mrb[61].mxu1 }
 0x3e7   :  { %v2398_v49 = vpop.f32.mrb[62].mxu1 }
 0x3e8   :  { %v2504_v46 = vmul.f32 0.2, %v2396_v6  ;;  %v2399_v34 = vadd.f32 %v4587_v41, %v2398_v49  ;;  %v2400_v57 = vpop.f32.mrb[63].mxu1  ;;  %2567 = vxpose.xlu1.b32.cont [6/8] (short) %v2535_v1, 128 }
 0x3ea   :  { %v2536_v13 = vmax.f32 %v2396_v6, %v2504_v46  ;;  %v2505_v8 = vmul.f32 0.2, %v2399_v34 }
 0x3ec   :  { %2568 = vxpose.xlu1.b32.cont [7/8] (short) %v2536_v13, 128  ;;  %v2537_v52 = vmax.f32 %v2399_v34, %v2505_v8 }
 0x3ed   :  { %v2403_v4 = vpop.f32.mrb[64].mxu1 }
 0x3ee   :  { %v2404_v31 = vadd.f32 %v4587_v41, %v2403_v4  ;;  %v2405_v10 = vpop.f32.mrb[65].mxu1 }
 0x3ef   :  { %v2406_v28 = vpop.f32.mrb[66].mxu1 }
 0x3f0   :  { %v2506_v12 = vmul.f32 0.2, %v2404_v31  ;;  %v2407_v5 = vadd.f32 %v4587_v41, %v2406_v28  ;;  %v2408_v29 = vpop.f32.mrb[67].mxu1  ;;  %2569 = vxpose.xlu1.b32.end [8/8] (short) %v2537_v52, 128 }
 0x3f2   :  { %v2538_v45 = vmax.f32 %v2404_v31, %v2506_v12  ;;  %v2507_v47 = vmul.f32 0.2, %v2407_v5 }
 0x3f4   :  { %2594 = vxpose.xlu0.b32.start [1/8] (short) %v2538_v45, 128  ;;  %v2539_v43 = vmax.f32 %v2407_v5, %v2507_v47 }
 0x3f5   :  { %v2411_v20 = vpop.f32.mrb[68].mxu1 }
 0x3f6   :  { %v2412_v18 = vadd.f32 %v4587_v41, %v2411_v20  ;;  %v2413_v22 = vpop.f32.mrb[69].mxu1 }
 0x3f7   :  { %v2414_v30 = vpop.f32.mrb[70].mxu1 }
 0x3f8   :  { %v2508_v32 = vmul.f32 0.2, %v2412_v18  ;;  %v2415_v39 = vadd.f32 %v4587_v41, %v2414_v30  ;;  %v2416_v50 = vpop.f32.mrb[71].mxu1  ;;  %2595 = vxpose.xlu0.b32.cont [2/8] (short) %v2539_v43, 128 }
 0x3fa   :  { %v2540_v35 = vmax.f32 %v2412_v18, %v2508_v32  ;;  %v2509_v48 = vmul.f32 0.2, %v2415_v39 }
 0x3fc   :  { %2596 = vxpose.xlu0.b32.cont [3/8] (short) %v2540_v35, 128  ;;  %v2541_v26 = vmax.f32 %v2415_v39, %v2509_v48 }
 0x3fd   :  { %v2419_v63 = vpop.f32.mrb[72].mxu1 }
 0x3fe   :  { %v2420_v19 = vadd.f32 %v4587_v41, %v2419_v63  ;;  %v2421_v14 = vpop.f32.mrb[73].mxu1 }
 0x3ff   :  { %v2422_v38 = vpop.f32.mrb[74].mxu1 }
 0x400   :  { %v2510_v61 = vmul.f32 0.2, %v2420_v19  ;;  %v2423_v11 = vadd.f32 %v4587_v41, %v2422_v38  ;;  %v2424_v16 = vpop.f32.mrb[75].mxu1  ;;  %2597 = vxpose.xlu0.b32.cont [4/8] (short) %v2541_v26, 128 }
 0x402   :  { %v2542_v25 = vmax.f32 %v2420_v19, %v2510_v61  ;;  %v2511_v17 = vmul.f32 0.2, %v2423_v11 }
 0x404   :  { %2598 = vxpose.xlu0.b32.cont [5/8] (short) %v2542_v25, 128  ;;  %v2543_v7 = vmax.f32 %v2423_v11, %v2511_v17 }
 0x405   :  { %v2427_v37 = vpop.f32.mrb[76].mxu1 }
 0x406   :  { %v2428_v36 = vadd.f32 %v4587_v41, %v2427_v37  ;;  %v2429_v9 = vpop.f32.mrb[77].mxu1 }
 0x407   :  { %v2430_v21 = vpop.f32.mrb[78].mxu1 }
 0x408   :  { %v2512_v60 = vmul.f32 0.2, %v2428_v36  ;;  %v2431_v15 = vadd.f32 %v4587_v41, %v2430_v21  ;;  %v2432_v53 = vpop.f32.mrb[79].mxu1  ;;  %2599 = vxpose.xlu0.b32.cont [6/8] (short) %v2543_v7, 128 }
 0x40a   :  { %v2544_v2 = vmax.f32 %v2428_v36, %v2512_v60  ;;  %v2513_v59 = vmul.f32 0.2, %v2431_v15 }
 0x40c   :  { %2600 = vxpose.xlu0.b32.cont [7/8] (short) %v2544_v2, 128  ;;  %v2545_v3 = vmax.f32 %v2431_v15, %v2513_v59 }
 0x40d   :  { %v2435_v55 = vpop.f32.mrb[80].mxu1 }
 0x40e   :  { %v2437_v33 = vpop.f32.mrb[81].mxu1  ;;  %v2436_v6 = vadd.f32 %v4587_v41, %v2435_v55 }
 0x40f   :  { %v2438_v42 = vpop.f32.mrb[82].mxu1 }
 0x410   :  { %v2440_v58 = vpop.f32.mrb[83].mxu1  ;;  %2601 = vxpose.xlu0.b32.end [8/8] (short) %v2545_v3, 128  ;;  %v2514_v46 = vmul.f32 0.2, %v2436_v6  ;;  %v2439_v34 = vadd.f32 %v4587_v41, %v2438_v42 }
 0x412   :  { %v2546_v4 = vmax.f32 %v2436_v6, %v2514_v46  ;;  %v2515_v52 = vmul.f32 0.2, %v2439_v34 }
 0x414   :  { %v2547_v47 = vmax.f32 %v2439_v34, %v2515_v52  ;;  %v3289_v34 = vld [vmem:[#allocation2] sm:$0xff]  ;;  %v3291_v52 = vld [vmem:[#allocation2 + $0x10] sm:$0xff] }
 0x415   :  { %v2443_v40 = vpop.f32.mrb[84].mxu1 }
 0x416   :  { %v2445_v62 = vpop.f32.mrb[85].mxu1  ;;  %v2444_v31 = vadd.f32 %v4587_v41, %v2443_v40 }
 0x417   :  { %v2446_v0 = vpop.f32.mrb[86].mxu1 }
 0x418   :  { %v2448_v56 = vpop.f32.mrb[87].mxu1  ;;  %v2516_v20 = vmul.f32 0.2, %v2444_v31  ;;  %v2447_v43 = vadd.f32 %v4587_v41, %v2446_v0 }
 0x41a   :  { %v2548_v39 = vmax.f32 %v2444_v31, %v2516_v20  ;;  %v2517_v50 = vmul.f32 0.2, %v2447_v43  ;;  %v3294_v20 = vld [vmem:[#allocation2 + $0x28] sm:$0xff] }
 0x41c   :  { %v2549_v61 = vmax.f32 %v2447_v43, %v2517_v50 }
 0x41d   :  { %v2451_v54 = vpop.f32.mrb[88].mxu1 }
 0x41e   :  { %v2453_v27 = vpop.f32.mrb[89].mxu1  ;;  %v2452_v35 = vadd.f32 %v4587_v41, %v2451_v54 }
 0x41f   :  { %v2454_v23 = vpop.f32.mrb[90].mxu1 }
 0x420   :  { %v2456_v44 = vpop.f32.mrb[91].mxu1  ;;  %v2518_v11 = vmul.f32 0.2, %v2452_v35  ;;  %v2455_v16 = vadd.f32 %v4587_v41, %v2454_v23 }
 0x422   :  { %v2550_v36 = vmax.f32 %v2452_v35, %v2518_v11  ;;  %v2519_v9 = vmul.f32 0.2, %v2455_v16  ;;  %v3299_v11 = vld [vmem:[#allocation2 + $0x88] sm:$0xff] }
 0x424   :  { %v2551_v3 = vmax.f32 %v2455_v16, %v2519_v9 }
 0x425   :  { %v2459_v51 = vpop.f32.mrb[92].mxu1 }
 0x426   :  { %v2461_v1 = vpop.f32.mrb[93].mxu1  ;;  %v2460_v21 = vadd.f32 %v4587_v41, %v2459_v51 }
 0x427   :  { %v2462_v24 = vpop.f32.mrb[94].mxu1 }
 0x428   :  { %v2464_v49 = vpop.f32.mrb[95].mxu1  ;;  %v2520_v33 = vmul.f32 0.2, %v2460_v21  ;;  %v2463_v42 = vadd.f32 %v4587_v41, %v2462_v24 }
 0x42a   :  { %v2552_v56 = vmax.f32 %v2460_v21, %v2520_v33  ;;  %v2521_v54 = vmul.f32 0.2, %v2463_v42  ;;  %v3302_v21 = vld [vmem:[#allocation2 + $0x50] sm:$0xff] }
 0x42c   :  { %v2553_v49 = vmax.f32 %v2463_v42, %v2521_v54 }
 0x42d   :  { %v2467_v57 = vpop.f32.mrb[96].mxu1 }
 0x42e   :  { %v2468_v13 = vadd.f32 %v4587_v41, %v2467_v57  ;;  %v2469_v8 = vpop.f32.mrb[97].mxu1 }
 0x42f   :  { %v2470_v10 = vpop.f32.mrb[98].mxu1  ;;  %v3290_v8 = vld [vmem:[#allocation2 + $0x8] sm:$0xff] }
 0x430   :  { %v2522_v28 = vmul.f32 0.2, %v2468_v13  ;;  %v2471_v12 = vadd.f32 %v4587_v41, %v2470_v10  ;;  %v2472_v5 = vpop.f32.mrb[99].mxu1 }
 0x431   :  { %2626 = vxpose.xlu0.b32.start [1/8] (short) %v2546_v4, 128 }
 0x432   :  { %v2554_v29 = vmax.f32 %v2468_v13, %v2522_v28  ;;  %v2523_v45 = vmul.f32 0.2, %v2471_v12  ;;  %v3292_v28 = vld [vmem:[#allocation2 + $0x18] sm:$0xff] }
 0x434   :  { %2658 = vxpose.xlu1.b32.start [1/8] (short) %v2554_v29, 128  ;;  %v2555_v22 = vmax.f32 %v2471_v12, %v2523_v45  ;;  %v3293_v29 = vld [vmem:[#allocation2 + $0x20] sm:$0xff] }
 0x435   :  { %2627 = vxpose.xlu0.b32.cont [2/8] (short) %v2547_v47, 128  ;;  %v2475_v18 = vpop.f32.mrb[100].mxu1 }
 0x436   :  { %v2476_v30 = vadd.f32 %v4587_v41, %v2475_v18  ;;  %v2477_v32 = vpop.f32.mrb[101].mxu1 }
 0x437   :  { %v2478_v48 = vpop.f32.mrb[102].mxu1 }
 0x438   :  { %v2524_v63 = vmul.f32 0.2, %v2476_v30  ;;  %v2479_v26 = vadd.f32 %v4587_v41, %v2478_v48  ;;  %2659 = vxpose.xlu1.b32.cont [2/8] (short) %v2555_v22, 128  ;;  %v2480_v19 = vpop.f32.mrb[103].mxu1  ;;  %v3295_v22 = vld [vmem:[#allocation2 + $0x30] sm:$0xff] }
 0x439   :  { %2628 = vxpose.xlu0.b32.cont [3/8] (short) %v2548_v39, 128  ;;  %v3296_v39 = vld [vmem:[#allocation2 + $0x38] sm:$0xff]  ;;  %v3298_v19 = vld [vmem:[#allocation2 + $0x40] sm:$0xff] }
 0x43a   :  { %v2556_v14 = vmax.f32 %v2476_v30, %v2524_v63  ;;  %v2525_v38 = vmul.f32 0.2, %v2479_v26  ;;  %v3297_v63 = vld [vmem:[#allocation2 + $0x80] sm:$0xff] }
 0x43c   :  { %2660 = vxpose.xlu1.b32.cont [3/8] (short) %v2556_v14, 128  ;;  %v2557_v17 = vmax.f32 %v2479_v26, %v2525_v38 }
 0x43d   :  { %2629 = vxpose.xlu0.b32.cont [4/8] (short) %v2549_v61, 128  ;;  %v2483_v25 = vpop.f32.mrb[104].mxu1 }
 0x43e   :  { %v2484_v37 = vadd.f32 %v4587_v41, %v2483_v25  ;;  %v2485_v7 = vpop.f32.mrb[105].mxu1  ;;  %v3300_v25 = vld [vmem:[#allocation2 + $0x48] sm:$0xff] }
 0x43f   :  { %v2486_v60 = vpop.f32.mrb[106].mxu1 }
 0x440   :  { %v2526_v15 = vmul.f32 0.2, %v2484_v37  ;;  %v2487_v53 = vadd.f32 %v4587_v41, %v2486_v60  ;;  %2661 = vxpose.xlu1.b32.cont [4/8] (short) %v2557_v17, 128  ;;  %v2488_v2 = vpop.f32.mrb[107].mxu1 }
 0x441   :  { %2630 = vxpose.xlu0.b32.cont [5/8] (short) %v2550_v36, 128  ;;  %v3301_v36 = vld [vmem:[#allocation2 + $0x90] sm:$0xff]  ;;  %v3303_v2 = vld [vmem:[#allocation2 + $0x98] sm:$0xff] }
 0x442   :  { %v2558_v59 = vmax.f32 %v2484_v37, %v2526_v15  ;;  %v2527_v55 = vmul.f32 0.2, %v2487_v53 }
 0x444   :  { %2662 = vxpose.xlu1.b32.cont [5/8] (short) %v2558_v59, 128  ;;  %v2559_v40 = vmax.f32 %v2487_v53, %v2527_v55  ;;  %v3304_v55 = vld [vmem:[#allocation2 + $0x58] sm:$0xff] }
 0x445   :  { %2631 = vxpose.xlu0.b32.cont [6/8] (short) %v2551_v3, 128  ;;  %v2491_v58 = vpop.f32.mrb[108].mxu1 }
 0x446   :  { %v2492_v62 = vadd.f32 %v4587_v41, %v2491_v58  ;;  %v2493_v0 = vpop.f32.mrb[109].mxu1  ;;  %v3305_v58 = vld [vmem:[#allocation2 + $0xa0] sm:$0xff] }
 0x447   :  { %v2494_v27 = vpop.f32.mrb[110].mxu1 }
 0x448   :  { %v2528_v23 = vmul.f32 0.2, %v2492_v62  ;;  %v2495_v44 = vadd.f32 %v4587_v41, %v2494_v27  ;;  %2663 = vxpose.xlu1.b32.cont [6/8] (short) %v2559_v40, 128  ;;  %v2496_v51 = vpop.f32.mrb[111].mxu1  ;;  %v3307_v27 = vld [vmem:[#allocation2 + $0xa8] sm:$0xff] }
 0x449   :  { %2632 = vxpose.xlu0.b32.cont [7/8] (short) %v2552_v56, 128 }
 0x44a   :  { %v2560_v1 = vmax.f32 %v2492_v62, %v2528_v23  ;;  %v2529_v6 = vmul.f32 0.2, %v2495_v44  ;;  %v3306_v62 = vld [vmem:[#allocation2 + $0x60] sm:$0xff] }
 0x44c   :  { %2664 = vxpose.xlu1.b32.cont [7/8] (short) %v2560_v1, 128  ;;  %v2561_v24 = vmax.f32 %v2495_v44, %v2529_v6  ;;  %v3308_v44 = vld [vmem:[#allocation2 + $0x68] sm:$0xff] }
 0x44d   :  { %2633 = vxpose.xlu0.b32.end [8/8] (short) %v2553_v49, 128  ;;  %v3309_v49 = vld [vmem:[#allocation2 + $0xb0] sm:$0xff] }
 0x450   :  { %2665 = vxpose.xlu1.b32.end [8/8] (short) %v2561_v24, 128 }
 0x454   :  { %v2578_v46 = vpop.trf.xlu1 }
 0x455   :  { %v2690_v57 = vadd.f32 %v3289_v34, %v2578_v46  ;;  %v3310_v46 = vld [vmem:[#allocation2 + $0x70] sm:$0xff] }
 0x457   :  { %2754 = vst.msk [vmem:[#allocation11] sm:$0xff] %vm2120_vm7, %v2690_v57 }
 0x458   :  { %v2579_v13 = vpop.trf.xlu1 }
 0x459   :  { %v2691_v4 = vadd.f32 %v3290_v8, %v2579_v13  ;;  %v3311_v8 = vld [vmem:[#allocation2 + $0xb8] sm:$0xff] }
 0x45b   :  { %2755 = vst.msk [vmem:[#allocation11 + $0x8] sm:$0xff] %vm2120_vm7, %v2691_v4 }
 0x45c   :  { %v2580_v41 = vpop.trf.xlu1 }
 0x45d   :  { %v2692_v31 = vadd.f32 %v3291_v52, %v2580_v41  ;;  %v3312_v41 = vld [vmem:[#allocation2 + $0x78] sm:$0xff] }
 0x45f   :  { %2756 = vst.msk [vmem:[#allocation11 + $0x10] sm:$0xff] %vm2120_vm7, %v2692_v31 }
 0x460   :  { %v2581_v10 = vpop.trf.xlu1 }
 0x461   :  { %v2693_v12 = vadd.f32 %v3292_v28, %v2581_v10  ;;  %v3313_v10 = vld [vmem:[#allocation2 + $0xc0] sm:$0xff] }
 0x463   :  { %2757 = vst.msk [vmem:[#allocation11 + $0x18] sm:$0xff] %vm2120_vm7, %v2693_v12 }
 0x464   :  { %v2582_v5 = vpop.trf.xlu1 }
 0x465   :  { %v2694_v45 = vadd.f32 %v3293_v29, %v2582_v5  ;;  %v3314_v5 = vld [vmem:[#allocation2 + $0xc8] sm:$0xff] }
 0x467   :  { %2758 = vst.msk [vmem:[#allocation11 + $0x20] sm:$0xff] %vm2120_vm7, %v2694_v45 }
 0x468   :  { %v2583_v47 = vpop.trf.xlu1 }
 0x469   :  { %v2695_v43 = vadd.f32 %v3294_v20, %v2583_v47  ;;  %v3315_v47 = vld [vmem:[#allocation2 + $0xd0] sm:$0xff] }
 0x46b   :  { %2759 = vst.msk [vmem:[#allocation11 + $0x28] sm:$0xff] %vm2120_vm7, %v2695_v43 }
 0x46c   :  { %v2584_v18 = vpop.trf.xlu1 }
 0x46d   :  { %v2696_v30 = vadd.f32 %v3295_v22, %v2584_v18  ;;  %v3316_v18 = vld [vmem:[#allocation2 + $0xd8] sm:$0xff] }
 0x46f   :  { %2760 = vst.msk [vmem:[#allocation11 + $0x30] sm:$0xff] %vm2120_vm7, %v2696_v30 }
 0x470   :  { %v2585_v32 = vpop.trf.xlu1 }
 0x471   :  { %v2697_v50 = vadd.f32 %v3296_v39, %v2585_v32  ;;  %v3317_v32 = vld [vmem:[#allocation2 + $0xe0] sm:$0xff] }
 0x473   :  { %2761 = vst.msk [vmem:[#allocation11 + $0x38] sm:$0xff] %vm2120_vm7, %v2697_v50 }
 0x474   :  { %v2610_v35 = vpop.trf.xlu0  ;;  %v2586_v48 = vpop.trf.xlu1 }
 0x475   :  { %v2706_v26 = vadd.f32 %v3297_v63, %v2610_v35  ;;  %v2698_v14 = vadd.f32 %v3298_v19, %v2586_v48  ;;  %v3318_v35 = vld [vmem:[#allocation2 + $0xe8] sm:$0xff] }
 0x477   :  { %2770 = vst.msk [vmem:[#allocation11 + $0x80] sm:$0xff] %vm2120_vm7, %v2706_v26  ;;  %2762 = vst.msk [vmem:[#allocation11 + $0x40] sm:$0xff] %vm2120_vm7, %v2698_v14  ;;  %v3319_v26 = vld [vmem:[#allocation2 + $0xf0] sm:$0xff] }
 0x478   :  { %v2611_v38 = vpop.trf.xlu0  ;;  %v2587_v61 = vpop.trf.xlu1 }
 0x479   :  { %v2707_v16 = vadd.f32 %v3299_v11, %v2611_v38  ;;  %v2699_v17 = vadd.f32 %v3300_v25, %v2587_v61  ;;  %v3320_v38 = vld [vmem:[#allocation2 + $0xf8] sm:$0xff]  ;;  %v3321_v25 = vld [vmem:[#allocation2 + $0x180] sm:$0xff] }
 0x47b   :  { %2771 = vst.msk [vmem:[#allocation11 + $0x88] sm:$0xff] %vm2120_vm7, %v2707_v16  ;;  %2763 = vst.msk [vmem:[#allocation11 + $0x48] sm:$0xff] %vm2120_vm7, %v2699_v17 }
 0x47c   :  { %v2612_v37 = vpop.trf.xlu0  ;;  %v2588_v7 = vpop.trf.xlu1 }
 0x47d   :  { %v2708_v9 = vadd.f32 %v3301_v36, %v2612_v37  ;;  %v2700_v60 = vadd.f32 %v3302_v21, %v2588_v7  ;;  %v3322_v37 = vld [vmem:[#allocation2 + $0x100] sm:$0xff]  ;;  %v3323_v21 = vld [vmem:[#allocation2 + $0x188] sm:$0xff] }
 0x47f   :  { %2772 = vst.msk [vmem:[#allocation11 + $0x90] sm:$0xff] %vm2120_vm7, %v2708_v9  ;;  %2764 = vst.msk [vmem:[#allocation11 + $0x50] sm:$0xff] %vm2120_vm7, %v2700_v60 }
 0x480   :  { %v2613_v15 = vpop.trf.xlu0  ;;  %v2589_v53 = vpop.trf.xlu1 }
 0x481   :  { %v2709_v59 = vadd.f32 %v3303_v2, %v2613_v15  ;;  %v2701_v3 = vadd.f32 %v3304_v55, %v2589_v53  ;;  %v3324_v15 = vld [vmem:[#allocation2 + $0x108] sm:$0xff]  ;;  %v3325_v55 = vld [vmem:[#allocation2 + $0x190] sm:$0xff] }
 0x483   :  { %2773 = vst.msk [vmem:[#allocation11 + $0x98] sm:$0xff] %vm2120_vm7, %v2709_v59  ;;  %2765 = vst.msk [vmem:[#allocation11 + $0x58] sm:$0xff] %vm2120_vm7, %v2701_v3 }
 0x484   :  { %v2614_v33 = vpop.trf.xlu0  ;;  %v2590_v42 = vpop.trf.xlu1 }
 0x485   :  { %v2710_v40 = vadd.f32 %v3305_v58, %v2614_v33  ;;  %v2702_v0 = vadd.f32 %v3306_v62, %v2590_v42  ;;  %v3326_v33 = vld [vmem:[#allocation2 + $0x110] sm:$0xff]  ;;  %v3327_v62 = vld [vmem:[#allocation2 + $0x198] sm:$0xff] }
 0x487   :  { %2774 = vst.msk [vmem:[#allocation11 + $0xa0] sm:$0xff] %vm2120_vm7, %v2710_v40  ;;  %2766 = vst.msk [vmem:[#allocation11 + $0x60] sm:$0xff] %vm2120_vm7, %v2702_v0 }
 0x488   :  { %v2615_v56 = vpop.trf.xlu0  ;;  %v2591_v54 = vpop.trf.xlu1 }
 0x489   :  { %v2711_v23 = vadd.f32 %v3307_v27, %v2615_v56  ;;  %v2703_v51 = vadd.f32 %v3308_v44, %v2591_v54  ;;  %v3328_v56 = vld [vmem:[#allocation2 + $0x118] sm:$0xff]  ;;  %v3329_v44 = vld [vmem:[#allocation2 + $0x1a0] sm:$0xff] }
 0x48b   :  { %2775 = vst.msk [vmem:[#allocation11 + $0xa8] sm:$0xff] %vm2120_vm7, %v2711_v23  ;;  %2767 = vst.msk [vmem:[#allocation11 + $0x68] sm:$0xff] %vm2120_vm7, %v2703_v51 }
 0x48c   :  { %v2616_v1 = vpop.trf.xlu0  ;;  %v2592_v6 = vpop.trf.xlu1 }
 0x48d   :  { %v2712_v24 = vadd.f32 %v3309_v49, %v2616_v1  ;;  %v2704_v34 = vadd.f32 %v3310_v46, %v2592_v6  ;;  %v3330_v1 = vld [vmem:[#allocation2 + $0x120] sm:$0xff]  ;;  %v3331_v46 = vld [vmem:[#allocation2 + $0x1a8] sm:$0xff] }
 0x48f   :  { %2776 = vst.msk [vmem:[#allocation11 + $0xb0] sm:$0xff] %vm2120_vm7, %v2712_v24  ;;  %2768 = vst.msk [vmem:[#allocation11 + $0x70] sm:$0xff] %vm2120_vm7, %v2704_v34 }
 0x490   :  { %v2617_v57 = vpop.trf.xlu0  ;;  %v2593_v13 = vpop.trf.xlu1 }
 0x491   :  { %v2713_v4 = vadd.f32 %v3311_v8, %v2617_v57  ;;  %v2705_v52 = vadd.f32 %v3312_v41, %v2593_v13  ;;  %v3332_v57 = vld [vmem:[#allocation2 + $0x128] sm:$0xff]  ;;  %v3333_v41 = vld [vmem:[#allocation2 + $0x1b0] sm:$0xff] }
 0x493   :  { %2777 = vst.msk [vmem:[#allocation11 + $0xb8] sm:$0xff] %vm2120_vm7, %v2713_v4  ;;  %2769 = vst.msk [vmem:[#allocation11 + $0x78] sm:$0xff] %vm2120_vm7, %v2705_v52 }
 0x494   :  { %v2618_v31 = vpop.trf.xlu0 }
 0x495   :  { %v2714_v28 = vadd.f32 %v3313_v10, %v2618_v31  ;;  %v3334_v31 = vld [vmem:[#allocation2 + $0x130] sm:$0xff] }
 0x497   :  { %2778 = vst.msk [vmem:[#allocation11 + $0xc0] sm:$0xff] %vm2120_vm7, %v2714_v28 }
 0x498   :  { %v2619_v12 = vpop.trf.xlu0 }
 0x499   :  { %v2715_v29 = vadd.f32 %v3314_v5, %v2619_v12  ;;  %v3335_v5 = vld [vmem:[#allocation2 + $0x1b8] sm:$0xff] }
 0x49b   :  { %2779 = vst.msk [vmem:[#allocation11 + $0xc8] sm:$0xff] %vm2120_vm7, %v2715_v29 }
 0x49c   :  { %v2620_v45 = vpop.trf.xlu0 }
 0x49d   :  { %v2716_v20 = vadd.f32 %v3315_v47, %v2620_v45  ;;  %v3336_v45 = vld [vmem:[#allocation2 + $0x138] sm:$0xff] }
 0x49f   :  { %2780 = vst.msk [vmem:[#allocation11 + $0xd0] sm:$0xff] %vm2120_vm7, %v2716_v20 }
 0x4a0   :  { %v2621_v43 = vpop.trf.xlu0 }
 0x4a1   :  { %v2717_v22 = vadd.f32 %v3316_v18, %v2621_v43  ;;  %v3337_v18 = vld [vmem:[#allocation2 + $0x1c0] sm:$0xff] }
 0x4a3   :  { %2781 = vst.msk [vmem:[#allocation11 + $0xd8] sm:$0xff] %vm2120_vm7, %v2717_v22 }
 0x4a4   :  { %v2622_v30 = vpop.trf.xlu0 }
 0x4a5   :  { %v2718_v39 = vadd.f32 %v3317_v32, %v2622_v30  ;;  %v3338_v30 = vld [vmem:[#allocation2 + $0x140] sm:$0xff] }
 0x4a7   :  { %2782 = vst.msk [vmem:[#allocation11 + $0xe0] sm:$0xff] %vm2120_vm7, %v2718_v39 }
 0x4a8   :  { %v2623_v50 = vpop.trf.xlu0 }
 0x4a9   :  { %v2719_v48 = vadd.f32 %v3318_v35, %v2623_v50  ;;  %v3339_v35 = vld [vmem:[#allocation2 + $0x1c8] sm:$0xff] }
 0x4ab   :  { %2783 = vst.msk [vmem:[#allocation11 + $0xe8] sm:$0xff] %vm2120_vm7, %v2719_v48 }
 0x4ac   :  { %v2624_v63 = vpop.trf.xlu0 }
 0x4ad   :  { %v2720_v19 = vadd.f32 %v3319_v26, %v2624_v63  ;;  %v3340_v63 = vld [vmem:[#allocation2 + $0x148] sm:$0xff] }
 0x4af   :  { %2784 = vst.msk [vmem:[#allocation11 + $0xf0] sm:$0xff] %vm2120_vm7, %v2720_v19 }
 0x4b0   :  { %v2625_v14 = vpop.trf.xlu0 }
 0x4b1   :  { %v2721_v61 = vadd.f32 %v3320_v38, %v2625_v14  ;;  %v3341_v38 = vld [vmem:[#allocation2 + $0x1d0] sm:$0xff] }
 0x4b3   :  { %2785 = vst.msk [vmem:[#allocation11 + $0xf8] sm:$0xff] %vm2120_vm7, %v2721_v61 }
 0x4b4   :  { %v2674_v11 = vpop.trf.xlu1  ;;  %v2642_v16 = vpop.trf.xlu0 }
 0x4b5   :  { %v2738_v17 = vadd.f32 %v3321_v25, %v2674_v11  ;;  %v2722_v7 = vadd.f32 %v3322_v37, %v2642_v16  ;;  %v3342_v11 = vld [vmem:[#allocation2 + $0x150] sm:$0xff]  ;;  %v3343_v37 = vld [vmem:[#allocation2 + $0x1d8] sm:$0xff] }
 0x4b7   :  { %2802 = vst.msk [vmem:[#allocation11 + $0x180] sm:$0xff] %vm2120_vm7, %v2738_v17  ;;  %2786 = vst.msk [vmem:[#allocation11 + $0x100] sm:$0xff] %vm2120_vm7, %v2722_v7 }
 0x4b8   :  { %v2675_v36 = vpop.trf.xlu1  ;;  %v2643_v9 = vpop.trf.xlu0 }
 0x4b9   :  { %v2739_v60 = vadd.f32 %v3323_v21, %v2675_v36  ;;  %v2723_v53 = vadd.f32 %v3324_v15, %v2643_v9  ;;  %v3344_v36 = vld [vmem:[#allocation2 + $0x158] sm:$0xff]  ;;  %v3345_v15 = vld [vmem:[#allocation2 + $0x1e0] sm:$0xff] }
 0x4bb   :  { %2803 = vst.msk [vmem:[#allocation11 + $0x188] sm:$0xff] %vm2120_vm7, %v2739_v60  ;;  %2787 = vst.msk [vmem:[#allocation11 + $0x108] sm:$0xff] %vm2120_vm7, %v2723_v53 }
 0x4bc   :  { %v2676_v2 = vpop.trf.xlu1  ;;  %v2644_v59 = vpop.trf.xlu0 }
 0x4bd   :  { %v2740_v3 = vadd.f32 %v3325_v55, %v2676_v2  ;;  %v2724_v42 = vadd.f32 %v3326_v33, %v2644_v59  ;;  %v3346_v2 = vld [vmem:[#allocation2 + $0x160] sm:$0xff]  ;;  %v3347_v33 = vld [vmem:[#allocation2 + $0x1e8] sm:$0xff] }
 0x4bf   :  { %2804 = vst.msk [vmem:[#allocation11 + $0x190] sm:$0xff] %vm2120_vm7, %v2740_v3  ;;  %2788 = vst.msk [vmem:[#allocation11 + $0x110] sm:$0xff] %vm2120_vm7, %v2724_v42 }
 0x4c0   :  { %v2677_v58 = vpop.trf.xlu1  ;;  %v2645_v40 = vpop.trf.xlu0 }
 0x4c1   :  { %v2741_v0 = vadd.f32 %v3327_v62, %v2677_v58  ;;  %v2725_v54 = vadd.f32 %v3328_v56, %v2645_v40  ;;  %v3348_v58 = vld [vmem:[#allocation2 + $0x168] sm:$0xff]  ;;  %v3349_v56 = vld [vmem:[#allocation2 + $0x1f0] sm:$0xff] }
 0x4c3   :  { %2805 = vst.msk [vmem:[#allocation11 + $0x198] sm:$0xff] %vm2120_vm7, %v2741_v0  ;;  %2789 = vst.msk [vmem:[#allocation11 + $0x118] sm:$0xff] %vm2120_vm7, %v2725_v54 }
 0x4c4   :  { %v2678_v27 = vpop.trf.xlu1  ;;  %v2646_v23 = vpop.trf.xlu0 }
 0x4c5   :  { %v2742_v51 = vadd.f32 %v3329_v44, %v2678_v27  ;;  %v2726_v6 = vadd.f32 %v3330_v1, %v2646_v23  ;;  %v3350_v27 = vld [vmem:[#allocation2 + $0x170] sm:$0xff]  ;;  %v3351_v1 = vld [vmem:[#allocation2 + $0x1f8] sm:$0xff] }
 0x4c7   :  { %2806 = vst.msk [vmem:[#allocation11 + $0x1a0] sm:$0xff] %vm2120_vm7, %v2742_v51  ;;  %2790 = vst.msk [vmem:[#allocation11 + $0x120] sm:$0xff] %vm2120_vm7, %v2726_v6 }
 0x4c8   :  { %v2679_v49 = vpop.trf.xlu1  ;;  %v2647_v24 = vpop.trf.xlu0 }
 0x4c9   :  { %v2743_v34 = vadd.f32 %v3331_v46, %v2679_v49  ;;  %v2727_v13 = vadd.f32 %v3332_v57, %v2647_v24  ;;  %v3352_v49 = vld [vmem:[#allocation2 + $0x178] sm:$0xff] }
 0x4cb   :  { %2807 = vst.msk [vmem:[#allocation11 + $0x1a8] sm:$0xff] %vm2120_vm7, %v2743_v34  ;;  %2791 = vst.msk [vmem:[#allocation11 + $0x128] sm:$0xff] %vm2120_vm7, %v2727_v13 }
 0x4cc   :  { %v2680_v8 = vpop.trf.xlu1  ;;  %v2648_v4 = vpop.trf.xlu0 }
 0x4cd   :  { %v2744_v52 = vadd.f32 %v3333_v41, %v2680_v8  ;;  %v2728_v10 = vadd.f32 %v3334_v31, %v2648_v4 }
 0x4cf   :  { %2808 = vst.msk [vmem:[#allocation11 + $0x1b0] sm:$0xff] %vm2120_vm7, %v2744_v52  ;;  %2792 = vst.msk [vmem:[#allocation11 + $0x130] sm:$0xff] %vm2120_vm7, %v2728_v10 }
 0x4d0   :  { %v2681_v28 = vpop.trf.xlu1  ;;  %v2649_v12 = vpop.trf.xlu0 }
 0x4d1   :  { %v2745_v29 = vadd.f32 %v3335_v5, %v2681_v28  ;;  %v2729_v47 = vadd.f32 %v3336_v45, %v2649_v12 }
 0x4d3   :  { %2809 = vst.msk [vmem:[#allocation11 + $0x1b8] sm:$0xff] %vm2120_vm7, %v2745_v29  ;;  %2793 = vst.msk [vmem:[#allocation11 + $0x138] sm:$0xff] %vm2120_vm7, %v2729_v47 }
 0x4d4   :  { %v2682_v20 = vpop.trf.xlu1  ;;  %v2650_v43 = vpop.trf.xlu0 }
 0x4d5   :  { %v2746_v22 = vadd.f32 %v3337_v18, %v2682_v20  ;;  %v2730_v32 = vadd.f32 %v3338_v30, %v2650_v43 }
 0x4d7   :  { %2810 = vst.msk [vmem:[#allocation11 + $0x1c0] sm:$0xff] %vm2120_vm7, %v2746_v22  ;;  %2794 = vst.msk [vmem:[#allocation11 + $0x140] sm:$0xff] %vm2120_vm7, %v2730_v32 }
 0x4d8   :  { %v2683_v39 = vpop.trf.xlu1  ;;  %v2651_v50 = vpop.trf.xlu0 }
 0x4d9   :  { %v2747_v48 = vadd.f32 %v3339_v35, %v2683_v39  ;;  %v2731_v26 = vadd.f32 %v3340_v63, %v2651_v50 }
 0x4db   :  { %2811 = vst.msk [vmem:[#allocation11 + $0x1c8] sm:$0xff] %vm2120_vm7, %v2747_v48  ;;  %2795 = vst.msk [vmem:[#allocation11 + $0x148] sm:$0xff] %vm2120_vm7, %v2731_v26 }
 0x4dc   :  { %v2684_v19 = vpop.trf.xlu1  ;;  %v2652_v14 = vpop.trf.xlu0 }
 0x4dd   :  { %v2748_v61 = vadd.f32 %v3341_v38, %v2684_v19  ;;  %v2732_v16 = vadd.f32 %v3342_v11, %v2652_v14 }
 0x4df   :  { %2812 = vst.msk [vmem:[#allocation11 + $0x1d0] sm:$0xff] %vm2120_vm7, %v2748_v61  ;;  %2796 = vst.msk [vmem:[#allocation11 + $0x150] sm:$0xff] %vm2120_vm7, %v2732_v16 }
 0x4e0   :  { %v2685_v25 = vpop.trf.xlu1  ;;  %v2653_v17 = vpop.trf.xlu0 }
 0x4e1   :  { %v2749_v7 = vadd.f32 %v3343_v37, %v2685_v25  ;;  %v2733_v9 = vadd.f32 %v3344_v36, %v2653_v17 }
 0x4e3   :  { %2813 = vst.msk [vmem:[#allocation11 + $0x1d8] sm:$0xff] %vm2120_vm7, %v2749_v7  ;;  %2797 = vst.msk [vmem:[#allocation11 + $0x158] sm:$0xff] %vm2120_vm7, %v2733_v9 }
 0x4e4   :  { %v2686_v21 = vpop.trf.xlu1  ;;  %v2654_v60 = vpop.trf.xlu0 }
 0x4e5   :  { %v2750_v53 = vadd.f32 %v3345_v15, %v2686_v21  ;;  %v2734_v59 = vadd.f32 %v3346_v2, %v2654_v60 }
 0x4e7   :  { %2814 = vst.msk [vmem:[#allocation11 + $0x1e0] sm:$0xff] %vm2120_vm7, %v2750_v53  ;;  %2798 = vst.msk [vmem:[#allocation11 + $0x160] sm:$0xff] %vm2120_vm7, %v2734_v59 }
 0x4e8   :  { %v2687_v55 = vpop.trf.xlu1  ;;  %v2655_v3 = vpop.trf.xlu0 }
 0x4e9   :  { %v2751_v42 = vadd.f32 %v3347_v33, %v2687_v55  ;;  %v2735_v40 = vadd.f32 %v3348_v58, %v2655_v3 }
 0x4eb   :  { %2815 = vst.msk [vmem:[#allocation11 + $0x1e8] sm:$0xff] %vm2120_vm7, %v2751_v42  ;;  %2799 = vst.msk [vmem:[#allocation11 + $0x168] sm:$0xff] %vm2120_vm7, %v2735_v40 }
 0x4ec   :  { %v2688_v62 = vpop.trf.xlu1  ;;  %v2656_v0 = vpop.trf.xlu0 }
 0x4ed   :  { %v2752_v54 = vadd.f32 %v3349_v56, %v2688_v62  ;;  %v2736_v23 = vadd.f32 %v3350_v27, %v2656_v0 }
 0x4ef   :  { %2816 = vst.msk [vmem:[#allocation11 + $0x1f0] sm:$0xff] %vm2120_vm7, %v2752_v54  ;;  %2800 = vst.msk [vmem:[#allocation11 + $0x170] sm:$0xff] %vm2120_vm7, %v2736_v23 }
 0x4f0   :  { %v2689_v44 = vpop.trf.xlu1  ;;  %v2657_v51 = vpop.trf.xlu0 }
 0x4f1   :  { %v2753_v6 = vadd.f32 %v3351_v1, %v2689_v44  ;;  %v2737_v24 = vadd.f32 %v3352_v49, %v2657_v51 }
 0x4f3   :  { %2817 = vst.msk [vmem:[#allocation11 + $0x1f8] sm:$0xff] %vm2120_vm7, %v2753_v6  ;;  %2801 = vst.msk [vmem:[#allocation11 + $0x178] sm:$0xff] %vm2120_vm7, %v2737_v24 }
 0x4f4   :  { %3474 = shalt.err (!%p3471_p2)
}
 0x4f5   :  { %s3475_s13 = scalar_lea.hbm %s4705_s5, 8192 }
 0x4f6   :  { %p3476_p3 = scmp.ne.s32.totalorder %s4705_s5, %s3475_s13  ;;  %p3479_p4 = scmp.lt.u32.totalorder %s3475_s13, %s4705_s5 }
 0x4f8   :  { %p3481_p5 = pnand %p3479_p4, %p3476_p3 }
 0x4fa   :  { %3484 = shalt.err (!%p3481_p5)
}
 0x4fb   :  { %2829 = dma.vmem_to_hbm [thread:$0]  %s2824_s8, 8192, %s4705_s5, [#allocation4], %s3498_s3, %s3498_s3, %s3499_s29  }
 0x4fc   :  { %3491 = dma.done.wait [#allocation4], 8192  }
 0x4fd   :  { %3492 = vsyncadd [#allocation4], 4294959104 }
 0x4fe   :  { %2833 = vsyncpa [#allocation3], 1 }
 0x4ff   :  { %2834 = vsyncpa [#allocation6], 1 }
 0x500   :  { %2835 = vsyncpa [#allocation9], 1 }
 0x501   :  { %2836 = vsyncpa [#allocation4], 1 }

</bundles_post_ra>
